<compile_context>
chip_gen: v6e
topology: v6e:2x2x1
jax: 0.10.0
libtpu: 0.0.40
codegen_flags: <defaults>
</compile_context>

<pallas_src>
import jax
import jax.numpy as jnp
from jax.experimental import pallas as pl
from jax.experimental.pallas import tpu as pltpu


# ------------------------------- fused kernel ------------------------------- #

def _down_block_kernel(x_ref, w1_ref, b1_ref, g1_ref, be1_ref,
                       w2_ref, b2_ref, g2_ref, be2_ref,
                       o_ref,
                       pad1_ref, col1_ref, pad2_ref, col2_ref):
    """MaxPool2x2 -> (Conv3x3 'same' + BN(train) + ReLU) x2, whole batch in VMEM."""
    N, H, W, Cin = x_ref.shape
    Hh, Wh = H // 2, W // 2
    C1 = w1_ref.shape[1]
    C2 = w2_ref.shape[1]
    M = N * Hh * Wh
    eps = 1e-5

    # ---- MaxPool 2x2 stride 2: four strided loads + elementwise max (VPU) ----
    x00 = x_ref[:, pl.ds(0, Hh, 2), pl.ds(0, Wh, 2), :]
    x01 = x_ref[:, pl.ds(0, Hh, 2), pl.ds(1, Wh, 2), :]
    x10 = x_ref[:, pl.ds(1, Hh, 2), pl.ds(0, Wh, 2), :]
    x11 = x_ref[:, pl.ds(1, Hh, 2), pl.ds(1, Wh, 2), :]
    pooled = jnp.maximum(jnp.maximum(x00, x01), jnp.maximum(x10, x11))

    # ---- 'same' zero padding directly in VMEM scratch (no host jnp.pad) ----
    pad1_ref[...] = jnp.zeros(pad1_ref.shape, pad1_ref.dtype)
    pad1_ref[:, pl.ds(1, Hh), pl.ds(1, Wh), :] = pooled

    def conv_bn_relu(pad_ref, col_ref, cin, w_ref, b_ref, g_ref, be_ref):
        # im2col: pack the 9 shifted patches into (M, 9*cin) so the whole conv
        # is a single MXU matmul instead of 9 small per-tap matmuls.
        k = 0
        for dy in range(3):
            for dx in range(3):
                patch = pad_ref[:, pl.ds(dy, Hh), pl.ds(dx, Wh), :]  # (N,Hh,Wh,cin)
                col_ref[:, pl.ds(k * cin, cin)] = patch.reshape(M, cin)
                k += 1
        y = jnp.dot(col_ref[...], w_ref[...],
                    preferred_element_type=jnp.float32) + b_ref[...]     # (M, cout)

        # Training-mode BatchNorm: biased batch stats over (N, H, W) per channel,
        # two-pass (mean then centered sum of squares) for numerical stability.
        mean = jnp.mean(y, axis=0, keepdims=True)                         # (1, cout)
        yc = y - mean
        var = jnp.mean(yc * yc, axis=0, keepdims=True)                    # biased var
        scale = g_ref[...] * jax.lax.rsqrt(var + eps)                     # EUP rsqrt
        return jnp.maximum(yc * scale + be_ref[...], 0.0)                 # ReLU

    # Stage 1: conv on the pooled input.
    y1 = conv_bn_relu(pad1_ref, col1_ref, Cin, w1_ref, b1_ref, g1_ref, be1_ref)

    # Re-pad stage-1 activations in VMEM for the second 'same' conv.
    pad2_ref[...] = jnp.zeros(pad2_ref.shape, pad2_ref.dtype)
    pad2_ref[:, pl.ds(1, Hh), pl.ds(1, Wh), :] = y1.reshape(N, Hh, Wh, C1)

    # Stage 2.
    y2 = conv_bn_relu(pad2_ref, col2_ref, C1, w2_ref, b2_ref, g2_ref, be2_ref)

    # dropout_p == 0 -> no Dropout layer in the module; nothing to apply here.
    o_ref[...] = y2.reshape(N, Hh, Wh, C2)


# --------------------------------- wrapper ---------------------------------- #

@jax.jit
def down_block(x_nchw, params):
    """DownBlock forward. Input/output are NCHW (PyTorch layout)."""
    N, Cin, H, W = x_nchw.shape
    Hh, Wh = H // 2, W // 2
    C1 = params["w1"].shape[-1]
    C2 = params["w2"].shape[-1]

    x = jnp.transpose(x_nchw, (0, 2, 3, 1))            # NCHW -> NHWC (layout glue)
    w1 = params["w1"].reshape(9 * Cin, C1)             # (3,3,Cin,C1) -> (9*Cin,C1)
    w2 = params["w2"].reshape(9 * C1, C2)

    out_nhwc = pl.pallas_call(
        _down_block_kernel,
        out_shape=jax.ShapeDtypeStruct((N, Hh, Wh, C2), jnp.float32),
        scratch_shapes=[
            pltpu.VMEM((N, Hh + 2, Wh + 2, Cin), jnp.float32),  # padded pooled input
            pltpu.VMEM((N * Hh * Wh, 9 * Cin), jnp.float32),    # im2col buffer conv1
            pltpu.VMEM((N, Hh + 2, Wh + 2, C1), jnp.float32),   # padded stage-1 act.
            pltpu.VMEM((N * Hh * Wh, 9 * C1), jnp.float32),     # im2col buffer conv2
        ],
    )(x, w1,
      params["b1"].reshape(1, C1), params["g1"].reshape(1, C1),
      params["beta1"].reshape(1, C1),
      w2,
      params["b2"].reshape(1, C2), params["g2"].reshape(1, C2),
      params["beta2"].reshape(1, C2))

    return jnp.transpose(out_nhwc, (0, 3, 1, 2))       # NHWC -> NCHW


# ----------------------------- pure-JAX reference ---------------------------- #

def _reference(x_nchw, p, eps=1e-5):
    x = jax.lax.reduce_window(x_nchw, -jnp.inf, jax.lax.max,
                              (1, 1, 2, 2), (1, 1, 2, 2), "VALID")

    def block(x, w, b, g, beta):
        y = jax.lax.conv_general_dilated(
            x, w, window_strides=(1, 1), padding="SAME",
            dimension_numbers=("NCHW", "HWIO", "NCHW"))
        y = y + b.reshape(1, -1, 1, 1)
        mean = jnp.mean(y, axis=(0, 2, 3), keepdims=True)
        var = jnp.var(y, axis=(0, 2, 3), keepdims=True)    # biased, training-mode BN
        y = (y - mean) / jnp.sqrt(var + eps)
        y = y * g.reshape(1, -1, 1, 1) + beta.reshape(1, -1, 1, 1)
        return jnp.maximum(y, 0.0)

    x = block(x, p["w1"], p["b1"], p["g1"], p["beta1"])
    x = block(x, p["w2"], p["b2"], p["g2"], p["beta2"])
    return x


# ----------------------------------- main ------------------------------------ #

if __name__ == "__main__":
    key = jax.random.PRNGKey(0)
    kx, kw1, kb1, kw2, kb2 = jax.random.split(key, 5)

    N, Cin, H, W = 2, 4, 16, 16
    Cout = 8                                   # DownBlock(out_channels=8)

    x = jax.random.normal(kx, (N, Cin, H, W), jnp.float32)
    params = {
        "w1": jax.random.normal(kw1, (3, 3, Cin, Cout), jnp.float32) / jnp.sqrt(9.0 * Cin),
        "b1": 0.1 * jax.random.normal(kb1, (Cout,), jnp.float32),
        "g1": jnp.ones((Cout,), jnp.float32),       # BatchNorm2d init: gamma=1
        "beta1": jnp.zeros((Cout,), jnp.float32),   # BatchNorm2d init: beta=0
        "w2": jax.random.normal(kw2, (3, 3, Cout, Cout), jnp.float32) / jnp.sqrt(9.0 * Cout),
        "b2": 0.1 * jax.random.normal(kb2, (Cout,), jnp.float32),
        "g2": jnp.ones((Cout,), jnp.float32),
        "beta2": jnp.zeros((Cout,), jnp.float32),
    }

    out = jax.block_until_ready(down_block(x, params))
    ref = jax.block_until_ready(_reference(x, params))

    assert out.shape == (N, Cout, H // 2, W // 2), out.shape
    if not jnp.allclose(out, ref, atol=2e-3, rtol=2e-3):
        raise AssertionError(
            f"mismatch vs reference, max abs err = {float(jnp.max(jnp.abs(out - ref)))}")

    print("KERNEL_OK")
</pallas_src>

<mosaic_0001>
module attributes {stable_mosaic.version = 11 : i64} {
  func.func @_down_block_kernel(%arg0: memref<2x16x16x4xf32, #tpu.memory_space<vmem>>, %arg1: memref<36x8xf32, #tpu.memory_space<vmem>>, %arg2: memref<1x8xf32, #tpu.memory_space<vmem>>, %arg3: memref<1x8xf32, #tpu.memory_space<vmem>>, %arg4: memref<1x8xf32, #tpu.memory_space<vmem>>, %arg5: memref<72x8xf32, #tpu.memory_space<vmem>>, %arg6: memref<1x8xf32, #tpu.memory_space<vmem>>, %arg7: memref<1x8xf32, #tpu.memory_space<vmem>>, %arg8: memref<1x8xf32, #tpu.memory_space<vmem>>, %arg9: memref<2x8x8x8xf32, #tpu.memory_space<vmem>>, %arg10: memref<2x10x10x4xf32, #tpu.memory_space<vmem>>, %arg11: memref<128x36xf32, #tpu.memory_space<vmem>>, %arg12: memref<2x10x10x8xf32, #tpu.memory_space<vmem>>, %arg13: memref<128x72xf32, #tpu.memory_space<vmem>>) attributes {dimension_semantics = [], scalar_prefetch = 0 : i64, scratch_operands = 4 : i64, tpu.core_type = #tpu.core_type<tc>} {
    %c0 = arith.constant 0 : index
    %c0_0 = arith.constant 0 : index
    %c0_1 = arith.constant 0 : index
    %c0_2 = arith.constant 0 : index
    %0 = tpu.strided_load %arg0[%c0, %c0_0, %c0_1, %c0_2] {strides = array<i32: 1, 2, 2, 1>} : memref<2x16x16x4xf32, #tpu.memory_space<vmem>>, vector<2x8x8x4xf32>
    %c0_3 = arith.constant 0 : index
    %c0_4 = arith.constant 0 : index
    %c1 = arith.constant 1 : index
    %c0_5 = arith.constant 0 : index
    %1 = tpu.strided_load %arg0[%c0_3, %c0_4, %c1, %c0_5] {strides = array<i32: 1, 2, 2, 1>} : memref<2x16x16x4xf32, #tpu.memory_space<vmem>>, vector<2x8x8x4xf32>
    %c0_6 = arith.constant 0 : index
    %c1_7 = arith.constant 1 : index
    %c0_8 = arith.constant 0 : index
    %c0_9 = arith.constant 0 : index
    %2 = tpu.strided_load %arg0[%c0_6, %c1_7, %c0_8, %c0_9] {strides = array<i32: 1, 2, 2, 1>} : memref<2x16x16x4xf32, #tpu.memory_space<vmem>>, vector<2x8x8x4xf32>
    %c0_10 = arith.constant 0 : index
    %c1_11 = arith.constant 1 : index
    %c1_12 = arith.constant 1 : index
    %c0_13 = arith.constant 0 : index
    %3 = tpu.strided_load %arg0[%c0_10, %c1_11, %c1_12, %c0_13] {strides = array<i32: 1, 2, 2, 1>} : memref<2x16x16x4xf32, #tpu.memory_space<vmem>>, vector<2x8x8x4xf32>
    %4 = arith.maximumf %0, %1 : vector<2x8x8x4xf32>
    %5 = arith.maximumf %2, %3 : vector<2x8x8x4xf32>
    %6 = arith.maximumf %4, %5 : vector<2x8x8x4xf32>
    %cst = arith.constant 0.000000e+00 : f32
    %7 = vector.broadcast %cst : f32 to vector<2x10x10x4xf32>
    %c0_14 = arith.constant 0 : index
    %c0_15 = arith.constant 0 : index
    %c0_16 = arith.constant 0 : index
    %c0_17 = arith.constant 0 : index
    %8 = vector.load %arg10[%c0_14, %c0_15, %c0_16, %c0_17] : memref<2x10x10x4xf32, #tpu.memory_space<vmem>>, vector<2x10x10x4xf32>
    tpu.vector_store %arg10[%c0_14, %c0_15, %c0_16, %c0_17], %7 {strides = array<i32>} : memref<2x10x10x4xf32, #tpu.memory_space<vmem>>, vector<2x10x10x4xf32>,
    %c0_18 = arith.constant 0 : index
    %c1_19 = arith.constant 1 : index
    %c1_20 = arith.constant 1 : index
    %c0_21 = arith.constant 0 : index
    %9 = vector.load %arg10[%c0_18, %c1_19, %c1_20, %c0_21] : memref<2x10x10x4xf32, #tpu.memory_space<vmem>>, vector<2x8x8x4xf32>
    tpu.vector_store %arg10[%c0_18, %c1_19, %c1_20, %c0_21], %6 {strides = array<i32>} : memref<2x10x10x4xf32, #tpu.memory_space<vmem>>, vector<2x8x8x4xf32>,
    %c0_22 = arith.constant 0 : index
    %c0_23 = arith.constant 0 : index
    %c0_24 = arith.constant 0 : index
    %c0_25 = arith.constant 0 : index
    %10 = vector.load %arg10[%c0_22, %c0_23, %c0_24, %c0_25] : memref<2x10x10x4xf32, #tpu.memory_space<vmem>>, vector<2x8x8x4xf32>
    %11 = vector.shape_cast %10 : vector<2x8x8x4xf32> to vector<128x4xf32>
    %c0_26 = arith.constant 0 : index
    %c0_27 = arith.constant 0 : index
    %12 = vector.load %arg11[%c0_26, %c0_27] : memref<128x36xf32, #tpu.memory_space<vmem>>, vector<128x4xf32>
    tpu.vector_store %arg11[%c0_26, %c0_27], %11 {strides = array<i32>} : memref<128x36xf32, #tpu.memory_space<vmem>>, vector<128x4xf32>,
    %c0_28 = arith.constant 0 : index
    %c0_29 = arith.constant 0 : index
    %c1_30 = arith.constant 1 : index
    %c0_31 = arith.constant 0 : index
    %13 = vector.load %arg10[%c0_28, %c0_29, %c1_30, %c0_31] : memref<2x10x10x4xf32, #tpu.memory_space<vmem>>, vector<2x8x8x4xf32>
    %14 = vector.shape_cast %13 : vector<2x8x8x4xf32> to vector<128x4xf32>
    %c0_32 = arith.constant 0 : index
    %c4 = arith.constant 4 : index
    %15 = vector.load %arg11[%c0_32, %c4] : memref<128x36xf32, #tpu.memory_space<vmem>>, vector<128x4xf32>
    tpu.vector_store %arg11[%c0_32, %c4], %14 {strides = array<i32>} : memref<128x36xf32, #tpu.memory_space<vmem>>, vector<128x4xf32>,
    %c0_33 = arith.constant 0 : index
    %c0_34 = arith.constant 0 : index
    %c2 = arith.constant 2 : index
    %c0_35 = arith.constant 0 : index
    %16 = vector.load %arg10[%c0_33, %c0_34, %c2, %c0_35] : memref<2x10x10x4xf32, #tpu.memory_space<vmem>>, vector<2x8x8x4xf32>
    %17 = vector.shape_cast %16 : vector<2x8x8x4xf32> to vector<128x4xf32>
    %c0_36 = arith.constant 0 : index
    %c8 = arith.constant 8 : index
    %18 = vector.load %arg11[%c0_36, %c8] : memref<128x36xf32, #tpu.memory_space<vmem>>, vector<128x4xf32>
    tpu.vector_store %arg11[%c0_36, %c8], %17 {strides = array<i32>} : memref<128x36xf32, #tpu.memory_space<vmem>>, vector<128x4xf32>,
    %c0_37 = arith.constant 0 : index
    %c1_38 = arith.constant 1 : index
    %c0_39 = arith.constant 0 : index
    %c0_40 = arith.constant 0 : index
    %19 = vector.load %arg10[%c0_37, %c1_38, %c0_39, %c0_40] : memref<2x10x10x4xf32, #tpu.memory_space<vmem>>, vector<2x8x8x4xf32>
    %20 = vector.shape_cast %19 : vector<2x8x8x4xf32> to vector<128x4xf32>
    %c0_41 = arith.constant 0 : index
    %c12 = arith.constant 12 : index
    %21 = vector.load %arg11[%c0_41, %c12] : memref<128x36xf32, #tpu.memory_space<vmem>>, vector<128x4xf32>
    tpu.vector_store %arg11[%c0_41, %c12], %20 {strides = array<i32>} : memref<128x36xf32, #tpu.memory_space<vmem>>, vector<128x4xf32>,
    %c0_42 = arith.constant 0 : index
    %c1_43 = arith.constant 1 : index
    %c1_44 = arith.constant 1 : index
    %c0_45 = arith.constant 0 : index
    %22 = vector.load %arg10[%c0_42, %c1_43, %c1_44, %c0_45] : memref<2x10x10x4xf32, #tpu.memory_space<vmem>>, vector<2x8x8x4xf32>
    %23 = vector.shape_cast %22 : vector<2x8x8x4xf32> to vector<128x4xf32>
    %c0_46 = arith.constant 0 : index
    %c16 = arith.constant 16 : index
    %24 = vector.load %arg11[%c0_46, %c16] : memref<128x36xf32, #tpu.memory_space<vmem>>, vector<128x4xf32>
    tpu.vector_store %arg11[%c0_46, %c16], %23 {strides = array<i32>} : memref<128x36xf32, #tpu.memory_space<vmem>>, vector<128x4xf32>,
    %c0_47 = arith.constant 0 : index
    %c1_48 = arith.constant 1 : index
    %c2_49 = arith.constant 2 : index
    %c0_50 = arith.constant 0 : index
    %25 = vector.load %arg10[%c0_47, %c1_48, %c2_49, %c0_50] : memref<2x10x10x4xf32, #tpu.memory_space<vmem>>, vector<2x8x8x4xf32>
    %26 = vector.shape_cast %25 : vector<2x8x8x4xf32> to vector<128x4xf32>
    %c0_51 = arith.constant 0 : index
    %c20 = arith.constant 20 : index
    %27 = vector.load %arg11[%c0_51, %c20] : memref<128x36xf32, #tpu.memory_space<vmem>>, vector<128x4xf32>
    tpu.vector_store %arg11[%c0_51, %c20], %26 {strides = array<i32>} : memref<128x36xf32, #tpu.memory_space<vmem>>, vector<128x4xf32>,
    %c0_52 = arith.constant 0 : index
    %c2_53 = arith.constant 2 : index
    %c0_54 = arith.constant 0 : index
    %c0_55 = arith.constant 0 : index
    %28 = vector.load %arg10[%c0_52, %c2_53, %c0_54, %c0_55] : memref<2x10x10x4xf32, #tpu.memory_space<vmem>>, vector<2x8x8x4xf32>
    %29 = vector.shape_cast %28 : vector<2x8x8x4xf32> to vector<128x4xf32>
    %c0_56 = arith.constant 0 : index
    %c24 = arith.constant 24 : index
    %30 = vector.load %arg11[%c0_56, %c24] : memref<128x36xf32, #tpu.memory_space<vmem>>, vector<128x4xf32>
    tpu.vector_store %arg11[%c0_56, %c24], %29 {strides = array<i32>} : memref<128x36xf32, #tpu.memory_space<vmem>>, vector<128x4xf32>,
    %c0_57 = arith.constant 0 : index
    %c2_58 = arith.constant 2 : index
    %c1_59 = arith.constant 1 : index
    %c0_60 = arith.constant 0 : index
    %31 = vector.load %arg10[%c0_57, %c2_58, %c1_59, %c0_60] : memref<2x10x10x4xf32, #tpu.memory_space<vmem>>, vector<2x8x8x4xf32>
    %32 = vector.shape_cast %31 : vector<2x8x8x4xf32> to vector<128x4xf32>
    %c0_61 = arith.constant 0 : index
    %c28 = arith.constant 28 : index
    %33 = vector.load %arg11[%c0_61, %c28] : memref<128x36xf32, #tpu.memory_space<vmem>>, vector<128x4xf32>
    tpu.vector_store %arg11[%c0_61, %c28], %32 {strides = array<i32>} : memref<128x36xf32, #tpu.memory_space<vmem>>, vector<128x4xf32>,
    %c0_62 = arith.constant 0 : index
    %c2_63 = arith.constant 2 : index
    %c2_64 = arith.constant 2 : index
    %c0_65 = arith.constant 0 : index
    %34 = vector.load %arg10[%c0_62, %c2_63, %c2_64, %c0_65] : memref<2x10x10x4xf32, #tpu.memory_space<vmem>>, vector<2x8x8x4xf32>
    %35 = vector.shape_cast %34 : vector<2x8x8x4xf32> to vector<128x4xf32>
    %c0_66 = arith.constant 0 : index
    %c32 = arith.constant 32 : index
    %36 = vector.load %arg11[%c0_66, %c32] : memref<128x36xf32, #tpu.memory_space<vmem>>, vector<128x4xf32>
    tpu.vector_store %arg11[%c0_66, %c32], %35 {strides = array<i32>} : memref<128x36xf32, #tpu.memory_space<vmem>>, vector<128x4xf32>,
    %c0_67 = arith.constant 0 : index
    %c0_68 = arith.constant 0 : index
    %37 = vector.load %arg11[%c0_67, %c0_68] : memref<128x36xf32, #tpu.memory_space<vmem>>, vector<128x36xf32>
    %c0_69 = arith.constant 0 : index
    %c0_70 = arith.constant 0 : index
    %38 = vector.load %arg1[%c0_69, %c0_70] : memref<36x8xf32, #tpu.memory_space<vmem>>, vector<36x8xf32>
    %cst_71 = arith.constant dense<0.000000e+00> : vector<128x8xf32>
    %39 = tpu.matmul %37, %38, %cst_71 {dimension_numbers = #tpu.dot_dimension_numbers<[1], [0], [0], [1], [0, 0, 1, 1], [], []>} : vector<128x36xf32>, vector<36x8xf32>, vector<128x8xf32> -> vector<128x8xf32>
    %c0_72 = arith.constant 0 : index
    %c0_73 = arith.constant 0 : index
    %40 = vector.load %arg2[%c0_72, %c0_73] : memref<1x8xf32, #tpu.memory_space<vmem>>, vector<1x8xf32>
    %41 = vector.broadcast %40 : vector<1x8xf32> to vector<128x8xf32>
    %42 = arith.addf %39, %41 : vector<128x8xf32>
    %cst_74 = arith.constant dense<0.000000e+00> : vector<8xf32>
    %43 = vector.multi_reduction <add>, %42, %cst_74 [0] : vector<128x8xf32> to vector<8xf32>
    %44 = vector.shape_cast %43 : vector<8xf32> to vector<1x8xf32>
    %cst_75 = arith.constant 1.280000e+02 : f32
    %45 = vector.broadcast %cst_75 : f32 to vector<1x8xf32>
    %46 = arith.divf %44, %45 : vector<1x8xf32>
    %47 = vector.broadcast %46 : vector<1x8xf32> to vector<128x8xf32>
    %48 = arith.subf %42, %47 : vector<128x8xf32>
    %49 = arith.mulf %48, %48 : vector<128x8xf32>
    %cst_76 = arith.constant dense<0.000000e+00> : vector<8xf32>
    %50 = vector.multi_reduction <add>, %49, %cst_76 [0] : vector<128x8xf32> to vector<8xf32>
    %51 = vector.shape_cast %50 : vector<8xf32> to vector<1x8xf32>
    %cst_77 = arith.constant 1.280000e+02 : f32
    %52 = vector.broadcast %cst_77 : f32 to vector<1x8xf32>
    %53 = arith.divf %51, %52 : vector<1x8xf32>
    %c0_78 = arith.constant 0 : index
    %c0_79 = arith.constant 0 : index
    %54 = vector.load %arg3[%c0_78, %c0_79] : memref<1x8xf32, #tpu.memory_space<vmem>>, vector<1x8xf32>
    %cst_80 = arith.constant 9.99999974E-6 : f32
    %55 = vector.broadcast %cst_80 : f32 to vector<1x8xf32>
    %56 = arith.addf %53, %55 : vector<1x8xf32>
    %57 = math.rsqrt %56 : vector<1x8xf32>
    %58 = arith.mulf %54, %57 : vector<1x8xf32>
    %59 = vector.broadcast %58 : vector<1x8xf32> to vector<128x8xf32>
    %60 = arith.mulf %48, %59 : vector<128x8xf32>
    %c0_81 = arith.constant 0 : index
    %c0_82 = arith.constant 0 : index
    %61 = vector.load %arg4[%c0_81, %c0_82] : memref<1x8xf32, #tpu.memory_space<vmem>>, vector<1x8xf32>
    %62 = vector.broadcast %61 : vector<1x8xf32> to vector<128x8xf32>
    %63 = arith.addf %60, %62 : vector<128x8xf32>
    %cst_83 = arith.constant 0.000000e+00 : f32
    %64 = vector.broadcast %cst_83 : f32 to vector<128x8xf32>
    %65 = arith.maximumf %63, %64 : vector<128x8xf32>
    %cst_84 = arith.constant 0.000000e+00 : f32
    %66 = vector.broadcast %cst_84 : f32 to vector<2x10x10x8xf32>
    %c0_85 = arith.constant 0 : index
    %c0_86 = arith.constant 0 : index
    %c0_87 = arith.constant 0 : index
    %c0_88 = arith.constant 0 : index
    %67 = vector.load %arg12[%c0_85, %c0_86, %c0_87, %c0_88] : memref<2x10x10x8xf32, #tpu.memory_space<vmem>>, vector<2x10x10x8xf32>
    tpu.vector_store %arg12[%c0_85, %c0_86, %c0_87, %c0_88], %66 {strides = array<i32>} : memref<2x10x10x8xf32, #tpu.memory_space<vmem>>, vector<2x10x10x8xf32>,
    %68 = vector.shape_cast %65 : vector<128x8xf32> to vector<2x8x8x8xf32>
    %c0_89 = arith.constant 0 : index
    %c1_90 = arith.constant 1 : index
    %c1_91 = arith.constant 1 : index
    %c0_92 = arith.constant 0 : index
    %69 = vector.load %arg12[%c0_89, %c1_90, %c1_91, %c0_92] : memref<2x10x10x8xf32, #tpu.memory_space<vmem>>, vector<2x8x8x8xf32>
    tpu.vector_store %arg12[%c0_89, %c1_90, %c1_91, %c0_92], %68 {strides = array<i32>} : memref<2x10x10x8xf32, #tpu.memory_space<vmem>>, vector<2x8x8x8xf32>,
    %c0_93 = arith.constant 0 : index
    %c0_94 = arith.constant 0 : index
    %c0_95 = arith.constant 0 : index
    %c0_96 = arith.constant 0 : index
    %70 = vector.load %arg12[%c0_93, %c0_94, %c0_95, %c0_96] : memref<2x10x10x8xf32, #tpu.memory_space<vmem>>, vector<2x8x8x8xf32>
    %71 = vector.shape_cast %70 : vector<2x8x8x8xf32> to vector<128x8xf32>
    %c0_97 = arith.constant 0 : index
    %c0_98 = arith.constant 0 : index
    %72 = vector.load %arg13[%c0_97, %c0_98] : memref<128x72xf32, #tpu.memory_space<vmem>>, vector<128x8xf32>
    tpu.vector_store %arg13[%c0_97, %c0_98], %71 {strides = array<i32>} : memref<128x72xf32, #tpu.memory_space<vmem>>, vector<128x8xf32>,
    %c0_99 = arith.constant 0 : index
    %c0_100 = arith.constant 0 : index
    %c1_101 = arith.constant 1 : index
    %c0_102 = arith.constant 0 : index
    %73 = vector.load %arg12[%c0_99, %c0_100, %c1_101, %c0_102] : memref<2x10x10x8xf32, #tpu.memory_space<vmem>>, vector<2x8x8x8xf32>
    %74 = vector.shape_cast %73 : vector<2x8x8x8xf32> to vector<128x8xf32>
    %c0_103 = arith.constant 0 : index
    %c8_104 = arith.constant 8 : index
    %75 = vector.load %arg13[%c0_103, %c8_104] : memref<128x72xf32, #tpu.memory_space<vmem>>, vector<128x8xf32>
    tpu.vector_store %arg13[%c0_103, %c8_104], %74 {strides = array<i32>} : memref<128x72xf32, #tpu.memory_space<vmem>>, vector<128x8xf32>,
    %c0_105 = arith.constant 0 : index
    %c0_106 = arith.constant 0 : index
    %c2_107 = arith.constant 2 : index
    %c0_108 = arith.constant 0 : index
    %76 = vector.load %arg12[%c0_105, %c0_106, %c2_107, %c0_108] : memref<2x10x10x8xf32, #tpu.memory_space<vmem>>, vector<2x8x8x8xf32>
    %77 = vector.shape_cast %76 : vector<2x8x8x8xf32> to vector<128x8xf32>
    %c0_109 = arith.constant 0 : index
    %c16_110 = arith.constant 16 : index
    %78 = vector.load %arg13[%c0_109, %c16_110] : memref<128x72xf32, #tpu.memory_space<vmem>>, vector<128x8xf32>
    tpu.vector_store %arg13[%c0_109, %c16_110], %77 {strides = array<i32>} : memref<128x72xf32, #tpu.memory_space<vmem>>, vector<128x8xf32>,
    %c0_111 = arith.constant 0 : index
    %c1_112 = arith.constant 1 : index
    %c0_113 = arith.constant 0 : index
    %c0_114 = arith.constant 0 : index
    %79 = vector.load %arg12[%c0_111, %c1_112, %c0_113, %c0_114] : memref<2x10x10x8xf32, #tpu.memory_space<vmem>>, vector<2x8x8x8xf32>
    %80 = vector.shape_cast %79 : vector<2x8x8x8xf32> to vector<128x8xf32>
    %c0_115 = arith.constant 0 : index
    %c24_116 = arith.constant 24 : index
    %81 = vector.load %arg13[%c0_115, %c24_116] : memref<128x72xf32, #tpu.memory_space<vmem>>, vector<128x8xf32>
    tpu.vector_store %arg13[%c0_115, %c24_116], %80 {strides = array<i32>} : memref<128x72xf32, #tpu.memory_space<vmem>>, vector<128x8xf32>,
    %c0_117 = arith.constant 0 : index
    %c1_118 = arith.constant 1 : index
    %c1_119 = arith.constant 1 : index
    %c0_120 = arith.constant 0 : index
    %82 = vector.load %arg12[%c0_117, %c1_118, %c1_119, %c0_120] : memref<2x10x10x8xf32, #tpu.memory_space<vmem>>, vector<2x8x8x8xf32>
    %83 = vector.shape_cast %82 : vector<2x8x8x8xf32> to vector<128x8xf32>
    %c0_121 = arith.constant 0 : index
    %c32_122 = arith.constant 32 : index
    %84 = vector.load %arg13[%c0_121, %c32_122] : memref<128x72xf32, #tpu.memory_space<vmem>>, vector<128x8xf32>
    tpu.vector_store %arg13[%c0_121, %c32_122], %83 {strides = array<i32>} : memref<128x72xf32, #tpu.memory_space<vmem>>, vector<128x8xf32>,
    %c0_123 = arith.constant 0 : index
    %c1_124 = arith.constant 1 : index
    %c2_125 = arith.constant 2 : index
    %c0_126 = arith.constant 0 : index
    %85 = vector.load %arg12[%c0_123, %c1_124, %c2_125, %c0_126] : memref<2x10x10x8xf32, #tpu.memory_space<vmem>>, vector<2x8x8x8xf32>
    %86 = vector.shape_cast %85 : vector<2x8x8x8xf32> to vector<128x8xf32>
    %c0_127 = arith.constant 0 : index
    %c40 = arith.constant 40 : index
    %87 = vector.load %arg13[%c0_127, %c40] : memref<128x72xf32, #tpu.memory_space<vmem>>, vector<128x8xf32>
    tpu.vector_store %arg13[%c0_127, %c40], %86 {strides = array<i32>} : memref<128x72xf32, #tpu.memory_space<vmem>>, vector<128x8xf32>,
    %c0_128 = arith.constant 0 : index
    %c2_129 = arith.constant 2 : index
    %c0_130 = arith.constant 0 : index
    %c0_131 = arith.constant 0 : index
    %88 = vector.load %arg12[%c0_128, %c2_129, %c0_130, %c0_131] : memref<2x10x10x8xf32, #tpu.memory_space<vmem>>, vector<2x8x8x8xf32>
    %89 = vector.shape_cast %88 : vector<2x8x8x8xf32> to vector<128x8xf32>
    %c0_132 = arith.constant 0 : index
    %c48 = arith.constant 48 : index
    %90 = vector.load %arg13[%c0_132, %c48] : memref<128x72xf32, #tpu.memory_space<vmem>>, vector<128x8xf32>
    tpu.vector_store %arg13[%c0_132, %c48], %89 {strides = array<i32>} : memref<128x72xf32, #tpu.memory_space<vmem>>, vector<128x8xf32>,
    %c0_133 = arith.constant 0 : index
    %c2_134 = arith.constant 2 : index
    %c1_135 = arith.constant 1 : index
    %c0_136 = arith.constant 0 : index
    %91 = vector.load %arg12[%c0_133, %c2_134, %c1_135, %c0_136] : memref<2x10x10x8xf32, #tpu.memory_space<vmem>>, vector<2x8x8x8xf32>
    %92 = vector.shape_cast %91 : vector<2x8x8x8xf32> to vector<128x8xf32>
    %c0_137 = arith.constant 0 : index
    %c56 = arith.constant 56 : index
    %93 = vector.load %arg13[%c0_137, %c56] : memref<128x72xf32, #tpu.memory_space<vmem>>, vector<128x8xf32>
    tpu.vector_store %arg13[%c0_137, %c56], %92 {strides = array<i32>} : memref<128x72xf32, #tpu.memory_space<vmem>>, vector<128x8xf32>,
    %c0_138 = arith.constant 0 : index
    %c2_139 = arith.constant 2 : index
    %c2_140 = arith.constant 2 : index
    %c0_141 = arith.constant 0 : index
    %94 = vector.load %arg12[%c0_138, %c2_139, %c2_140, %c0_141] : memref<2x10x10x8xf32, #tpu.memory_space<vmem>>, vector<2x8x8x8xf32>
    %95 = vector.shape_cast %94 : vector<2x8x8x8xf32> to vector<128x8xf32>
    %c0_142 = arith.constant 0 : index
    %c64 = arith.constant 64 : index
    %96 = vector.load %arg13[%c0_142, %c64] : memref<128x72xf32, #tpu.memory_space<vmem>>, vector<128x8xf32>
    tpu.vector_store %arg13[%c0_142, %c64], %95 {strides = array<i32>} : memref<128x72xf32, #tpu.memory_space<vmem>>, vector<128x8xf32>,
    %c0_143 = arith.constant 0 : index
    %c0_144 = arith.constant 0 : index
    %97 = vector.load %arg13[%c0_143, %c0_144] : memref<128x72xf32, #tpu.memory_space<vmem>>, vector<128x72xf32>
    %c0_145 = arith.constant 0 : index
    %c0_146 = arith.constant 0 : index
    %98 = vector.load %arg5[%c0_145, %c0_146] : memref<72x8xf32, #tpu.memory_space<vmem>>, vector<72x8xf32>
    %cst_147 = arith.constant dense<0.000000e+00> : vector<128x8xf32>
    %99 = tpu.matmul %97, %98, %cst_147 {dimension_numbers = #tpu.dot_dimension_numbers<[1], [0], [0], [1], [0, 0, 1, 1], [], []>} : vector<128x72xf32>, vector<72x8xf32>, vector<128x8xf32> -> vector<128x8xf32>
    %c0_148 = arith.constant 0 : index
    %c0_149 = arith.constant 0 : index
    %100 = vector.load %arg6[%c0_148, %c0_149] : memref<1x8xf32, #tpu.memory_space<vmem>>, vector<1x8xf32>
    %101 = vector.broadcast %100 : vector<1x8xf32> to vector<128x8xf32>
    %102 = arith.addf %99, %101 : vector<128x8xf32>
    %cst_150 = arith.constant dense<0.000000e+00> : vector<8xf32>
    %103 = vector.multi_reduction <add>, %102, %cst_150 [0] : vector<128x8xf32> to vector<8xf32>
    %104 = vector.shape_cast %103 : vector<8xf32> to vector<1x8xf32>
    %cst_151 = arith.constant 1.280000e+02 : f32
    %105 = vector.broadcast %cst_151 : f32 to vector<1x8xf32>
    %106 = arith.divf %104, %105 : vector<1x8xf32>
    %107 = vector.broadcast %106 : vector<1x8xf32> to vector<128x8xf32>
    %108 = arith.subf %102, %107 : vector<128x8xf32>
    %109 = arith.mulf %108, %108 : vector<128x8xf32>
    %cst_152 = arith.constant dense<0.000000e+00> : vector<8xf32>
    %110 = vector.multi_reduction <add>, %109, %cst_152 [0] : vector<128x8xf32> to vector<8xf32>
    %111 = vector.shape_cast %110 : vector<8xf32> to vector<1x8xf32>
    %cst_153 = arith.constant 1.280000e+02 : f32
    %112 = vector.broadcast %cst_153 : f32 to vector<1x8xf32>
    %113 = arith.divf %111, %112 : vector<1x8xf32>
    %c0_154 = arith.constant 0 : index
    %c0_155 = arith.constant 0 : index
    %114 = vector.load %arg7[%c0_154, %c0_155] : memref<1x8xf32, #tpu.memory_space<vmem>>, vector<1x8xf32>
    %cst_156 = arith.constant 9.99999974E-6 : f32
    %115 = vector.broadcast %cst_156 : f32 to vector<1x8xf32>
    %116 = arith.addf %113, %115 : vector<1x8xf32>
    %117 = math.rsqrt %116 : vector<1x8xf32>
    %118 = arith.mulf %114, %117 : vector<1x8xf32>
    %119 = vector.broadcast %118 : vector<1x8xf32> to vector<128x8xf32>
    %120 = arith.mulf %108, %119 : vector<128x8xf32>
    %c0_157 = arith.constant 0 : index
    %c0_158 = arith.constant 0 : index
    %121 = vector.load %arg8[%c0_157, %c0_158] : memref<1x8xf32, #tpu.memory_space<vmem>>, vector<1x8xf32>
    %122 = vector.broadcast %121 : vector<1x8xf32> to vector<128x8xf32>
    %123 = arith.addf %120, %122 : vector<128x8xf32>
    %cst_159 = arith.constant 0.000000e+00 : f32
    %124 = vector.broadcast %cst_159 : f32 to vector<128x8xf32>
    %125 = arith.maximumf %123, %124 : vector<128x8xf32>
    %126 = vector.shape_cast %125 : vector<128x8xf32> to vector<2x8x8x8xf32>
    %c0_160 = arith.constant 0 : index
    %c0_161 = arith.constant 0 : index
    %c0_162 = arith.constant 0 : index
    %c0_163 = arith.constant 0 : index
    %127 = vector.load %arg9[%c0_160, %c0_161, %c0_162, %c0_163] : memref<2x8x8x8xf32, #tpu.memory_space<vmem>>, vector<2x8x8x8xf32>
    tpu.vector_store %arg9[%c0_160, %c0_161, %c0_162, %c0_163], %126 {strides = array<i32>} : memref<2x8x8x8xf32, #tpu.memory_space<vmem>>, vector<2x8x8x8xf32>,
    return
  }
}

</mosaic_0001>

<bundles_post_ra>
// kernel: down_block.1
= control target key start
LH: loop header
LB: loop body
LE: loop exit
PB: predicated region body
PF: predicated region fallthrough
CT: control target
= control target key end

     0   :  { %vm207_vm0 = vcmask 31744   ;;  %vm209_vm1 = vcmask 25600   ;;  %v3050_v0 = vmov 0.0   ;;  %s3051_s26 = smov 8   ;;  %s3052_s27 = smov 4   ;;  %vm1152_vm2 = vcmask 1043456   ;;  %s4604_s0 = inlined_call_operand.vmem [shape: f32[2,16,16,4], index: 0, kind: input, shape index: {}]   ;;  %s4605_s1 = inlined_call_operand.vmem [shape: f32[36,8], index: 1, kind: input, shape index: {}]   ;;  %s4606_s2 = inlined_call_operand.vmem [shape: f32[1,8], index: 2, kind: input, shape index: {}]   ;;  %s4607_s3 = inlined_call_operand.vmem [shape: f32[1,8], index: 3, kind: input, shape index: {}]   ;;  %s4608_s4 = inlined_call_operand.vmem [shape: f32[1,8], index: 4, kind: input, shape index: {}]   ;;  %s4609_s5 = inlined_call_operand.vmem [shape: f32[72,8], index: 5, kind: input, shape index: {}]   ;;  %s4610_s6 = inlined_call_operand.vmem [shape: f32[1,8], index: 6, kind: input, shape index: {}]   ;;  %s4611_s7 = inlined_call_operand.vmem [shape: f32[1,8], index: 7, kind: input, shape index: {}]   ;;  %s4612_s8 = inlined_call_operand.vmem [shape: f32[1,8], index: 8, kind: input, shape index: {}]   ;;  %s4613_s9 = inlined_call_operand.vmem [shape: f32[2,8,8,8], index: 9, kind: output, shape index: {}]  }
   0x1   :  { %208 = vst.msk [vmem:[#allocation2] sm:$0xff] %vm207_vm0, %v3050_v0  ;;  %211 = vst.msk [vmem:[#allocation2 + $0x10] sm:$0xff] %vm207_vm0, %v3050_v0  ;;  %v32_v1 = vld [vmem:[%s4604_s0] ss:$2 sm:$0xff]  ;;  %v2808_v2 = vld [vmem:[%s4604_s0 + $0x1] ss:$2 sm:$0xff] }
   0x2   :  { %210 = vst.msk [vmem:[#allocation2 + $0x8] sm:$0x3] %vm209_vm1, %v3050_v0  ;;  %212 = vst.msk [vmem:[#allocation2 + $0x18] sm:$0x3] %vm209_vm1, %v3050_v0  ;;  %v2824_v3 = vld [vmem:[%s4604_s0 + $0x10] ss:$2 sm:$0xff]  ;;  %v159_v5 = vmax.f32 %v32_v1, %v2808_v2 }
   0x3   :  { %213 = vst.msk [vmem:[#allocation2 + $0x20] sm:$0xff] %vm207_vm0, %v3050_v0  ;;  %215 = vst.msk [vmem:[#allocation2 + $0x30] sm:$0xff] %vm207_vm0, %v3050_v0  ;;  %v2840_v4 = vld [vmem:[%s4604_s0 + $0x11] ss:$2 sm:$0xff]  ;;  %v2793_v6 = vld [vmem:[%s4604_s0 + $0x20] ss:$2 sm:$0xff] }
   0x4   :  { %214 = vst.msk [vmem:[#allocation2 + $0x28] sm:$0x3] %vm209_vm1, %v3050_v0  ;;  %216 = vst.msk [vmem:[#allocation2 + $0x38] sm:$0x3] %vm209_vm1, %v3050_v0  ;;  %v2809_v7 = vld [vmem:[%s4604_s0 + $0x21] ss:$2 sm:$0xff]  ;;  %v175_v8 = vmax.f32 %v2824_v3, %v2840_v4 }
   0x5   :  { %217 = vst.msk [vmem:[#allocation2 + $0x40] sm:$0xff] %vm207_vm0, %v3050_v0  ;;  %219 = vst.msk [vmem:[#allocation2 + $0x50] sm:$0xff] %vm207_vm0, %v3050_v0  ;;  %v2825_v9 = vld [vmem:[%s4604_s0 + $0x30] ss:$2 sm:$0xff]  ;;  %v2841_v10 = vld [vmem:[%s4604_s0 + $0x31] ss:$2 sm:$0xff]  ;;  %v160_v11 = vmax.f32 %v2793_v6, %v2809_v7 }
   0x6   :  { %218 = vst.msk [vmem:[#allocation2 + $0x48] sm:$0x3] %vm209_vm1, %v3050_v0  ;;  %220 = vst.msk [vmem:[#allocation2 + $0x58] sm:$0x3] %vm209_vm1, %v3050_v0  ;;  %v176_v12 = vmax.f32 %v2825_v9, %v2841_v10  ;;  %v2794_v13 = vld [vmem:[%s4604_s0 + $0x40] ss:$2 sm:$0xff]  ;;  %v191_v15 = vmax.f32 %v159_v5, %v175_v8 }
   0x7   :  { %221 = vst.msk [vmem:[#allocation2 + $0x60] sm:$0xff] %vm207_vm0, %v3050_v0  ;;  %223 = vst.msk [vmem:[#allocation2 + $0x70] sm:$0xff] %vm207_vm0, %v3050_v0  ;;  %v2810_v14 = vld [vmem:[%s4604_s0 + $0x41] ss:$2 sm:$0xff]  ;;  %v2826_v16 = vld [vmem:[%s4604_s0 + $0x50] ss:$2 sm:$0xff] }
   0x8   :  { %222 = vst.msk [vmem:[#allocation2 + $0x68] sm:$0x3] %vm209_vm1, %v3050_v0  ;;  %224 = vst.msk [vmem:[#allocation2 + $0x78] sm:$0x3] %vm209_vm1, %v3050_v0  ;;  %v2842_v17 = vld [vmem:[%s4604_s0 + $0x51] ss:$2 sm:$0xff]  ;;  %v161_v18 = vmax.f32 %v2794_v13, %v2810_v14  ;;  %v192_v19 = vmax.f32 %v160_v11, %v176_v12 }
   0x9   :  { %225 = vst.msk [vmem:[#allocation2 + $0x80] sm:$0xff] %vm207_vm0, %v3050_v0  ;;  %227 = vst.msk [vmem:[#allocation2 + $0x90] sm:$0xff] %vm207_vm0, %v3050_v0  ;;  %v177_v20 = vmax.f32 %v2826_v16, %v2842_v17  ;;  %v2795_v21 = vld [vmem:[%s4604_s0 + $0x60] ss:$2 sm:$0xff]  ;;  %v2811_v22 = vld [vmem:[%s4604_s0 + $0x61] ss:$2 sm:$0xff] }
   0xa   :  { %226 = vst.msk [vmem:[#allocation2 + $0x88] sm:$0x3] %vm209_vm1, %v3050_v0  ;;  %228 = vst.msk [vmem:[#allocation2 + $0x98] sm:$0x3] %vm209_vm1, %v3050_v0  ;;  %v2827_v23 = vld [vmem:[%s4604_s0 + $0x70] ss:$2 sm:$0xff]  ;;  %v162_v25 = vmax.f32 %v2795_v21, %v2811_v22 }
   0xb   :  { %229 = vst.msk [vmem:[#allocation2 + $0xa0] sm:$0xff] %vm207_vm0, %v3050_v0  ;;  %231 = vst.msk [vmem:[#allocation2 + $0xb0] sm:$0xff] %vm207_vm0, %v3050_v0  ;;  %v2843_v24 = vld [vmem:[%s4604_s0 + $0x71] ss:$2 sm:$0xff]  ;;  %v2796_v26 = vld [vmem:[%s4604_s0 + $0x80] ss:$2 sm:$0xff]  ;;  %v193_v30 = vmax.f32 %v161_v18, %v177_v20 }
   0xc   :  { %230 = vst.msk [vmem:[#allocation2 + $0xa8] sm:$0x3] %vm209_vm1, %v3050_v0  ;;  %232 = vst.msk [vmem:[#allocation2 + $0xb8] sm:$0x3] %vm209_vm1, %v3050_v0  ;;  %v2812_v27 = vld [vmem:[%s4604_s0 + $0x81] ss:$2 sm:$0xff]  ;;  %v178_v31 = vmax.f32 %v2827_v23, %v2843_v24 }
   0xd   :  { %233 = vst.msk [vmem:[#allocation2 + $0xc0] sm:$0xff] %vm207_vm0, %v3050_v0  ;;  %235 = vst.msk [vmem:[#allocation2 + $0xd0] sm:$0xff] %vm207_vm0, %v3050_v0  ;;  %v395_v28 = vld [vmem:[#allocation2 + $0x2] sm:$0xff]  ;;  %v2828_v32 = vld [vmem:[%s4604_s0 + $0x90] ss:$2 sm:$0xff]  ;;  %v163_v33 = vmax.f32 %v2796_v26, %v2812_v27  ;;  %s3053_s22 = smov 12  }
   0xe   :  { %234 = vst.msk [vmem:[#allocation2 + $0xc8] sm:$0x3] %vm209_vm1, %v3050_v0  ;;  %236 = vst.msk [vmem:[#allocation2 + $0xd8] sm:$0x3] %vm209_vm1, %v3050_v0  ;;  %v298_v29 = vld [vmem:[#allocation2 + $0x1] sm:$0xff]  ;;  %427 = vrot.lane.b32.xlu1 %v395_v28, %s3051_s26  ;;  %v194_v36 = vmax.f32 %v162_v25, %v178_v31  ;;  %s3054_s10 = smov 16  }
   0xf   :  { %237 = vst.msk [vmem:[#allocation2 + $0xe0] sm:$0xff] %vm207_vm0, %v3050_v0  ;;  %239 = vst.msk [vmem:[#allocation2 + $0xf0] sm:$0xff] %vm207_vm0, %v3050_v0  ;;  %330 = vrot.lane.b32.xlu0 %v298_v29, %s3052_s27  ;;  %v2844_v34 = vld [vmem:[%s4604_s0 + $0x91] ss:$2 sm:$0xff]  ;;  %v2797_v35 = vld [vmem:[%s4604_s0 + $0xa0] ss:$2 sm:$0xff] }
  0x10   :  { %238 = vst.msk [vmem:[#allocation2 + $0xe8] sm:$0x3] %vm209_vm1, %v3050_v0  ;;  %240 = vst.msk [vmem:[#allocation2 + $0xf8] sm:$0x3] %vm209_vm1, %v3050_v0  ;;  %v179_v37 = vmax.f32 %v2828_v32, %v2844_v34  ;;  %v2813_v38 = vld [vmem:[%s4604_s0 + $0xa1] ss:$2 sm:$0xff] }
  0x11   :  { %241 = vst.msk [vmem:[#allocation2 + $0x100] sm:$0xff] %vm207_vm0, %v3050_v0  ;;  %243 = vst.msk [vmem:[#allocation2 + $0x110] sm:$0xff] %vm207_vm0, %v3050_v0  ;;  %v2829_v39 = vld [vmem:[%s4604_s0 + $0xb0] ss:$2 sm:$0xff]  ;;  %v2845_v40 = vld [vmem:[%s4604_s0 + $0xb1] ss:$2 sm:$0xff]  ;;  %v164_v41 = vmax.f32 %v2797_v35, %v2813_v38 }
  0x12   :  { %242 = vst.msk [vmem:[#allocation2 + $0x108] sm:$0x3] %vm209_vm1, %v3050_v0  ;;  %244 = vst.msk [vmem:[#allocation2 + $0x118] sm:$0x3] %vm209_vm1, %v3050_v0  ;;  %v180_v42 = vmax.f32 %v2829_v39, %v2845_v40  ;;  %v2798_v43 = vld [vmem:[%s4604_s0 + $0xc0] ss:$2 sm:$0xff]  ;;  %v195_v46 = vmax.f32 %v163_v33, %v179_v37 }
  0x13   :  { %245 = vst.msk [vmem:[#allocation2 + $0x120] sm:$0xff] %vm207_vm0, %v3050_v0  ;;  %247 = vst.msk [vmem:[#allocation2 + $0x130] sm:$0xff] %vm207_vm0, %v3050_v0  ;;  %v2814_v44 = vld [vmem:[%s4604_s0 + $0xc1] ss:$2 sm:$0xff]  ;;  %v2830_v45 = vld [vmem:[%s4604_s0 + $0xd0] ss:$2 sm:$0xff] }
  0x14   :  { %246 = vst.msk [vmem:[#allocation2 + $0x128] sm:$0x3] %vm209_vm1, %v3050_v0  ;;  %248 = vst.msk [vmem:[#allocation2 + $0x138] sm:$0x3] %vm209_vm1, %v3050_v0  ;;  %v2846_v47 = vld [vmem:[%s4604_s0 + $0xd1] ss:$2 sm:$0xff]  ;;  %v165_v48 = vmax.f32 %v2798_v43, %v2814_v44  ;;  %v196_v51 = vmax.f32 %v164_v41, %v180_v42 }
  0x15   :  { %250 = vst.msk [vmem:[#allocation2 + $0x11] sm:$0xff] %vm207_vm0, %v191_v15  ;;  %251 = vst.msk [vmem:[#allocation2 + $0x21] sm:$0xff] %vm207_vm0, %v192_v19  ;;  %v2799_v49 = vld [vmem:[%s4604_s0 + $0xe0] ss:$2 sm:$0xff]  ;;  %v2815_v50 = vld [vmem:[%s4604_s0 + $0xe1] ss:$2 sm:$0xff]  ;;  %v181_v52 = vmax.f32 %v2830_v45, %v2846_v47 }
  0x16   :  { %252 = vst.msk [vmem:[#allocation2 + $0x31] sm:$0xff] %vm207_vm0, %v193_v30  ;;  %253 = vst.msk [vmem:[#allocation2 + $0x41] sm:$0xff] %vm207_vm0, %v194_v36  ;;  %v2831_v53 = vld [vmem:[%s4604_s0 + $0xf0] ss:$2 sm:$0xff]  ;;  %v2847_v54 = vld [vmem:[%s4604_s0 + $0xf1] ss:$2 sm:$0xff]  ;;  %v166_v55 = vmax.f32 %v2799_v49, %v2815_v50 }
  0x17   :  { %v266_v56 = vld [vmem:[#allocation2] sm:$0xff]  ;;  %254 = vst.msk [vmem:[#allocation2 + $0x51] sm:$0xff] %vm207_vm0, %v195_v46  ;;  %v182_v60 = vmax.f32 %v2831_v53, %v2847_v54  ;;  %255 = vst.msk [vmem:[#allocation2 + $0x61] sm:$0xff] %vm207_vm0, %v196_v51  ;;  %v197_v62 = vmax.f32 %v165_v48, %v181_v52  ;;  %v2832_v5 = vld [vmem:[%s4604_s0 + $0x110] ss:$2 sm:$0xff]  ;;  %s3055_s19 = smov 20  }
  0x18   :  { %282 = vst.msk [vmem:[#allocation3] sm:$0xff] %vm207_vm0, %v266_v56  ;;  %v2800_v1 = vld [vmem:[%s4604_s0 + $0x100] ss:$2 sm:$0xff]  ;;  %v2816_v2 = vld [vmem:[%s4604_s0 + $0x101] ss:$2 sm:$0xff]  ;;  %s3056_s11 = smov 24  }
  0x19   :  { %v198_v63 = vmax.f32 %v166_v55, %v182_v60  ;;  %256 = vst.msk [vmem:[#allocation2 + $0x71] sm:$0xff] %vm207_vm0, %v197_v62  ;;  %v167_v4 = vmax.f32 %v2800_v1, %v2816_v2  ;;  %v2848_v6 = vld [vmem:[%s4604_s0 + $0x111] ss:$2 sm:$0xff]  ;;  %v2801_v10 = vld [vmem:[%s4604_s0 + $0x120] ss:$2 sm:$0xff]  ;;  %s3057_s14 = smov 28  }
  0x1a   :  { %v183_v8 = vmax.f32 %v2832_v5, %v2848_v6  ;;  %v2817_v11 = vld [vmem:[%s4604_s0 + $0x121] ss:$2 sm:$0xff]  ;;  %v2833_v14 = vld [vmem:[%s4604_s0 + $0x130] ss:$2 sm:$0xff]  ;;  %v2849_v17 = vld [vmem:[%s4604_s0 + $0x131] ss:$2 sm:$0xff] }
  0x1b   :  { %257 = vst.msk [vmem:[#allocation2 + $0x81] sm:$0xff] %vm207_vm0, %v198_v63  ;;  %v168_v16 = vmax.f32 %v2801_v10, %v2817_v11  ;;  %v184_v19 = vmax.f32 %v2833_v14, %v2849_v17  ;;  %v2802_v20 = vld [vmem:[%s4604_s0 + $0x140] ss:$2 sm:$0xff]  ;;  %v2818_v22 = vld [vmem:[%s4604_s0 + $0x141] ss:$2 sm:$0xff]  ;;  %v1094_v42 = vld [vmem:[%s4605_s1 + $0x18] sm:$0xff] }
  0x1c   :  { %v396_v57 = vld [vmem:[#allocation2 + $0x12] sm:$0xff]  ;;  %v493_v61 = vld [vmem:[#allocation2 + $0x20] sm:$0xff]  ;;  %v199_v13 = vmax.f32 %v167_v4, %v183_v8  ;;  %v169_v25 = vmax.f32 %v2802_v20, %v2818_v22  ;;  %v1092_v45 = vld [vmem:[%s4605_s1 + $0x8] sm:$0xff]  ;;  %s3058_s15 = smov 32   ;;  %vm378_vm3 = vcmask 64544   ;;  %vm475_vm4 = vcmask 97344  }
  0x1d   :  { %v299_v58 = vld [vmem:[#allocation2 + $0x11] sm:$0xff]  ;;  %429 = vrot.lane.b32.xlu1 %v396_v57, %s3051_s26  ;;  %284 = vst.msk [vmem:[#allocation3 + $0x10] sm:$0xff] %vm207_vm0, %v493_v61  ;;  %v3322_v7 = vld [vmem:[#allocation2 + $0x40] sm:$0xff]  ;;  %v200_v21 = vmax.f32 %v168_v16, %v184_v19  ;;  %vm572_vm5 = vcmask 130144   ;;  %vm669_vm6 = vcmask 162944   ;;  %vm766_vm7 = vcmask 195744  }
  0x1e   :  { %v492_v59 = vld [vmem:[#allocation2 + $0x10] sm:$0xff]  ;;  %332 = vrot.lane.b32.xlu0 %v299_v58, %s3052_s27  ;;  %v300_v9 = vld [vmem:[#allocation2 + $0x21] sm:$0xff]  ;;  %286 = vst.msk [vmem:[#allocation3 + $0x20] sm:$0xff] %vm207_vm0, %v3322_v7  ;;  %258 = vst.msk [vmem:[#allocation2 + $0xb1] sm:$0xff] %vm207_vm0, %v199_v13  ;;  %vm864_vm8 = vcmask 228544   ;;  %vm961_vm9 = vcmask 261344  }
  0x1f   :  { %283 = vst.msk [vmem:[#allocation3 + $0x8] sm:$0xff] %vm207_vm0, %v492_v59  ;;  %v3308_v3 = vld [vmem:[#allocation2 + $0x30] sm:$0xff]  ;;  %v3337_v15 = vld [vmem:[#allocation2 + $0x60] sm:$0xff]  ;;  %259 = vst.msk [vmem:[#allocation2 + $0xc1] sm:$0xff] %vm207_vm0, %v200_v21  ;;  %vm1058_vm10 = vcmask 294144   ;;  %vm1103_vm11 = vcmask 293888  }
  0x20   :  { %285 = vst.msk [vmem:[#allocation3 + $0x18] sm:$0xff] %vm207_vm0, %v3308_v3  ;;  %v3332_v12 = vld [vmem:[#allocation2 + $0x50] sm:$0xff]  ;;  %288 = vst.msk [vmem:[#allocation3 + $0x30] sm:$0xff] %vm207_vm0, %v3337_v15  ;;  %v397_v26 = vld [vmem:[#allocation2 + $0x22] sm:$0xff]  ;;  %vm1301_vm12 = vcmask 64512   ;;  %vm1477_vm13 = vcmask 58368  }
  0x21   :  { %526 = vrot.lane.b32.xlu1 %v493_v61, %s3053_s22  ;;  %287 = vst.msk [vmem:[#allocation3 + $0x28] sm:$0xff] %vm207_vm0, %v3332_v12  ;;  %v3349_v18 = vld [vmem:[#allocation2 + $0x70] sm:$0xff]  ;;  %v2803_v31 = vld [vmem:[%s4604_s0 + $0x160] ss:$2 sm:$0xff]  ;;  %v2819_v32 = vld [vmem:[%s4604_s0 + $0x161] ss:$2 sm:$0xff] }
  0x22   :  { %524 = vrot.lane.b32.xlu0 %v492_v59, %s3053_s22  ;;  %289 = vst.msk [vmem:[#allocation3 + $0x38] sm:$0xff] %vm207_vm0, %v3349_v18  ;;  %v2834_v23 = vld [vmem:[%s4604_s0 + $0x150] ss:$2 sm:$0xff]  ;;  %v2850_v24 = vld [vmem:[%s4604_s0 + $0x151] ss:$2 sm:$0xff]  ;;  %v170_v35 = vmax.f32 %v2803_v31, %v2819_v32  ;;  %v1091_v49 = vld [vmem:[%s4605_s1] sm:$0xff] }
  0x23   :  { %v301_v27 = vld [vmem:[#allocation2 + $0x31] sm:$0xff]  ;;  %v185_v28 = vmax.f32 %v2834_v23, %v2850_v24  ;;  %v1095_v41 = vld [vmem:[%s4605_s1 + $0x20] sm:$0xf]  ;;  %1476 = vst.msk [vmem:[#allocation4] sm:$0xff] %vm1301_vm12, %v3050_v0  ;;  %1479 = vst.msk [vmem:[#allocation4 + $0x10] sm:$0xff] %vm1301_vm12, %v3050_v0  ;;  %vm1646_vm14 = vcmask 130112  }
  0x24   :  { %v2835_v33 = vld [vmem:[%s4604_s0 + $0x170] ss:$2 sm:$0xff]  ;;  %v2851_v37 = vld [vmem:[%s4604_s0 + $0x171] ss:$2 sm:$0xff]  ;;  %2939 = vmatprep.subr.msk.mxu0 %vm1152_vm2, %v1095_v41  ;;  %v2804_v46 = vld [vmem:[%s4604_s0 + $0x180] ss:$2 sm:$0xff] }
  0x25   :  { %334 = vrot.lane.b32.xlu1 %v300_v9, %s3052_s27  ;;  %v3368_v29 = vld [vmem:[#allocation2 + $0xb0] sm:$0xff]  ;;  %v201_v30 = vmax.f32 %v169_v25, %v185_v28  ;;  %v186_v38 = vmax.f32 %v2835_v33, %v2851_v37  ;;  %2940 = vmatpush3.msk.msra.mxu0 %vm1152_vm2, %v1095_v41  ;;  %v2820_v47 = vld [vmem:[%s4604_s0 + $0x181] ss:$2 sm:$0xff]  ;;  %v2806_v4 = vld [vmem:[%s4604_s0 + $0x1c0] ss:$2 sm:$0xff]  ;;  %1481 = vst.msk [vmem:[#allocation4 + $0x20] sm:$0xff] %vm1301_vm12, %v3050_v0 }
  0x26   :  { %621 = vrot.lane.b32.xlu0 %v299_v58, %s3054_s10  ;;  %291 = vst.msk [vmem:[#allocation3 + $0x48] sm:$0xff] %vm207_vm0, %v3368_v29  ;;  %v3386_v34 = vld [vmem:[#allocation2 + $0xc0] sm:$0xff]  ;;  %v398_v36 = vld [vmem:[#allocation2 + $0x32] sm:$0xff]  ;;  %2941 = vmatprep.subr.mxu0 %v1094_v42  ;;  %v171_v51 = vmax.f32 %v2804_v46, %v2820_v47  ;;  %vm1743_vm15 = vcmask 195712   ;;  %vm1937_vm1 = vcmask 326912   ;;  %vm2034_vm2 = vcmask 392512  }
  0x27   :  { %260 = vst.msk [vmem:[#allocation2 + $0xd1] sm:$0xff] %vm207_vm0, %v201_v30  ;;  %292 = vst.msk [vmem:[#allocation3 + $0x50] sm:$0xff] %vm207_vm0, %v3386_v34  ;;  %v202_v40 = vmax.f32 %v170_v35, %v186_v38  ;;  %v1093_v43 = vld [vmem:[%s4605_s1 + $0x10] sm:$0xff]  ;;  %2942 = vmatpush3.msra.mxu0 %v1094_v42  ;;  %v592_v52 = vld [vmem:[#allocation2 + $0x41] sm:$0xff] }
  0x28   :  { %2943 = vmatprep.subr.mxu0 %v1093_v43  ;;  %v2836_v48 = vld [vmem:[%s4604_s0 + $0x190] ss:$2 sm:$0xff]  ;;  %v2852_v50 = vld [vmem:[%s4604_s0 + $0x191] ss:$2 sm:$0xff]  ;;  %v399_v55 = vld [vmem:[#allocation2 + $0x42] sm:$0xff]  ;;  %1483 = vst.msk [vmem:[#allocation4 + $0x30] sm:$0xff] %vm1301_vm12, %v3050_v0 }
  0x29   :  { %718 = vrot.lane.b32.xlu1 %v396_v57, %s3055_s19  ;;  %261 = vst.msk [vmem:[#allocation2 + $0xe1] sm:$0xff] %vm207_vm0, %v202_v40  ;;  %2944 = vmatpush3.msra.mxu0 %v1093_v43  ;;  %v187_v53 = vmax.f32 %v2836_v48, %v2852_v50  ;;  %v303_v56 = vld [vmem:[#allocation2 + $0x51] sm:$0xff]  ;;  %v2805_v57 = vld [vmem:[%s4604_s0 + $0x1a0] ss:$2 sm:$0xff]  ;;  %v2821_v58 = vld [vmem:[%s4604_s0 + $0x1a1] ss:$2 sm:$0xff] }
  0x2a   :  { %623 = vrot.lane.b32.xlu0 %v300_v9, %s3054_s10  ;;  %2945 = vmatprep.subr.mxu0 %v1092_v45  ;;  %v2837_v59 = vld [vmem:[%s4604_s0 + $0x1b0] ss:$2 sm:$0xff]  ;;  %v2853_v60 = vld [vmem:[%s4604_s0 + $0x1b1] ss:$2 sm:$0xff]  ;;  %v2822_v5 = vld [vmem:[%s4604_s0 + $0x1c1] ss:$2 sm:$0xff] }
  0x2b   :  { %2946 = vmatpush3.msra.mxu0 %v1092_v45  ;;  %v203_v54 = vmax.f32 %v171_v51, %v187_v53  ;;  %v400_v62 = vld [vmem:[#allocation2 + $0x52] sm:$0xff]  ;;  %v188_v63 = vmax.f32 %v2837_v59, %v2853_v60  ;;  %v173_v8 = vmax.f32 %v2806_v4, %v2822_v5  ;;  %v2807_v14 = vld [vmem:[%s4604_s0 + $0x1e0] ss:$2 sm:$0xff]  ;;  %v2823_v16 = vld [vmem:[%s4604_s0 + $0x1e1] ss:$2 sm:$0xff]  ;;  %1485 = vst.msk [vmem:[#allocation4 + $0x40] sm:$0xff] %vm1301_vm12, %v3050_v0 }
  0x2c   :  { %2947 = vmatprep.subr.mxu0 %v1091_v49  ;;  %v2838_v6 = vld [vmem:[%s4604_s0 + $0x1d0] ss:$2 sm:$0xff]  ;;  %v2855_v19 = vld [vmem:[%s4604_s0 + $0x1f1] ss:$2 sm:$0xff]  ;;  %v174_v20 = vmax.f32 %v2807_v14, %v2823_v16  ;;  %v274_v25 = vld [vmem:[#allocation2 + $0xa0] sm:$0xff]  ;;  %1487 = vst.msk [vmem:[#allocation4 + $0x50] sm:$0xff] %vm1301_vm12, %v3050_v0 }
  0x2d   :  { %431 = vrot.lane.b32.xlu1 %v397_v26, %s3051_s26  ;;  %2948 = vmatpush3.msra.mxu0 %v1091_v49  ;;  %262 = vst.msk [vmem:[#allocation2 + $0xf1] sm:$0xff] %vm207_vm0, %v203_v54  ;;  %v305_v13 = vld [vmem:[#allocation2 + $0x71] sm:$0xff]  ;;  %290 = vst.msk [vmem:[#allocation3 + $0x40] sm:$0xff] %vm207_vm0, %v274_v25  ;;  %v403_v30 = vld [vmem:[#allocation2 + $0xa2] sm:$0xff] }
  0x2e   :  { %336 = vrot.lane.b32.xlu0 %v301_v27, %s3052_s27  ;;  %v3396_v39 = vld [vmem:[#allocation2 + $0xd0] sm:$0xff]  ;;  %v693_v32 = vld [vmem:[#allocation2 + $0x82] sm:$0xff]  ;;  %1489 = vst.msk [vmem:[#allocation4 + $0x60] sm:$0xff] %vm1301_vm12, %v3050_v0  ;;  %1491 = vst.msk [vmem:[#allocation4 + $0x70] sm:$0xff] %vm1301_vm12, %v3050_v0 }
  0x2f   :  { %293 = vst.msk [vmem:[#allocation3 + $0x58] sm:$0xff] %vm207_vm0, %v3396_v39  ;;  %v2839_v17 = vld [vmem:[%s4604_s0 + $0x1f0] ss:$2 sm:$0xff]  ;;  %v598_v48 = vld [vmem:[#allocation2 + $0xc1] sm:$0xff] }
  0x30   :  { %v3416_v44 = vld [vmem:[#allocation2 + $0xe0] sm:$0xff]  ;;  %v402_v21 = vld [vmem:[#allocation2 + $0x72] sm:$0xff]  ;;  %v190_v22 = vmax.f32 %v2839_v17, %v2855_v19  ;;  %1493 = vst.msk [vmem:[#allocation4 + $0x80] sm:$0xff] %vm1301_vm12, %v3050_v0  ;;  %1495 = vst.msk [vmem:[#allocation4 + $0x90] sm:$0xff] %vm1301_vm12, %v3050_v0 }
  0x31   :  { %816 = vrot.lane.b32.xlu1 %v493_v61, %s3056_s11  ;;  %294 = vst.msk [vmem:[#allocation3 + $0x60] sm:$0xff] %vm207_vm0, %v3416_v44  ;;  %v172_v61 = vmax.f32 %v2805_v57, %v2821_v58  ;;  %v307_v31 = vld [vmem:[#allocation2 + $0xb1] sm:$0xff]  ;;  %v405_v54 = vld [vmem:[#allocation2 + $0xc2] sm:$0xff] }
  0x32   :  { %720 = vrot.lane.b32.xlu0 %v397_v26, %s3055_s19  ;;  %v206_v23 = vmax.f32 %v174_v20, %v190_v22  ;;  %v791_v40 = vld [vmem:[#allocation2 + $0x90] sm:$0xff]  ;;  %1497 = vst.msk [vmem:[#allocation4 + $0xa0] sm:$0xff] %vm1301_vm12, %v3050_v0  ;;  %1499 = vst.msk [vmem:[#allocation4 + $0xb0] sm:$0xff] %vm1301_vm12, %v3050_v0 }
  0x33   :  { %v204_v2 = vmax.f32 %v172_v61, %v188_v63  ;;  %v985_v51 = vld [vmem:[#allocation2 + $0x92] sm:$0xff]  ;;  %1501 = vst.msk [vmem:[#allocation4 + $0xc0] sm:$0xff] %vm1301_vm12, %v3050_v0  ;;  %1503 = vst.msk [vmem:[#allocation4 + $0xd0] sm:$0xff] %vm1301_vm12, %v3050_v0 }
  0x34   :  { %v3462_v1 = vld [vmem:[#allocation2 + $0xf0] sm:$0xff]  ;;  %265 = vst.msk [vmem:[#allocation2 + $0x121] sm:$0xff] %vm207_vm0, %v206_v23 }
  0x35   :  { %528 = vrot.lane.b32.xlu1 %v3308_v3, %s3053_s22  ;;  %295 = vst.msk [vmem:[#allocation3 + $0x68] sm:$0xff] %vm207_vm0, %v3462_v1  ;;  %263 = vst.msk [vmem:[#allocation2 + $0x101] sm:$0xff] %vm207_vm0, %v204_v2  ;;  %v406_v60 = vld [vmem:[#allocation2 + $0xd2] sm:$0xff] }
  0x36   :  { %433 = vrot.lane.b32.xlu0 %v398_v36, %s3051_s26  ;;  %v311_v14 = vld [vmem:[#allocation2 + $0xf1] sm:$0xff]  ;;  %1505 = vst.msk [vmem:[#allocation4 + $0xe0] sm:$0xff] %vm1301_vm12, %v3050_v0  ;;  %1507 = vst.msk [vmem:[#allocation4 + $0xf0] sm:$0xff] %vm1301_vm12, %v3050_v0 }
  0x37   :  { %1509 = vst.msk [vmem:[#allocation4 + $0x100] sm:$0xff] %vm1301_vm12, %v3050_v0  ;;  %1511 = vst.msk [vmem:[#allocation4 + $0x110] sm:$0xff] %vm1301_vm12, %v3050_v0 }
  0x38   :  { %1513 = vst.msk [vmem:[#allocation4 + $0x120] sm:$0xff] %vm1301_vm12, %v3050_v0  ;;  %1515 = vst.msk [vmem:[#allocation4 + $0x130] sm:$0xff] %vm1301_vm12, %v3050_v0 }
  0x39   :  { %913 = vrot.lane.b32.xlu1 %v300_v9, %s3057_s14  ;;  %v594_v9 = vld [vmem:[#allocation2 + $0x61] sm:$0xff]  ;;  %1502 = vst.msk [vmem:[#allocation4 + $0xc8] sm:$0x3] %vm1477_vm13, %v3050_v0  ;;  %1504 = vst.msk [vmem:[#allocation4 + $0xd8] sm:$0x3] %vm1477_vm13, %v3050_v0 }
  0x3a   :  { %818 = vrot.lane.b32.xlu0 %v3308_v3, %s3056_s11  ;;  %1506 = vst.msk [vmem:[#allocation4 + $0xe8] sm:$0x3] %vm1477_vm13, %v3050_v0  ;;  %1508 = vst.msk [vmem:[#allocation4 + $0xf8] sm:$0x3] %vm1477_vm13, %v3050_v0 }
  0x3b   :  { %1510 = vst.msk [vmem:[#allocation4 + $0x108] sm:$0x3] %vm1477_vm13, %v3050_v0  ;;  %1512 = vst.msk [vmem:[#allocation4 + $0x118] sm:$0x3] %vm1477_vm13, %v3050_v0 }
  0x3c   :  { %v3476_v3 = vld [vmem:[#allocation2 + $0x100] sm:$0xff]  ;;  %1514 = vst.msk [vmem:[#allocation4 + $0x128] sm:$0x3] %vm1477_vm13, %v3050_v0  ;;  %1478 = vst.msk [vmem:[#allocation4 + $0x8] sm:$0x3] %vm1477_vm13, %v3050_v0 }
  0x3d   :  { %625 = vrot.lane.b32.xlu1 %v301_v27, %s3054_s10  ;;  %296 = vst.msk [vmem:[#allocation3 + $0x70] sm:$0xff] %vm207_vm0, %v3476_v3 }
  0x3e   :  { %530 = vrot.lane.b32.xlu0 %v3322_v7, %s3053_s22  ;;  %1480 = vst.msk [vmem:[#allocation4 + $0x18] sm:$0x3] %vm1477_vm13, %v3050_v0  ;;  %1482 = vst.msk [vmem:[#allocation4 + $0x28] sm:$0x3] %vm1477_vm13, %v3050_v0 }
  0x3f   :  { %1484 = vst.msk [vmem:[#allocation4 + $0x38] sm:$0x3] %vm1477_vm13, %v3050_v0  ;;  %1486 = vst.msk [vmem:[#allocation4 + $0x48] sm:$0x3] %vm1477_vm13, %v3050_v0 }
  0x40   :  { %1488 = vst.msk [vmem:[#allocation4 + $0x58] sm:$0x3] %vm1477_vm13, %v3050_v0  ;;  %1490 = vst.msk [vmem:[#allocation4 + $0x68] sm:$0x3] %vm1477_vm13, %v3050_v0 }
  0x41   :  { %1010 = vrot.lane.b32.xlu1 %v397_v26, %s3058_s15  ;;  %v596_v26 = vld [vmem:[#allocation2 + $0x81] sm:$0xff]  ;;  %1492 = vst.msk [vmem:[#allocation4 + $0x78] sm:$0x3] %vm1477_vm13, %v3050_v0  ;;  %1494 = vst.msk [vmem:[#allocation4 + $0x88] sm:$0x3] %vm1477_vm13, %v3050_v0 }
  0x42   :  { %915 = vrot.lane.b32.xlu0 %v301_v27, %s3057_s14  ;;  %v306_v27 = vld [vmem:[#allocation2 + $0xa1] sm:$0xff]  ;;  %1496 = vst.msk [vmem:[#allocation4 + $0x98] sm:$0x3] %vm1477_vm13, %v3050_v0  ;;  %1498 = vst.msk [vmem:[#allocation4 + $0xa8] sm:$0x3] %vm1477_vm13, %v3050_v0 }
  0x43   :  { %1500 = vst.msk [vmem:[#allocation4 + $0xb8] sm:$0x3] %vm1477_vm13, %v3050_v0  ;;  %1516 = vst.msk [vmem:[#allocation4 + $0x138] sm:$0x3] %vm1477_vm13, %v3050_v0 }
  0x45   :  { %627 = vrot.lane.b32.xlu1 %v592_v52, %s3054_s10 }
  0x46   :  { %338 = vrot.lane.b32.xlu0 %v592_v52, %s3052_s27 }
  0x49   :  { %1012 = vrot.lane.b32.xlu1 %v398_v36, %s3058_s15 }
  0x4a   :  { %722 = vrot.lane.b32.xlu0 %v398_v36, %s3055_s19  ;;  %v404_v36 = vld [vmem:[#allocation2 + $0xb2] sm:$0xff] }
  0x4d   :  { %435 = vrot.lane.b32.xlu1 %v399_v55, %s3051_s26 }
  0x4e   :  { %340 = vrot.lane.b32.xlu0 %v303_v56, %s3052_s27 }
  0x51   :  { %820 = vrot.lane.b32.xlu1 %v3322_v7, %s3056_s11  ;;  %v2854_v7 = vld [vmem:[%s4604_s0 + $0x1d1] ss:$2 sm:$0xff] }
  0x52   :  { %724 = vrot.lane.b32.xlu0 %v399_v55, %s3055_s19  ;;  %v189_v10 = vmax.f32 %v2838_v6, %v2854_v7 }
  0x54   :  { %v205_v11 = vmax.f32 %v173_v8, %v189_v10 }
  0x55   :  { %532 = vrot.lane.b32.xlu1 %v3332_v12, %s3053_s22 }
  0x56   :  { %437 = vrot.lane.b32.xlu0 %v400_v62, %s3051_s26  ;;  %264 = vst.msk [vmem:[#allocation2 + $0x111] sm:$0xff] %vm207_vm0, %v205_v11 }
  0x59   :  { %917 = vrot.lane.b32.xlu1 %v592_v52, %s3057_s14 }
  0x5a   :  { %822 = vrot.lane.b32.xlu0 %v3332_v12, %s3056_s11  ;;  %v401_v12 = vld [vmem:[#allocation2 + $0x62] sm:$0xff] }
  0x5d   :  { %629 = vrot.lane.b32.xlu1 %v303_v56, %s3054_s10  ;;  %v3519_v24 = vld [vmem:[#allocation2 + $0x110] sm:$0xff] }
  0x5e   :  { %534 = vrot.lane.b32.xlu0 %v3337_v15, %s3053_s22  ;;  %297 = vst.msk [vmem:[#allocation3 + $0x78] sm:$0xff] %vm207_vm0, %v3519_v24  ;;  %vm1840_vm0 = vcmask 261312  }
  0x61   :  { %1014 = vrot.lane.b32.xlu1 %v399_v55, %s3058_s15  ;;  %v309_v55 = vld [vmem:[#allocation2 + $0xd1] sm:$0xff] }
  0x62   :  { %919 = vrot.lane.b32.xlu0 %v303_v56, %s3057_s14 }
  0x65   :  { %631 = vrot.lane.b32.xlu1 %v594_v9, %s3054_s10 }
  0x66   :  { %342 = vrot.lane.b32.xlu0 %v594_v9, %s3052_s27 }
  0x69   :  { %1016 = vrot.lane.b32.xlu1 %v400_v62, %s3058_s15 }
  0x6a   :  { %726 = vrot.lane.b32.xlu0 %v400_v62, %s3055_s19 }
  0x6d   :  { %439 = vrot.lane.b32.xlu1 %v401_v12, %s3051_s26 }
  0x6e   :  { %344 = vrot.lane.b32.xlu0 %v305_v13, %s3052_s27 }
  0x71   :  { %824 = vrot.lane.b32.xlu1 %v3337_v15, %s3056_s11  ;;  %v499_v15 = vld [vmem:[#allocation2 + $0x80] sm:$0xff] }
  0x72   :  { %728 = vrot.lane.b32.xlu0 %v401_v12, %s3055_s19 }
  0x75   :  { %536 = vrot.lane.b32.xlu1 %v3349_v18, %s3053_s22 }
  0x76   :  { %441 = vrot.lane.b32.xlu0 %v402_v21, %s3051_s26 }
  0x79   :  { %921 = vrot.lane.b32.xlu1 %v594_v9, %s3057_s14 }
  0x7a   :  { %826 = vrot.lane.b32.xlu0 %v3349_v18, %s3056_s11 }
  0x7d   :  { %633 = vrot.lane.b32.xlu1 %v305_v13, %s3054_s10 }
  0x7e   :  { %538 = vrot.lane.b32.xlu0 %v499_v15, %s3053_s22 }
  0x80   :  { %v428_v18 = vpop.permute.xlu1 %427 }
  0x81   :  { %1018 = vrot.lane.b32.xlu1 %v401_v12, %s3058_s15  ;;  %v331_v28 = vpop.permute.xlu0 %330 }
  0x82   :  { %923 = vrot.lane.b32.xlu0 %v305_v13, %s3057_s14  ;;  %379 = vst.msk [vmem:[#allocation3] sm:$0xff] %vm378_vm3, %v331_v28  ;;  %v407_v13 = vld [vmem:[#allocation2 + $0xe2] sm:$0xff] }
  0x83   :  { %476 = vst.msk [vmem:[#allocation3] sm:$0xff] %vm475_vm4, %v428_v18 }
  0x85   :  { %635 = vrot.lane.b32.xlu1 %v596_v26, %s3054_s10 }
  0x86   :  { %346 = vrot.lane.b32.xlu0 %v306_v27, %s3052_s27 }
  0x89   :  { %1020 = vrot.lane.b32.xlu1 %v402_v21, %s3058_s15 }
  0x8a   :  { %730 = vrot.lane.b32.xlu0 %v402_v21, %s3055_s19  ;;  %v408_v21 = vld [vmem:[#allocation2 + $0xf2] sm:$0xff] }
  0x8d   :  { %443 = vrot.lane.b32.xlu1 %v403_v30, %s3051_s26 }
  0x8e   :  { %348 = vrot.lane.b32.xlu0 %v307_v31, %s3052_s27 }
  0x8f   :  { %v430_v33 = vpop.permute.xlu1 %429 }
  0x90   :  { %v333_v35 = vpop.permute.xlu0 %332 }
  0x91   :  { %380 = vst.msk [vmem:[#allocation3 + $0x8] sm:$0xff] %vm378_vm3, %v333_v35  ;;  %828 = vrot.lane.b32.xlu1 %v499_v15, %s3056_s11 }
  0x92   :  { %732 = vrot.lane.b32.xlu0 %v693_v32, %s3055_s19  ;;  %477 = vst.msk [vmem:[#allocation3 + $0x8] sm:$0xff] %vm475_vm4, %v430_v33 }
  0x93   :  { %v527_v37 = vpop.permute.xlu1 %526 }
  0x94   :  { %v525_v38 = vpop.permute.xlu0 %524  ;;  %574 = vst.msk [vmem:[#allocation3 + $0x8] sm:$0xff] %vm572_vm5, %v527_v37  ;;  %v409_v37 = vld [vmem:[#allocation2 + $0x102] sm:$0xff] }
  0x95   :  { %573 = vst.msk [vmem:[#allocation3] sm:$0xff] %vm572_vm5, %v525_v38  ;;  %540 = vrot.lane.b32.xlu1 %v3368_v29, %s3053_s22  ;;  %v888_v29 = vld [vmem:[#allocation2 + $0x91] sm:$0xff] }
  0x96   :  { %445 = vrot.lane.b32.xlu0 %v404_v36, %s3051_s26 }
  0x97   :  { %v335_v41 = vpop.permute.xlu1 %334 }
  0x98   :  { %v622_v42 = vpop.permute.xlu0 %621  ;;  %381 = vst.msk [vmem:[#allocation3 + $0x10] sm:$0xff] %vm378_vm3, %v335_v41 }
  0x99   :  { %670 = vst.msk [vmem:[#allocation3] sm:$0xff] %vm669_vm6, %v622_v42  ;;  %925 = vrot.lane.b32.xlu1 %v596_v26, %s3057_s14 }
  0x9a   :  { %830 = vrot.lane.b32.xlu0 %v791_v40, %s3056_s11 }
  0x9b   :  { %v719_v43 = vpop.permute.xlu1 %718 }
  0x9c   :  { %v624_v45 = vpop.permute.xlu0 %623  ;;  %767 = vst.msk [vmem:[#allocation3] sm:$0xff] %vm766_vm7, %v719_v43  ;;  %v3655_v43 = vld [vmem:[#allocation2 + $0x112] sm:$0xff] }
  0x9d   :  { %671 = vst.msk [vmem:[#allocation3 + $0x8] sm:$0xff] %vm669_vm6, %v624_v45  ;;  %637 = vrot.lane.b32.xlu1 %v307_v31, %s3054_s10 }
  0x9e   :  { %542 = vrot.lane.b32.xlu0 %v3386_v34, %s3053_s22 }
  0x9f   :  { %v432_v46 = vpop.permute.xlu1 %431 }
  0xa0   :  { %v337_v47 = vpop.permute.xlu0 %336  ;;  %478 = vst.msk [vmem:[#allocation3 + $0x10] sm:$0xff] %vm475_vm4, %v432_v46 }
  0xa1   :  { %382 = vst.msk [vmem:[#allocation3 + $0x18] sm:$0xff] %vm378_vm3, %v337_v47  ;;  %1022 = vrot.lane.b32.xlu1 %v693_v32, %s3058_s15 }
  0xa2   :  { %927 = vrot.lane.b32.xlu0 %v888_v29, %s3057_s14 }
  0xa3   :  { %v817_v49 = vpop.permute.xlu1 %816 }
  0xa4   :  { %v721_v50 = vpop.permute.xlu0 %720  ;;  %865 = vst.msk [vmem:[#allocation3] sm:$0xff] %vm864_vm8, %v817_v49 }
  0xa5   :  { %768 = vst.msk [vmem:[#allocation3 + $0x8] sm:$0xff] %vm766_vm7, %v721_v50  ;;  %639 = vrot.lane.b32.xlu1 %v598_v48, %s3054_s10 }
  0xa6   :  { %350 = vrot.lane.b32.xlu0 %v598_v48, %s3052_s27 }
  0xa7   :  { %v529_v52 = vpop.permute.xlu1 %528 }
  0xa8   :  { %v434_v53 = vpop.permute.xlu0 %433  ;;  %575 = vst.msk [vmem:[#allocation3 + $0x10] sm:$0xff] %vm572_vm5, %v529_v52 }
  0xa9   :  { %479 = vst.msk [vmem:[#allocation3 + $0x18] sm:$0xff] %vm475_vm4, %v434_v53  ;;  %1024 = vrot.lane.b32.xlu1 %v985_v51, %s3058_s15 }
  0xaa   :  { %734 = vrot.lane.b32.xlu0 %v404_v36, %s3055_s19  ;;  %v313_v36 = vld [vmem:[#allocation2 + $0x111] sm:$0xff] }
  0xab   :  { %v914_v56 = vpop.permute.xlu1 %913 }
  0xac   :  { %v819_v57 = vpop.permute.xlu0 %818  ;;  %962 = vst.msk [vmem:[#allocation3] sm:$0xff] %vm961_vm9, %v914_v56  ;;  %v701_v56 = vld [vmem:[#allocation2 + $0x122] sm:$0xff] }
  0xad   :  { %866 = vst.msk [vmem:[#allocation3 + $0x8] sm:$0xff] %vm864_vm8, %v819_v57  ;;  %447 = vrot.lane.b32.xlu1 %v405_v54, %s3051_s26 }
  0xae   :  { %352 = vrot.lane.b32.xlu0 %v309_v55, %s3052_s27 }
  0xaf   :  { %v626_v58 = vpop.permute.xlu1 %625 }
  0xb0   :  { %v531_v59 = vpop.permute.xlu0 %530  ;;  %672 = vst.msk [vmem:[#allocation3 + $0x10] sm:$0xff] %vm669_vm6, %v626_v58 }
  0xb1   :  { %576 = vst.msk [vmem:[#allocation3 + $0x18] sm:$0xff] %vm572_vm5, %v531_v59  ;;  %832 = vrot.lane.b32.xlu1 %v3386_v34, %s3056_s11  ;;  %v799_v59 = vld [vmem:[#allocation2 + $0x130] sm:$0xff] }
  0xb2   :  { %736 = vrot.lane.b32.xlu0 %v405_v54, %s3055_s19 }
  0xb3   :  { %v1011_v61 = vpop.permute.xlu1 %1010 }
  0xb4   :  { %v916_v62 = vpop.permute.xlu0 %915  ;;  %1059 = vst.msk [vmem:[#allocation3] sm:$0xff] %vm1058_vm10, %v1011_v61 }
  0xb5   :  { %963 = vst.msk [vmem:[#allocation3 + $0x8] sm:$0xff] %vm961_vm9, %v916_v62  ;;  %544 = vrot.lane.b32.xlu1 %v3396_v39, %s3053_s22  ;;  %v896_v62 = vld [vmem:[#allocation2 + $0x131] sm:$0xff] }
  0xb6   :  { %449 = vrot.lane.b32.xlu0 %v406_v60, %s3051_s26 }
  0xb7   :  { %v628_v63 = vpop.permute.xlu1 %627 }
  0xb8   :  { %v339_v2 = vpop.permute.xlu0 %338  ;;  %673 = vst.msk [vmem:[#allocation3 + $0x18] sm:$0xff] %vm669_vm6, %v628_v63 }
  0xb9   :  { %383 = vst.msk [vmem:[#allocation3 + $0x20] sm:$0xff] %vm378_vm3, %v339_v2  ;;  %929 = vrot.lane.b32.xlu1 %v598_v48, %s3057_s14 }
  0xba   :  { %834 = vrot.lane.b32.xlu0 %v3396_v39, %s3056_s11  ;;  %v600_v39 = vld [vmem:[#allocation2 + $0xe1] sm:$0xff] }
  0xbb   :  { %v1013_v34 = vpop.permute.xlu1 %1012  ;;  %v1075_v5 = vld [vmem:[#allocation3] sm:$0xff] }
  0xbc   :  { %v723_v4 = vpop.permute.xlu0 %722  ;;  %1060 = vst.msk [vmem:[#allocation3 + $0x8] sm:$0xff] %vm1058_vm10, %v1013_v34  ;;  %2949 = vmatprep.mubr.msk.f32.mxu0 %vm1103_vm11, %v1075_v5  ;;  %v993_v34 = vld [vmem:[#allocation2 + $0x132] sm:$0xff] }
  0xbd   :  { %769 = vst.msk [vmem:[#allocation3 + $0x10] sm:$0xff] %vm766_vm7, %v723_v4  ;;  %641 = vrot.lane.b32.xlu1 %v309_v55, %s3054_s10 }
  0xbe   :  { %546 = vrot.lane.b32.xlu0 %v3416_v44, %s3053_s22 }
  0xbf   :  { %v436_v6 = vpop.permute.xlu1 %435 }
  0xc0   :  { %v341_v7 = vpop.permute.xlu0 %340  ;;  %480 = vst.msk [vmem:[#allocation3 + $0x20] sm:$0xff] %vm475_vm4, %v436_v6 }
  0xc1   :  { %384 = vst.msk [vmem:[#allocation3 + $0x28] sm:$0xff] %vm378_vm3, %v341_v7  ;;  %1026 = vrot.lane.b32.xlu1 %v405_v54, %s3058_s15 }
  0xc2   :  { %931 = vrot.lane.b32.xlu0 %v309_v55, %s3057_s14 }
  0xc3   :  { %v821_v8 = vpop.permute.xlu1 %820  ;;  %v1076_v10 = vld [vmem:[#allocation3 + $0x8] sm:$0xff] }
  0xc4   :  { %v725_v9 = vpop.permute.xlu0 %724  ;;  %867 = vst.msk [vmem:[#allocation3 + $0x10] sm:$0xff] %vm864_vm8, %v821_v8  ;;  %2950 = vmatmul.mubr.msk.f32.vlgmr.msra.gmra.mxu0 %vm1103_vm11, %v1076_v10 }
  0xc5   :  { %770 = vst.msk [vmem:[#allocation3 + $0x18] sm:$0xff] %vm766_vm7, %v725_v9  ;;  %643 = vrot.lane.b32.xlu1 %v600_v39, %s3054_s10 }
  0xc6   :  { %354 = vrot.lane.b32.xlu0 %v600_v39, %s3052_s27 }
  0xc7   :  { %v533_v11 = vpop.permute.xlu1 %532 }
  0xc8   :  { %v438_v12 = vpop.permute.xlu0 %437  ;;  %577 = vst.msk [vmem:[#allocation3 + $0x20] sm:$0xff] %vm572_vm5, %v533_v11 }
  0xc9   :  { %481 = vst.msk [vmem:[#allocation3 + $0x28] sm:$0xff] %vm475_vm4, %v438_v12  ;;  %1028 = vrot.lane.b32.xlu1 %v406_v60, %s3058_s15 }
  0xca   :  { %738 = vrot.lane.b32.xlu0 %v406_v60, %s3055_s19 }
  0xcb   :  { %v918_v16 = vpop.permute.xlu1 %917 }
  0xcc   :  { %v823_v17 = vpop.permute.xlu0 %822  ;;  %964 = vst.msk [vmem:[#allocation3 + $0x10] sm:$0xff] %vm961_vm9, %v918_v16 }
  0xcd   :  { %868 = vst.msk [vmem:[#allocation3 + $0x18] sm:$0xff] %vm864_vm8, %v823_v17  ;;  %451 = vrot.lane.b32.xlu1 %v407_v13, %s3051_s26 }
  0xce   :  { %356 = vrot.lane.b32.xlu0 %v311_v14, %s3052_s27 }
  0xcf   :  { %v630_v19 = vpop.permute.xlu1 %629 }
  0xd0   :  { %v535_v20 = vpop.permute.xlu0 %534  ;;  %674 = vst.msk [vmem:[#allocation3 + $0x20] sm:$0xff] %vm669_vm6, %v630_v19 }
  0xd1   :  { %578 = vst.msk [vmem:[#allocation3 + $0x28] sm:$0xff] %vm572_vm5, %v535_v20  ;;  %836 = vrot.lane.b32.xlu1 %v3416_v44, %s3056_s11 }
  0xd2   :  { %740 = vrot.lane.b32.xlu0 %v407_v13, %s3055_s19 }
  0xd3   :  { %v1015_v22 = vpop.permute.xlu1 %1014 }
  0xd4   :  { %v920_v23 = vpop.permute.xlu0 %919  ;;  %1061 = vst.msk [vmem:[#allocation3 + $0x10] sm:$0xff] %vm1058_vm10, %v1015_v22 }
  0xd5   :  { %965 = vst.msk [vmem:[#allocation3 + $0x18] sm:$0xff] %vm961_vm9, %v920_v23  ;;  %548 = vrot.lane.b32.xlu1 %v3462_v1, %s3053_s22 }
  0xd6   :  { %453 = vrot.lane.b32.xlu0 %v408_v21, %s3051_s26 }
  0xd7   :  { %v632_v25 = vpop.permute.xlu1 %631 }
  0xd8   :  { %v343_v15 = vpop.permute.xlu0 %342  ;;  %675 = vst.msk [vmem:[#allocation3 + $0x28] sm:$0xff] %vm669_vm6, %v632_v25 }
  0xd9   :  { %385 = vst.msk [vmem:[#allocation3 + $0x30] sm:$0xff] %vm378_vm3, %v343_v15  ;;  %933 = vrot.lane.b32.xlu1 %v600_v39, %s3057_s14 }
  0xda   :  { %838 = vrot.lane.b32.xlu0 %v3462_v1, %s3056_s11  ;;  %v602_v1 = vld [vmem:[#allocation2 + $0x101] sm:$0xff] }
  0xdb   :  { %v1017_v44 = vpop.permute.xlu1 %1016  ;;  %v1077_v27 = vld [vmem:[#allocation3 + $0x10] sm:$0xff] }
  0xdc   :  { %v727_v26 = vpop.permute.xlu0 %726  ;;  %1062 = vst.msk [vmem:[#allocation3 + $0x18] sm:$0xff] %vm1058_vm10, %v1017_v44  ;;  %2952 = vmatprep.mubr.msk.f32.mxu0 %vm1103_vm11, %v1077_v27 }
  0xdd   :  { %771 = vst.msk [vmem:[#allocation3 + $0x20] sm:$0xff] %vm766_vm7, %v727_v26  ;;  %645 = vrot.lane.b32.xlu1 %v311_v14, %s3054_s10 }
  0xde   :  { %550 = vrot.lane.b32.xlu0 %v3476_v3, %s3053_s22 }
  0xdf   :  { %v440_v18 = vpop.permute.xlu1 %439 }
  0xe0   :  { %v345_v28 = vpop.permute.xlu0 %344  ;;  %482 = vst.msk [vmem:[#allocation3 + $0x30] sm:$0xff] %vm475_vm4, %v440_v18 }
  0xe1   :  { %386 = vst.msk [vmem:[#allocation3 + $0x38] sm:$0xff] %vm378_vm3, %v345_v28  ;;  %1030 = vrot.lane.b32.xlu1 %v407_v13, %s3058_s15 }
  0xe2   :  { %935 = vrot.lane.b32.xlu0 %v311_v14, %s3057_s14 }
  0xe3   :  { %v825_v30 = vpop.permute.xlu1 %824  ;;  %v1078_v32 = vld [vmem:[#allocation3 + $0x18] sm:$0xff] }
  0xe4   :  { %v729_v31 = vpop.permute.xlu0 %728  ;;  %869 = vst.msk [vmem:[#allocation3 + $0x20] sm:$0xff] %vm864_vm8, %v825_v30  ;;  %2953 = vmatmul.mubr.msk.f32.gmra.mxu0 %vm1103_vm11, %v1078_v32 }
  0xe5   :  { %772 = vst.msk [vmem:[#allocation3 + $0x28] sm:$0xff] %vm766_vm7, %v729_v31  ;;  %647 = vrot.lane.b32.xlu1 %v602_v1, %s3054_s10 }
  0xe6   :  { %358 = vrot.lane.b32.xlu0 %v602_v1, %s3052_s27 }
  0xe7   :  { %v537_v33 = vpop.permute.xlu1 %536 }
  0xe8   :  { %v442_v35 = vpop.permute.xlu0 %441  ;;  %579 = vst.msk [vmem:[#allocation3 + $0x30] sm:$0xff] %vm572_vm5, %v537_v33 }
  0xe9   :  { %483 = vst.msk [vmem:[#allocation3 + $0x38] sm:$0xff] %vm475_vm4, %v442_v35  ;;  %1032 = vrot.lane.b32.xlu1 %v408_v21, %s3058_s15 }
  0xea   :  { %742 = vrot.lane.b32.xlu0 %v408_v21, %s3055_s19 }
  0xeb   :  { %v922_v38 = vpop.permute.xlu1 %921 }
  0xec   :  { %v827_v40 = vpop.permute.xlu0 %826  ;;  %966 = vst.msk [vmem:[#allocation3 + $0x20] sm:$0xff] %vm961_vm9, %v922_v38 }
  0xed   :  { %870 = vst.msk [vmem:[#allocation3 + $0x28] sm:$0xff] %vm864_vm8, %v827_v40  ;;  %455 = vrot.lane.b32.xlu1 %v409_v37, %s3051_s26 }
  0xee   :  { %360 = vrot.lane.b32.xlu0 %v313_v36, %s3052_s27 }
  0xef   :  { %v634_v41 = vpop.permute.xlu1 %633 }
  0xf0   :  { %v539_v42 = vpop.permute.xlu0 %538  ;;  %676 = vst.msk [vmem:[#allocation3 + $0x30] sm:$0xff] %vm669_vm6, %v634_v41 }
  0xf1   :  { %580 = vst.msk [vmem:[#allocation3 + $0x38] sm:$0xff] %vm572_vm5, %v539_v42  ;;  %840 = vrot.lane.b32.xlu1 %v3476_v3, %s3056_s11  ;;  %v507_v3 = vld [vmem:[#allocation2 + $0x120] sm:$0xff] }
  0xf2   :  { %744 = vrot.lane.b32.xlu0 %v409_v37, %s3055_s19 }
  0xf3   :  { %v1019_v45 = vpop.permute.xlu1 %1018 }
  0xf4   :  { %v924_v29 = vpop.permute.xlu0 %923  ;;  %1063 = vst.msk [vmem:[#allocation3 + $0x20] sm:$0xff] %vm1058_vm10, %v1019_v45 }
  0xf5   :  { %967 = vst.msk [vmem:[#allocation3 + $0x28] sm:$0xff] %vm961_vm9, %v924_v29  ;;  %552 = vrot.lane.b32.xlu1 %v3519_v24, %s3053_s22 }
  0xf6   :  { %457 = vrot.lane.b32.xlu0 %v3655_v43, %s3051_s26 }
  0xf7   :  { %v636_v46 = vpop.permute.xlu1 %635 }
  0xf8   :  { %v347_v47 = vpop.permute.xlu0 %346  ;;  %677 = vst.msk [vmem:[#allocation3 + $0x38] sm:$0xff] %vm669_vm6, %v636_v46 }
  0xf9   :  { %387 = vst.msk [vmem:[#allocation3 + $0x40] sm:$0xff] %vm378_vm3, %v347_v47  ;;  %937 = vrot.lane.b32.xlu1 %v602_v1, %s3057_s14 }
  0xfa   :  { %842 = vrot.lane.b32.xlu0 %v3519_v24, %s3056_s11  ;;  %v604_v24 = vld [vmem:[#allocation2 + $0x121] sm:$0xff] }
  0xfb   :  { %v1021_v48 = vpop.permute.xlu1 %1020  ;;  %v1079_v50 = vld [vmem:[#allocation3 + $0x20] sm:$0xff] }
  0xfc   :  { %v731_v49 = vpop.permute.xlu0 %730  ;;  %1064 = vst.msk [vmem:[#allocation3 + $0x28] sm:$0xff] %vm1058_vm10, %v1021_v48  ;;  %2955 = vmatprep.mubr.msk.f32.mxu0 %vm1103_vm11, %v1079_v50 }
  0xfd   :  { %773 = vst.msk [vmem:[#allocation3 + $0x30] sm:$0xff] %vm766_vm7, %v731_v49  ;;  %649 = vrot.lane.b32.xlu1 %v313_v36, %s3054_s10 }
  0xfe   :  { %554 = vrot.lane.b32.xlu0 %v507_v3, %s3053_s22  ;;  %s3060_s22 = smov 64  }
  0xff   :  { %v444_v51 = vpop.permute.xlu1 %443 }
 0x100   :  { %v349_v52 = vpop.permute.xlu0 %348  ;;  %484 = vst.msk [vmem:[#allocation3 + $0x40] sm:$0xff] %vm475_vm4, %v444_v51 }
 0x101   :  { %388 = vst.msk [vmem:[#allocation3 + $0x48] sm:$0xff] %vm378_vm3, %v349_v52  ;;  %1034 = vrot.lane.b32.xlu1 %v409_v37, %s3058_s15 }
 0x102   :  { %939 = vrot.lane.b32.xlu0 %v313_v36, %s3057_s14 }
 0x103   :  { %v829_v53 = vpop.permute.xlu1 %828  ;;  %v1080_v55 = vld [vmem:[#allocation3 + $0x28] sm:$0xff] }
 0x104   :  { %v733_v54 = vpop.permute.xlu0 %732  ;;  %871 = vst.msk [vmem:[#allocation3 + $0x30] sm:$0xff] %vm864_vm8, %v829_v53  ;;  %2956 = vmatmul.mubr.msk.f32.gmra.mxu0 %vm1103_vm11, %v1080_v55 }
 0x105   :  { %774 = vst.msk [vmem:[#allocation3 + $0x38] sm:$0xff] %vm766_vm7, %v733_v54  ;;  %746 = vrot.lane.b32.xlu1 %v3655_v43, %s3055_s19 }
 0x106   :  { %651 = vrot.lane.b32.xlu0 %v604_v24, %s3054_s10 }
 0x107   :  { %v541_v57 = vpop.permute.xlu1 %540 }
 0x108   :  { %v446_v58 = vpop.permute.xlu0 %445  ;;  %581 = vst.msk [vmem:[#allocation3 + $0x40] sm:$0xff] %vm572_vm5, %v541_v57 }
 0x109   :  { %485 = vst.msk [vmem:[#allocation3 + $0x48] sm:$0xff] %vm475_vm4, %v446_v58  ;;  %748 = vrot.lane.b32.xlu1 %v701_v56, %s3055_s19  ;;  %s3061_s19 = smov 56  }
 0x10a   :  { %1036 = vrot.lane.b32.xlu0 %v3655_v43, %s3058_s15 }
 0x10b   :  { %v926_v60 = vpop.permute.xlu1 %925 }
 0x10c   :  { %v831_v61 = vpop.permute.xlu0 %830  ;;  %968 = vst.msk [vmem:[#allocation3 + $0x30] sm:$0xff] %vm961_vm9, %v926_v60 }
 0x10d   :  { %872 = vst.msk [vmem:[#allocation3 + $0x38] sm:$0xff] %vm864_vm8, %v831_v61  ;;  %846 = vrot.lane.b32.xlu1 %v799_v59, %s3056_s11 }
 0x10e   :  { %844 = vrot.lane.b32.xlu0 %v507_v3, %s3056_s11 }
 0x10f   :  { %v638_v63 = vpop.permute.xlu1 %637 }
 0x110   :  { %v543_v2 = vpop.permute.xlu0 %542  ;;  %678 = vst.msk [vmem:[#allocation3 + $0x40] sm:$0xff] %vm669_vm6, %v638_v63 }
 0x111   :  { %582 = vst.msk [vmem:[#allocation3 + $0x48] sm:$0xff] %vm572_vm5, %v543_v2  ;;  %943 = vrot.lane.b32.xlu1 %v896_v62, %s3057_s14 }
 0x112   :  { %941 = vrot.lane.b32.xlu0 %v604_v24, %s3057_s14 }
 0x113   :  { %v1023_v4 = vpop.permute.xlu1 %1022 }
 0x114   :  { %v928_v5 = vpop.permute.xlu0 %927  ;;  %1065 = vst.msk [vmem:[#allocation3 + $0x30] sm:$0xff] %vm1058_vm10, %v1023_v4 }
 0x115   :  { %969 = vst.msk [vmem:[#allocation3 + $0x38] sm:$0xff] %vm961_vm9, %v928_v5  ;;  %1040 = vrot.lane.b32.xlu1 %v993_v34, %s3058_s15 }
 0x116   :  { %1038 = vrot.lane.b32.xlu0 %v701_v56, %s3058_s15 }
 0x117   :  { %v640_v6 = vpop.permute.xlu1 %639 }
 0x118   :  { %v351_v7 = vpop.permute.xlu0 %350  ;;  %679 = vst.msk [vmem:[#allocation3 + $0x48] sm:$0xff] %vm669_vm6, %v640_v6 }
 0x119   :  { %389 = vst.msk [vmem:[#allocation3 + $0x50] sm:$0xff] %vm378_vm3, %v351_v7 }
 0x11b   :  { %v1025_v39 = vpop.permute.xlu1 %1024  ;;  %v1081_v9 = vld [vmem:[#allocation3 + $0x30] sm:$0xff] }
 0x11c   :  { %v735_v8 = vpop.permute.xlu0 %734  ;;  %1066 = vst.msk [vmem:[#allocation3 + $0x38] sm:$0xff] %vm1058_vm10, %v1025_v39  ;;  %2958 = vmatprep.mubr.msk.f32.mxu0 %vm1103_vm11, %v1081_v9 }
 0x11d   :  { %775 = vst.msk [vmem:[#allocation3 + $0x40] sm:$0xff] %vm766_vm7, %v735_v8 }
 0x11f   :  { %v448_v10 = vpop.permute.xlu1 %447 }
 0x120   :  { %v353_v11 = vpop.permute.xlu0 %352  ;;  %486 = vst.msk [vmem:[#allocation3 + $0x50] sm:$0xff] %vm475_vm4, %v448_v10 }
 0x121   :  { %390 = vst.msk [vmem:[#allocation3 + $0x58] sm:$0xff] %vm378_vm3, %v353_v11 }
 0x123   :  { %v833_v12 = vpop.permute.xlu1 %832  ;;  %v1082_v14 = vld [vmem:[#allocation3 + $0x38] sm:$0xff] }
 0x124   :  { %v737_v13 = vpop.permute.xlu0 %736  ;;  %873 = vst.msk [vmem:[#allocation3 + $0x40] sm:$0xff] %vm864_vm8, %v833_v12  ;;  %2959 = vmatmul.mubr.msk.f32.gmra.mxu0 %vm1103_vm11, %v1082_v14 }
 0x125   :  { %776 = vst.msk [vmem:[#allocation3 + $0x48] sm:$0xff] %vm766_vm7, %v737_v13  ;;  %v3811_v13 = vld [vmem:[%s4606_s2] ss:$0 sm:$0xff]  ;;  %s3059_s2 = smov 48  }
 0x127   :  { %v545_v16 = vpop.permute.xlu1 %544 }
 0x128   :  { %v450_v17 = vpop.permute.xlu0 %449  ;;  %583 = vst.msk [vmem:[#allocation3 + $0x50] sm:$0xff] %vm572_vm5, %v545_v16 }
 0x129   :  { %487 = vst.msk [vmem:[#allocation3 + $0x58] sm:$0xff] %vm475_vm4, %v450_v17 }
 0x12b   :  { %v930_v19 = vpop.permute.xlu1 %929 }
 0x12c   :  { %v835_v20 = vpop.permute.xlu0 %834  ;;  %970 = vst.msk [vmem:[#allocation3 + $0x40] sm:$0xff] %vm961_vm9, %v930_v19 }
 0x12d   :  { %874 = vst.msk [vmem:[#allocation3 + $0x48] sm:$0xff] %vm864_vm8, %v835_v20 }
 0x12f   :  { %v642_v21 = vpop.permute.xlu1 %641 }
 0x130   :  { %v547_v22 = vpop.permute.xlu0 %546  ;;  %680 = vst.msk [vmem:[#allocation3 + $0x50] sm:$0xff] %vm669_vm6, %v642_v21 }
 0x131   :  { %584 = vst.msk [vmem:[#allocation3 + $0x58] sm:$0xff] %vm572_vm5, %v547_v22 }
 0x133   :  { %v1027_v23 = vpop.permute.xlu1 %1026 }
 0x134   :  { %v932_v25 = vpop.permute.xlu0 %931  ;;  %1067 = vst.msk [vmem:[#allocation3 + $0x40] sm:$0xff] %vm1058_vm10, %v1027_v23 }
 0x135   :  { %971 = vst.msk [vmem:[#allocation3 + $0x48] sm:$0xff] %vm961_vm9, %v932_v25 }
 0x137   :  { %v644_v15 = vpop.permute.xlu1 %643 }
 0x138   :  { %v355_v44 = vpop.permute.xlu0 %354  ;;  %681 = vst.msk [vmem:[#allocation3 + $0x58] sm:$0xff] %vm669_vm6, %v644_v15 }
 0x139   :  { %391 = vst.msk [vmem:[#allocation3 + $0x60] sm:$0xff] %vm378_vm3, %v355_v44 }
 0x13b   :  { %v1029_v26 = vpop.permute.xlu1 %1028  ;;  %v1083_v18 = vld [vmem:[#allocation3 + $0x40] sm:$0xff] }
 0x13c   :  { %v739_v27 = vpop.permute.xlu0 %738  ;;  %1068 = vst.msk [vmem:[#allocation3 + $0x48] sm:$0xff] %vm1058_vm10, %v1029_v26  ;;  %2961 = vmatprep.mubr.msk.f32.mxu0 %vm1103_vm11, %v1083_v18 }
 0x13d   :  { %777 = vst.msk [vmem:[#allocation3 + $0x50] sm:$0xff] %vm766_vm7, %v739_v27  ;;  %v1566_v27 = vld [vmem:[#allocation4 + $0x1] sm:$0xff] }
 0x13e   :  { %1598 = vrot.lane.b32.xlu0 %v1566_v27, %s3051_s26 }
 0x13f   :  { %v452_v28 = vpop.permute.xlu1 %451 }
 0x140   :  { %v357_v1 = vpop.permute.xlu0 %356  ;;  %488 = vst.msk [vmem:[#allocation3 + $0x60] sm:$0xff] %vm475_vm4, %v452_v28 }
 0x141   :  { %392 = vst.msk [vmem:[#allocation3 + $0x68] sm:$0xff] %vm378_vm3, %v357_v1 }
 0x143   :  { %v837_v30 = vpop.permute.xlu1 %836  ;;  %v1084_v32 = vld [vmem:[#allocation3 + $0x48] sm:$0xff] }
 0x144   :  { %v741_v31 = vpop.permute.xlu0 %740  ;;  %875 = vst.msk [vmem:[#allocation3 + $0x50] sm:$0xff] %vm864_vm8, %v837_v30  ;;  %2962 = vmatmul.mubr.msk.f32.gmra.mxu0 %vm1103_vm11, %v1084_v32 }
 0x145   :  { %778 = vst.msk [vmem:[#allocation3 + $0x58] sm:$0xff] %vm766_vm7, %v741_v31  ;;  %v1663_v31 = vld [vmem:[#allocation4 + $0x2] sm:$0xff] }
 0x146   :  { %1695 = vrot.lane.b32.xlu0 %v1663_v31, %s3054_s10 }
 0x147   :  { %v549_v33 = vpop.permute.xlu1 %548 }
 0x148   :  { %v454_v35 = vpop.permute.xlu0 %453  ;;  %585 = vst.msk [vmem:[#allocation3 + $0x60] sm:$0xff] %vm572_vm5, %v549_v33 }
 0x149   :  { %489 = vst.msk [vmem:[#allocation3 + $0x68] sm:$0xff] %vm475_vm4, %v454_v35 }
 0x14b   :  { %v934_v36 = vpop.permute.xlu1 %933 }
 0x14c   :  { %v839_v37 = vpop.permute.xlu0 %838  ;;  %972 = vst.msk [vmem:[#allocation3 + $0x50] sm:$0xff] %vm961_vm9, %v934_v36 }
 0x14d   :  { %876 = vst.msk [vmem:[#allocation3 + $0x58] sm:$0xff] %vm864_vm8, %v839_v37 }
 0x14f   :  { %v646_v38 = vpop.permute.xlu1 %645 }
 0x150   :  { %v551_v40 = vpop.permute.xlu0 %550  ;;  %682 = vst.msk [vmem:[#allocation3 + $0x60] sm:$0xff] %vm669_vm6, %v646_v38  ;;  %v1574_v38 = vld [vmem:[#allocation4 + $0xa1] sm:$0xff] }
 0x151   :  { %586 = vst.msk [vmem:[#allocation3 + $0x68] sm:$0xff] %vm572_vm5, %v551_v40  ;;  %1614 = vrot.lane.b32.xlu0 %v1574_v38, %s3051_s26 }
 0x153   :  { %v1031_v41 = vpop.permute.xlu1 %1030 }
 0x154   :  { %v936_v42 = vpop.permute.xlu0 %935  ;;  %1069 = vst.msk [vmem:[#allocation3 + $0x50] sm:$0xff] %vm1058_vm10, %v1031_v41 }
 0x155   :  { %973 = vst.msk [vmem:[#allocation3 + $0x58] sm:$0xff] %vm961_vm9, %v936_v42 }
 0x157   :  { %v648_v43 = vpop.permute.xlu1 %647 }
 0x158   :  { %v359_v45 = vpop.permute.xlu0 %358  ;;  %683 = vst.msk [vmem:[#allocation3 + $0x68] sm:$0xff] %vm669_vm6, %v648_v43 }
 0x159   :  { %393 = vst.msk [vmem:[#allocation3 + $0x70] sm:$0xff] %vm378_vm3, %v359_v45 }
 0x15b   :  { %v1033_v29 = vpop.permute.xlu1 %1032  ;;  %v1085_v47 = vld [vmem:[#allocation3 + $0x50] sm:$0xff] }
 0x15c   :  { %v743_v46 = vpop.permute.xlu0 %742  ;;  %1070 = vst.msk [vmem:[#allocation3 + $0x58] sm:$0xff] %vm1058_vm10, %v1033_v29  ;;  %2964 = vmatprep.mubr.msk.f32.mxu0 %vm1103_vm11, %v1085_v47  ;;  %v1671_v47 = vld [vmem:[#allocation4 + $0xa2] sm:$0xff] }
 0x15d   :  { %779 = vst.msk [vmem:[#allocation3 + $0x60] sm:$0xff] %vm766_vm7, %v743_v46  ;;  %1711 = vrot.lane.b32.xlu1 %v1671_v47, %s3054_s10 }
 0x15f   :  { %v456_v48 = vpop.permute.xlu1 %455 }
 0x160   :  { %v361_v3 = vpop.permute.xlu0 %360  ;;  %490 = vst.msk [vmem:[#allocation3 + $0x70] sm:$0xff] %vm475_vm4, %v456_v48 }
 0x161   :  { %394 = vst.msk [vmem:[#allocation3 + $0x78] sm:$0xff] %vm378_vm3, %v361_v3  ;;  %v2059_v3 = vld [vmem:[#allocation4 + $0x90] sm:$0xff]  ;;  %vm2132_vm3 = vcmask 458112  }
 0x162   :  { %2098 = vrot.lane.b32.xlu0 %v2059_v3, %s3059_s2 }
 0x163   :  { %v841_v50 = vpop.permute.xlu1 %840  ;;  %v1086_v51 = vld [vmem:[#allocation3 + $0x58] sm:$0xff] }
 0x164   :  { %v745_v49 = vpop.permute.xlu0 %744  ;;  %877 = vst.msk [vmem:[#allocation3 + $0x60] sm:$0xff] %vm864_vm8, %v841_v50  ;;  %2965 = vmatmul.mubr.msk.f32.gmra.mxu0 %vm1103_vm11, %v1086_v51  ;;  %v2156_v50 = vld [vmem:[#allocation4 + $0x91] sm:$0xff] }
 0x165   :  { %780 = vst.msk [vmem:[#allocation3 + $0x68] sm:$0xff] %vm766_vm7, %v745_v49  ;;  %v2253_v49 = vld [vmem:[#allocation4 + $0x92] sm:$0xff] }
 0x166   :  { %2292 = vrot.lane.b32.xlu1 %v2253_v49, %s3060_s22  ;;  %2195 = vrot.lane.b32.xlu0 %v2156_v50, %s3061_s19 }
 0x167   :  { %v553_v24 = vpop.permute.xlu1 %552 }
 0x168   :  { %v458_v52 = vpop.permute.xlu0 %457  ;;  %587 = vst.msk [vmem:[#allocation3 + $0x70] sm:$0xff] %vm572_vm5, %v553_v24 }
 0x169   :  { %491 = vst.msk [vmem:[#allocation3 + $0x78] sm:$0xff] %vm475_vm4, %v458_v52  ;;  %vm2229_vm4 = vcmask 523712  }
 0x16b   :  { %v938_v54 = vpop.permute.xlu1 %937 }
 0x16c   :  { %v843_v53 = vpop.permute.xlu0 %842  ;;  %974 = vst.msk [vmem:[#allocation3 + $0x60] sm:$0xff] %vm961_vm9, %v938_v54 }
 0x16d   :  { %878 = vst.msk [vmem:[#allocation3 + $0x68] sm:$0xff] %vm864_vm8, %v843_v53 }
 0x16f   :  { %v650_v56 = vpop.permute.xlu1 %649 }
 0x170   :  { %v555_v55 = vpop.permute.xlu0 %554  ;;  %684 = vst.msk [vmem:[#allocation3 + $0x70] sm:$0xff] %vm669_vm6, %v650_v56 }
 0x171   :  { %588 = vst.msk [vmem:[#allocation3 + $0x78] sm:$0xff] %vm572_vm5, %v555_v55  ;;  %vm2326_vm5 = vcmask 589312  }
 0x173   :  { %v1035_v58 = vpop.permute.xlu1 %1034 }
 0x174   :  { %v940_v57 = vpop.permute.xlu0 %939  ;;  %1071 = vst.msk [vmem:[#allocation3 + $0x60] sm:$0xff] %vm1058_vm10, %v1035_v58 }
 0x175   :  { %975 = vst.msk [vmem:[#allocation3 + $0x68] sm:$0xff] %vm961_vm9, %v940_v57 }
 0x177   :  { %v747_v60 = vpop.permute.xlu1 %746 }
 0x178   :  { %v652_v59 = vpop.permute.xlu0 %651  ;;  %781 = vst.msk [vmem:[#allocation3 + $0x70] sm:$0xff] %vm766_vm7, %v747_v60 }
 0x179   :  { %685 = vst.msk [vmem:[#allocation3 + $0x78] sm:$0xff] %vm669_vm6, %v652_v59  ;;  %vm2375_vm6 = vcmask 588800  }
 0x17b   :  { %v749_v62 = vpop.permute.xlu1 %748  ;;  %v1087_v63 = vld [vmem:[#allocation3 + $0x60] sm:$0xff] }
 0x17c   :  { %v1037_v61 = vpop.permute.xlu0 %1036  ;;  %782 = vst.msk [vmem:[#allocation3 + $0x78] sm:$0xff] %vm766_vm7, %v749_v62  ;;  %2967 = vmatprep.mubr.msk.f32.mxu0 %vm1103_vm11, %v1087_v63 }
 0x17d   :  { %1072 = vst.msk [vmem:[#allocation3 + $0x68] sm:$0xff] %vm1058_vm10, %v1037_v61 }
 0x17f   :  { %v847_v34 = vpop.permute.xlu1 %846 }
 0x180   :  { %v845_v2 = vpop.permute.xlu0 %844  ;;  %880 = vst.msk [vmem:[#allocation3 + $0x78] sm:$0xff] %vm864_vm8, %v847_v34 }
 0x181   :  { %879 = vst.msk [vmem:[#allocation3 + $0x70] sm:$0xff] %vm864_vm8, %v845_v2 }
 0x183   :  { %v944_v5 = vpop.permute.xlu1 %943 }
 0x184   :  { %v942_v4 = vpop.permute.xlu0 %941  ;;  %v1088_v6 = vld [vmem:[#allocation3 + $0x68] sm:$0xff]  ;;  %977 = vst.msk [vmem:[#allocation3 + $0x78] sm:$0xff] %vm961_vm9, %v944_v5  ;;  %v2951_v10 = vpop.f32.mrf.mxu0 }
 0x185   :  { %976 = vst.msk [vmem:[#allocation3 + $0x70] sm:$0xff] %vm961_vm9, %v942_v4  ;;  %2968 = vmatmul.mubr.msk.f32.gmra.mxu0 %vm1103_vm11, %v1088_v6  ;;  %v3814_v16 = vadd.f32 %v2951_v10, %v3811_v13 }
 0x186   :  { %v1222_v11 = vpop.f32.mrf.mxu0 }
 0x187   :  { %v1041_v39 = vpop.permute.xlu1 %1040  ;;  %v3817_v17 = vadd.f32 %v3811_v13, %v1222_v11  ;;  %v1303_v21 = vsel %vm1301_vm12, %v3814_v16, 0.0 }
 0x188   :  { %v1039_v7 = vpop.permute.xlu0 %1038  ;;  %1074 = vst.msk [vmem:[#allocation3 + $0x78] sm:$0xff] %vm1058_vm10, %v1041_v39 }
 0x189   :  { %1073 = vst.msk [vmem:[#allocation3 + $0x70] sm:$0xff] %vm1058_vm10, %v1039_v7  ;;  %v1302_v22 = vsel %vm1301_vm12, %v3817_v17, 0.0 }
 0x18a   :  { %v1304_v15 = vadd.f32 %v1303_v21, %v1302_v22 }
 0x18f   :  { %v1090_v9 = vld [vmem:[#allocation3 + $0x78] sm:$0xff] }
 0x190   :  { %v1089_v8 = vld [vmem:[#allocation3 + $0x70] sm:$0xff] }
 0x191   :  { %2970 = vmatprep.mubr.msk.f32.mxu0 %vm1103_vm11, %v1089_v8 }
 0x192   :  { %2971 = vmatmul.mubr.msk.f32.gmra.mxu0 %vm1103_vm11, %v1090_v9 }
 0x1a4   :  { %v2954_v12 = vpop.f32.mrf.mxu0 }
 0x1a5   :  { %v3869_v26 = vadd.f32 %v2954_v12, %v3811_v13 }
 0x1a6   :  { %v1232_v14 = vpop.f32.mrf.mxu0 }
 0x1a7   :  { %v3860_v20 = vadd.f32 %v3811_v13, %v1232_v14  ;;  %v1307_v1 = vsel %vm1301_vm12, %v3869_v26, 0.0 }
 0x1a9   :  { %v1305_v25 = vsel %vm1301_vm12, %v3860_v20, 0.0 }
 0x1aa   :  { %v1306_v18 = vadd.f32 %v1305_v25, %v1304_v15 }
 0x1ac   :  { %v1308_v32 = vadd.f32 %v1307_v1, %v1306_v18 }
 0x1c4   :  { %v2957_v19 = vpop.f32.mrf.mxu0 }
 0x1c5   :  { %v3881_v35 = vadd.f32 %v2957_v19, %v3811_v13 }
 0x1c6   :  { %v1242_v23 = vpop.f32.mrf.mxu0 }
 0x1c7   :  { %v3872_v0 = vadd.f32 %v3811_v13, %v1242_v23  ;;  %v1311_v41 = vsel %vm1301_vm12, %v3881_v35, 0.0 }
 0x1c9   :  { %v1309_v30 = vsel %vm1301_vm12, %v3872_v0, 0.0 }
 0x1ca   :  { %v1310_v37 = vadd.f32 %v1309_v30, %v1308_v32 }
 0x1cc   :  { %v1312_v43 = vadd.f32 %v1311_v41, %v1310_v37 }
 0x1e4   :  { %v2960_v44 = vpop.f32.mrf.mxu0 }
 0x1e5   :  { %v3892_v29 = vadd.f32 %v2960_v44, %v3811_v13 }
 0x1e6   :  { %v1252_v28 = vpop.f32.mrf.mxu0 }
 0x1e7   :  { %v3884_v36 = vadd.f32 %v3811_v13, %v1252_v28  ;;  %v1315_v52 = vsel %vm1301_vm12, %v3892_v29, 0.0 }
 0x1e9   :  { %v1313_v42 = vsel %vm1301_vm12, %v3884_v36, 0.0 }
 0x1ea   :  { %v1314_v48 = vadd.f32 %v1313_v42, %v1312_v43 }
 0x1ec   :  { %v1316_v53 = vadd.f32 %v1315_v52, %v1314_v48 }
 0x204   :  { %v2963_v33 = vpop.f32.mrf.mxu0 }
 0x205   :  { %v1268_v54 = vadd.f32 %v2963_v33, %v3811_v13 }
 0x206   :  { %v1262_v40 = vpop.f32.mrf.mxu0 }
 0x207   :  { %v3895_v46 = vadd.f32 %v3811_v13, %v1262_v40  ;;  %v1319_v59 = vsel %vm1301_vm12, %v1268_v54, 0.0 }
 0x209   :  { %v1317_v24 = vsel %vm1301_vm12, %v3895_v46, 0.0 }
 0x20a   :  { %v1318_v57 = vadd.f32 %v1317_v24, %v1316_v53 }
 0x20c   :  { %v1320_v61 = vadd.f32 %v1319_v59, %v1318_v57 }
 0x224   :  { %v2966_v45 = vpop.f32.mrf.mxu0 }
 0x225   :  { %v1278_v62 = vadd.f32 %v2966_v45, %v3811_v13 }
 0x226   :  { %v1272_v51 = vpop.f32.mrf.mxu0 }
 0x227   :  { %v1273_v55 = vadd.f32 %v3811_v13, %v1272_v51  ;;  %v1323_v34 = vsel %vm1301_vm12, %v1278_v62, 0.0 }
 0x229   :  { %v1321_v60 = vsel %vm1301_vm12, %v1273_v55, 0.0 }
 0x22a   :  { %v1322_v2 = vadd.f32 %v1321_v60, %v1320_v61 }
 0x22c   :  { %v1324_v5 = vadd.f32 %v1323_v34, %v1322_v2 }
 0x245   :  { %v2969_v56 = vpop.f32.mrf.mxu0 }
 0x246   :  { %v1288_v6 = vadd.f32 %v2969_v56, %v3811_v13 }
 0x247   :  { %v1282_v58 = vpop.f32.mrf.mxu0 }
 0x248   :  { %v1283_v63 = vadd.f32 %v3811_v13, %v1282_v58  ;;  %v1327_v9 = vsel %vm1301_vm12, %v1288_v6, 0.0 }
 0x24a   :  { %v1325_v4 = vsel %vm1301_vm12, %v1283_v63, 0.0 }
 0x24b   :  { %v1326_v7 = vadd.f32 %v1325_v4, %v1324_v5 }
 0x24d   :  { %v1328_v12 = vadd.f32 %v1327_v9, %v1326_v7 }
 0x252   :  { %v2972_v39 = vpop.f32.mrf.mxu0 }
 0x253   :  { %v3916_v10 = vadd.f32 %v2972_v39, %v3811_v13 }
 0x254   :  { %v1292_v8 = vpop.f32.mrf.mxu0 }
 0x255   :  { %v1293_v11 = vadd.f32 %v3811_v13, %v1292_v8  ;;  %v1331_v21 = vsel %vm1301_vm12, %v3916_v10, 0.0 }
 0x257   :  { %v1329_v14 = vsel %vm1301_vm12, %v1293_v11, 0.0 }
 0x258   :  { %v1330_v19 = vadd.f32 %v1329_v14, %v1328_v12 }
 0x25a   :  { %v1332_v22 = vadd.f32 %v1331_v21, %v1330_v19 }
 0x25c   :  { %v1333_v23 = vrot.slane %v1332_v22, 4 }
 0x25e   :  { %v1334_v25 = vadd.f32 %v1333_v23, %v1332_v22 }
 0x260   :  { %v1335_v15 = vrot.slane %v1334_v25, 2 }
 0x262   :  { %v1336_v44 = vadd.f32 %v1335_v15, %v1334_v25 }
 0x264   :  { %v1337_v27 = vrot.slane %v1336_v44, 1 }
 0x266   :  { %v1338_v18 = vadd.f32 %v1337_v27, %v1336_v44 }
 0x268   :  { %v1340_v28 = vmul.f32 0.0078125, %v1338_v18 }
 0x26a   :  { %v3923_v1 = vsub.f32 %v3817_v17, %v1340_v28  ;;  %v3926_v13 = vsub.f32 %v3814_v16, %v1340_v28  ;;  %v3929_v30 = vsub.f32 %v3860_v20, %v1340_v28  ;;  %v3932_v31 = vsub.f32 %v3869_v26, %v1340_v28 }
 0x26b   :  { %v3939_v37 = vsub.f32 %v3872_v0, %v1340_v28  ;;  %v3944_v16 = vsub.f32 %v3881_v35, %v1340_v28  ;;  %v3951_v41 = vsub.f32 %v3884_v36, %v1340_v28  ;;  %v3957_v35 = vsub.f32 %v3892_v29, %v1340_v28 }
 0x26c   :  { %v1357_v32 = vmul.f32 %v3923_v1, %v3923_v1  ;;  %v1358_v33 = vmul.f32 %v3926_v13, %v3926_v13  ;;  %v1359_v17 = vmul.f32 %v3929_v30, %v3929_v30  ;;  %v1360_v20 = vmul.f32 %v3932_v31, %v3932_v31 }
 0x26d   :  { %v1361_v0 = vmul.f32 %v3939_v37, %v3939_v37  ;;  %v1362_v45 = vmul.f32 %v3944_v16, %v3944_v16  ;;  %v3963_v48 = vsub.f32 %v3895_v46, %v1340_v28  ;;  %v1363_v36 = vmul.f32 %v3951_v41, %v3951_v41 }
 0x26e   :  { %v1373_v26 = vsel %vm1301_vm12, %v1357_v32, 0.0  ;;  %v1374_v38 = vsel %vm1301_vm12, %v1358_v33, 0.0  ;;  %v1376_v42 = vsel %vm1301_vm12, %v1359_v17, 0.0  ;;  %v1378_v47 = vsel %vm1301_vm12, %v1360_v20, 0.0 }
 0x26f   :  { %v1375_v40 = vadd.f32 %v1374_v38, %v1373_v26  ;;  %v1380_v49 = vsel %vm1301_vm12, %v1361_v0, 0.0  ;;  %v3968_v51 = vsub.f32 %v1268_v54, %v1340_v28  ;;  %v1364_v29 = vmul.f32 %v3957_v35, %v3957_v35  ;;  %v1534_v0 = vld [vmem:[#allocation4] sm:$0xff] }
 0x270   :  { %v1382_v52 = vsel %vm1301_vm12, %v1362_v45, 0.0  ;;  %v3973_v53 = vsub.f32 %v1273_v55, %v1340_v28  ;;  %v1365_v46 = vmul.f32 %v3963_v48, %v3963_v48  ;;  %v1384_v56 = vsel %vm1301_vm12, %v1363_v36, 0.0  ;;  %1550 = vst.msk [vmem:[#allocation5] sm:$0xff] %vm1301_vm12, %v1534_v0  ;;  %v1411_v36 = vld [vmem:[%s4607_s3] sm:$0x1] }
 0x271   :  { %v1377_v43 = vadd.f32 %v1376_v42, %v1375_v40  ;;  %v3978_v58 = vsub.f32 %v1278_v62, %v1340_v28  ;;  %v1366_v54 = vmul.f32 %v3968_v51, %v3968_v51  ;;  %v1386_v59 = vsel %vm1301_vm12, %v1364_v29, 0.0 }
 0x272   :  { %v3983_v61 = vsub.f32 %v1283_v63, %v1340_v28  ;;  %v1367_v55 = vmul.f32 %v3973_v53, %v3973_v53  ;;  %v1388_v2 = vsel %vm1301_vm12, %v1365_v46, 0.0  ;;  %v3988_v4 = vsub.f32 %v1288_v6, %v1340_v28  ;;  %v1712_v46 = vpop.permute.xlu1 %1711 }
 0x273   :  { %v1379_v3 = vadd.f32 %v1378_v47, %v1377_v43  ;;  %v1368_v62 = vmul.f32 %v3978_v58, %v3978_v58  ;;  %v1390_v5 = vsel %vm1301_vm12, %v1366_v54, 0.0  ;;  %v3993_v39 = vsub.f32 %v1293_v11, %v1340_v28  ;;  %v1599_v43 = vpop.permute.xlu0 %1598  ;;  %v1542_v47 = vld [vmem:[#allocation4 + $0xa0] sm:$0xff] }
 0x274   :  { %v1369_v63 = vmul.f32 %v3983_v61, %v3983_v61  ;;  %v1392_v8 = vsel %vm1301_vm12, %v1367_v55, 0.0  ;;  %v1356_v12 = vsub.f32 %v3916_v10, %v1340_v28  ;;  %v1370_v6 = vmul.f32 %v3988_v4, %v3988_v4  ;;  %1647 = vst.msk [vmem:[#allocation5] sm:$0xff] %vm1646_vm14, %v1599_v43 }
 0x275   :  { %v1381_v50 = vadd.f32 %v1380_v49, %v1379_v3  ;;  %v1394_v14 = vsel %vm1301_vm12, %v1368_v62, 0.0  ;;  %v1371_v21 = vmul.f32 %v3993_v39, %v3993_v39  ;;  %v1416_v42 = vlaneseq  ;;  %1558 = vst.msk [vmem:[#allocation5 + $0x40] sm:$0xff] %vm1301_vm12, %v1542_v47 }
 0x276   :  { %v1396_v11 = vsel %vm1301_vm12, %v1369_v63, 0.0  ;;  %v1372_v23 = vmul.f32 %v1356_v12, %v1356_v12  ;;  %v1398_v25 = vsel %vm1301_vm12, %v1370_v6, 0.0 }
 0x277   :  { %v1383_v24 = vadd.f32 %v1382_v52, %v1381_v50  ;;  %v1400_v44 = vsel %vm1301_vm12, %v1371_v21, 0.0  ;;  %v4010_v45 = vshrl.u32 %v1416_v42, 7  ;;  %v1696_v3 = vpop.permute.xlu0 %1695 }
 0x278   :  { %v1402_v10 = vsel %vm1301_vm12, %v1372_v23, 0.0  ;;  %1744 = vst.msk [vmem:[#allocation5] sm:$0xff] %vm1743_vm15, %v1696_v3 }
 0x279   :  { %v1385_v57 = vadd.f32 %v1384_v56, %v1383_v24  ;;  %v1418_v49 = vsub.s32 0, %v4010_v45  ;;  %v2892_v45 = vld [vmem:[%s4612_s8] ss:$0 sm:$0xff] }
 0x27b   :  { %v1387_v60 = vadd.f32 %v1386_v59, %v1385_v57  ;;  %v1615_v29 = vpop.permute.xlu0 %1614 }
 0x27c   :  { %1655 = vst.msk [vmem:[#allocation5 + $0x40] sm:$0xff] %vm1646_vm14, %v1615_v29 }
 0x27d   :  { %v1389_v34 = vadd.f32 %v1388_v2, %v1387_v60  ;;  %1752 = vst.msk [vmem:[#allocation5 + $0x40] sm:$0xff] %vm1743_vm15, %v1712_v46 }
 0x27f   :  { %v1391_v7 = vadd.f32 %v1390_v5, %v1389_v34 }
 0x281   :  { %v1393_v9 = vadd.f32 %v1392_v8, %v1391_v7 }
 0x283   :  { %v1395_v19 = vadd.f32 %v1394_v14, %v1393_v9 }
 0x285   :  { %v1397_v22 = vadd.f32 %v1396_v11, %v1395_v19 }
 0x287   :  { %v1399_v15 = vadd.f32 %v1398_v25, %v1397_v22 }
 0x289   :  { %v1401_v27 = vadd.f32 %v1400_v44, %v1399_v15 }
 0x28b   :  { %v1403_v18 = vadd.f32 %v1402_v10, %v1401_v27 }
 0x28d   :  { %v1404_v28 = vrot.slane %v1403_v18, 4 }
 0x28f   :  { %v1405_v32 = vadd.f32 %v1404_v28, %v1403_v18 }
 0x291   :  { %v1406_v33 = vrot.slane %v1405_v32, 2 }
 0x293   :  { %v1407_v17 = vadd.f32 %v1406_v33, %v1405_v32 }
 0x295   :  { %v1408_v20 = vrot.slane %v1407_v17, 1 }
 0x297   :  { %v1409_v26 = vadd.f32 %v1408_v20, %v1407_v17 }
 0x299   :  { %v1410_v38 = vmul.f32 0.0078125, %v1409_v26 }
 0x29b   :  { %v1412_v40 = vadd.f32 1e-05, %v1410_v38 }
 0x29d   :  { %3046 = vrsqrt.f32 %v1412_v40 }
 0x2aa   :  { %v3047_v50 = vpop.eup %3046 }
 0x2ab   :  { %v1414_v52 = vmul.f32 %v3047_v50, %v1411_v36 }
 0x2ad   :  { %v1419_v24 = vrot.slane %v1414_v52, %v1418_v49 }
 0x2af   :  { %v1421_v56 = vmul.f32 %v1419_v24, %v3923_v1  ;;  %v1422_v57 = vmul.f32 %v1419_v24, %v3926_v13  ;;  %v1423_v54 = vmul.f32 %v1419_v24, %v3929_v30  ;;  %v1424_v59 = vmul.f32 %v1419_v24, %v3932_v31  ;;  %v2874_v1 = vld [vmem:[%s4608_s4] ss:$0 sm:$0xff]  ;;  %s3062_s4 = smov 40  }
 0x2b0   :  { %v1425_v60 = vmul.f32 %v1419_v24, %v3939_v37  ;;  %v1426_v55 = vmul.f32 %v1419_v24, %v3944_v16  ;;  %v1427_v2 = vmul.f32 %v1419_v24, %v3951_v41  ;;  %v1428_v34 = vmul.f32 %v1419_v24, %v3957_v35 }
 0x2b1   :  { %v1429_v13 = vmul.f32 %v1419_v24, %v3963_v48  ;;  %v1430_v30 = vmul.f32 %v1419_v24, %v3968_v51  ;;  %v1431_v31 = vmul.f32 %v1419_v24, %v3973_v53  ;;  %v1432_v62 = vmul.f32 %v1419_v24, %v3978_v58 }
 0x2b2   :  { %v1433_v37 = vmul.f32 %v1419_v24, %v3983_v61  ;;  %v1434_v16 = vmul.f32 %v1419_v24, %v3988_v4  ;;  %v1435_v41 = vmul.f32 %v1419_v24, %v3993_v39  ;;  %v1436_v5 = vmul.f32 %v1419_v24, %v1356_v12 }
 0x2b3   :  { %v1444_v35 = vadd.f32 %v2874_v1, %v1421_v56  ;;  %v1445_v7 = vadd.f32 %v2874_v1, %v1422_v57  ;;  %v1446_v63 = vadd.f32 %v2874_v1, %v1423_v54  ;;  %v1447_v8 = vadd.f32 %v2874_v1, %v1424_v59 }
 0x2b4   :  { %v1448_v9 = vadd.f32 %v2874_v1, %v1425_v60  ;;  %v1449_v6 = vadd.f32 %v2874_v1, %v1426_v55  ;;  %v1450_v48 = vadd.f32 %v2874_v1, %v1427_v2  ;;  %v1451_v14 = vadd.f32 %v2874_v1, %v1428_v34 }
 0x2b5   :  { %v1452_v51 = vadd.f32 %v2874_v1, %v1429_v13  ;;  %v1453_v19 = vadd.f32 %v2874_v1, %v1430_v30  ;;  %v1454_v53 = vadd.f32 %v2874_v1, %v1431_v31  ;;  %v1455_v21 = vadd.f32 %v2874_v1, %v1432_v62  ;;  %v2367_v13 = vld [vmem:[%s4609_s5 + $0x40] sm:$0xff]  ;;  %v2366_v31 = vld [vmem:[%s4609_s5 + $0x38] sm:$0xff]  ;;  %v2365_v62 = vld [vmem:[%s4609_s5 + $0x30] sm:$0xff] }
 0x2b6   :  { %v1456_v58 = vadd.f32 %v2874_v1, %v1433_v37  ;;  %v1457_v11 = vadd.f32 %v2874_v1, %v1434_v16  ;;  %v1458_v61 = vadd.f32 %v2874_v1, %v1435_v41  ;;  %v1459_v22 = vadd.f32 %v2874_v1, %v1436_v5  ;;  %2973 = vmatprep.subr.mxu0 %v2367_v13  ;;  %v2364_v37 = vld [vmem:[%s4609_s5 + $0x28] sm:$0xff]  ;;  %v2363_v16 = vld [vmem:[%s4609_s5 + $0x20] sm:$0xff]  ;;  %v2362_v41 = vld [vmem:[%s4609_s5 + $0x18] sm:$0xff] }
 0x2b7   :  { %v1460_v4 = vmax.f32 %v1444_v35, 0.0  ;;  %v1461_v23 = vmax.f32 %v1445_v7, 0.0  ;;  %v1462_v39 = vmax.f32 %v1446_v63, 0.0  ;;  %v1463_v12 = vmax.f32 %v1447_v8, 0.0  ;;  %3015 = vmatprep.subr.mxu1 %v2367_v13  ;;  %2974 = vmatpush3.msra.mxu0 %v2367_v13  ;;  %v2361_v35 = vld [vmem:[%s4609_s5 + $0x10] sm:$0xff]  ;;  %v2360_v7 = vld [vmem:[%s4609_s5 + $0x8] sm:$0xff] }
 0x2b8   :  { %v1464_v25 = vmax.f32 %v1448_v9, 0.0  ;;  %v1465_v15 = vmax.f32 %v1449_v6, 0.0  ;;  %v1466_v44 = vmax.f32 %v1450_v48, 0.0  ;;  %v1467_v27 = vmax.f32 %v1451_v14, 0.0  ;;  %3024 = vmatpush3.msra.mxu1 %v2367_v13  ;;  %2975 = vmatprep.subr.mxu0 %v2366_v31  ;;  %v2359_v63 = vld [vmem:[%s4609_s5] sm:$0xff] }
 0x2b9   :  { %v1468_v10 = vmax.f32 %v1452_v51, 0.0  ;;  %v1469_v18 = vmax.f32 %v1453_v19, 0.0  ;;  %v1470_v28 = vmax.f32 %v1454_v53, 0.0  ;;  %v1471_v32 = vmax.f32 %v1455_v21, 0.0  ;;  %1518 = vst.msk [vmem:[#allocation4 + $0x11] sm:$0xff] %vm1301_vm12, %v1460_v4  ;;  %1519 = vst.msk [vmem:[#allocation4 + $0x21] sm:$0xff] %vm1301_vm12, %v1461_v23  ;;  %3016 = vmatprep.subr.mxu1 %v2366_v31  ;;  %2976 = vmatpush3.msra.mxu0 %v2366_v31  ;;  %v4200_v51 = vpop.permute.xlu0 %2098 }
 0x2ba   :  { %1520 = vst.msk [vmem:[#allocation4 + $0x31] sm:$0xff] %vm1301_vm12, %v1462_v39  ;;  %1521 = vst.msk [vmem:[#allocation4 + $0x41] sm:$0xff] %vm1301_vm12, %v1463_v12  ;;  %v1472_v33 = vmax.f32 %v1456_v58, 0.0  ;;  %v1473_v17 = vmax.f32 %v1457_v11, 0.0  ;;  %v1474_v20 = vmax.f32 %v1458_v61, 0.0  ;;  %v1475_v26 = vmax.f32 %v1459_v22, 0.0  ;;  %3025 = vmatpush3.msra.mxu1 %v2366_v31  ;;  %2977 = vmatprep.subr.mxu0 %v2365_v62  ;;  %v4206_v58 = vpop.permute.xlu1 %2292 }
 0x2bb   :  { %1522 = vst.msk [vmem:[#allocation4 + $0x51] sm:$0xff] %vm1301_vm12, %v1464_v25  ;;  %1523 = vst.msk [vmem:[#allocation4 + $0x61] sm:$0xff] %vm1301_vm12, %v1465_v15  ;;  %3017 = vmatprep.subr.mxu1 %v2365_v62  ;;  %2978 = vmatpush3.msra.mxu0 %v2365_v62 }
 0x2bc   :  { %1524 = vst.msk [vmem:[#allocation4 + $0x71] sm:$0xff] %vm1301_vm12, %v1466_v44  ;;  %1525 = vst.msk [vmem:[#allocation4 + $0x81] sm:$0xff] %vm1301_vm12, %v1467_v27  ;;  %3026 = vmatpush3.msra.mxu1 %v2365_v62  ;;  %2979 = vmatprep.subr.mxu0 %v2364_v37 }
 0x2bd   :  { %1527 = vst.msk [vmem:[#allocation4 + $0xc1] sm:$0xff] %vm1301_vm12, %v1469_v18  ;;  %1528 = vst.msk [vmem:[#allocation4 + $0xd1] sm:$0xff] %vm1301_vm12, %v1470_v28  ;;  %3018 = vmatprep.subr.mxu1 %v2364_v37  ;;  %2980 = vmatpush3.msra.mxu0 %v2364_v37  ;;  %v4208_v11 = vpop.permute.xlu0 %2195 }
 0x2be   :  { %1529 = vst.msk [vmem:[#allocation4 + $0xe1] sm:$0xff] %vm1301_vm12, %v1471_v32  ;;  %1526 = vst.msk [vmem:[#allocation4 + $0xb1] sm:$0xff] %vm1301_vm12, %v1468_v10  ;;  %3027 = vmatpush3.msra.mxu1 %v2364_v37  ;;  %2981 = vmatprep.subr.mxu0 %v2363_v16 }
 0x2bf   :  { %1530 = vst.msk [vmem:[#allocation4 + $0xf1] sm:$0xff] %vm1301_vm12, %v1472_v33  ;;  %1531 = vst.msk [vmem:[#allocation4 + $0x101] sm:$0xff] %vm1301_vm12, %v1473_v17  ;;  %3019 = vmatprep.subr.mxu1 %v2363_v16  ;;  %2982 = vmatpush3.msra.mxu0 %v2363_v16 }
 0x2c0   :  { %1532 = vst.msk [vmem:[#allocation4 + $0x111] sm:$0xff] %vm1301_vm12, %v1474_v20  ;;  %1533 = vst.msk [vmem:[#allocation4 + $0x121] sm:$0xff] %vm1301_vm12, %v1475_v26  ;;  %v1664_v38 = vld [vmem:[#allocation4 + $0x12] sm:$0xff]  ;;  %v1761_v0 = vld [vmem:[#allocation4 + $0x20] sm:$0xff]  ;;  %3028 = vmatpush3.msra.mxu1 %v2363_v16  ;;  %2983 = vmatprep.subr.mxu0 %v2362_v41 }
 0x2c1   :  { %v1567_v40 = vld [vmem:[#allocation4 + $0x11] sm:$0xff]  ;;  %1697 = vrot.lane.b32.xlu0 %v1664_v38, %s3054_s10  ;;  %v1763_v43 = vld [vmem:[#allocation4 + $0x40] sm:$0xff]  ;;  %1552 = vst.msk [vmem:[#allocation5 + $0x10] sm:$0xff] %vm1301_vm12, %v1761_v0  ;;  %3020 = vmatprep.subr.mxu1 %v2362_v41 }
 0x2c2   :  { %1600 = vrot.lane.b32.xlu1 %v1567_v40, %s3051_s26  ;;  %v1760_v42 = vld [vmem:[#allocation4 + $0x10] sm:$0xff]  ;;  %1554 = vst.msk [vmem:[#allocation5 + $0x20] sm:$0xff] %vm1301_vm12, %v1763_v43  ;;  %v1568_v36 = vld [vmem:[#allocation4 + $0x21] sm:$0xff]  ;;  %2984 = vmatpush3.msra.mxu0 %v2362_v41 }
 0x2c3   :  { %1551 = vst.msk [vmem:[#allocation5 + $0x8] sm:$0xff] %vm1301_vm12, %v1760_v42  ;;  %v1762_v47 = vld [vmem:[#allocation4 + $0x30] sm:$0xff]  ;;  %v4069_v29 = vld [vmem:[#allocation4 + $0x60] sm:$0xff]  ;;  %3029 = vmatpush3.msra.mxu1 %v2362_v41  ;;  %2985 = vmatprep.subr.mxu0 %v2361_v35 }
 0x2c4   :  { %v4061_v3 = vld [vmem:[#allocation4 + $0x31] sm:$0xff]  ;;  %1553 = vst.msk [vmem:[#allocation5 + $0x18] sm:$0xff] %vm1301_vm12, %v1762_v47  ;;  %1556 = vst.msk [vmem:[#allocation5 + $0x30] sm:$0xff] %vm1301_vm12, %v4069_v29  ;;  %v4079_v24 = vld [vmem:[#allocation4 + $0xc0] sm:$0xff]  ;;  %3021 = vmatprep.subr.mxu1 %v2361_v35  ;;  %2986 = vmatpush3.msra.mxu0 %v2361_v35 }
 0x2c5   :  { %v4063_v50 = vld [vmem:[#allocation4 + $0x50] sm:$0xff]  ;;  %1604 = vrot.lane.b32.xlu0 %v4061_v3, %s3051_s26  ;;  %1560 = vst.msk [vmem:[#allocation5 + $0x50] sm:$0xff] %vm1301_vm12, %v4079_v24  ;;  %v4091_v57 = vld [vmem:[#allocation4 + $0xe0] sm:$0xff]  ;;  %3030 = vmatpush3.msra.mxu1 %v2361_v35 }
 0x2c6   :  { %1602 = vrot.lane.b32.xlu1 %v1568_v36, %s3051_s26  ;;  %1555 = vst.msk [vmem:[#allocation5 + $0x28] sm:$0xff] %vm1301_vm12, %v4063_v50  ;;  %v4073_v52 = vld [vmem:[#allocation4 + $0x70] sm:$0xff]  ;;  %v1665_v59 = vld [vmem:[#allocation4 + $0x22] sm:$0xff]  ;;  %1562 = vst.msk [vmem:[#allocation5 + $0x60] sm:$0xff] %vm1301_vm12, %v4091_v57  ;;  %2987 = vmatprep.subr.mxu0 %v2360_v7 }
 0x2c7   :  { %1557 = vst.msk [vmem:[#allocation5 + $0x38] sm:$0xff] %vm1301_vm12, %v4073_v52  ;;  %v4083_v46 = vld [vmem:[#allocation4 + $0xb0] sm:$0xff]  ;;  %v4104_v55 = vld [vmem:[#allocation4 + $0x100] sm:$0xff]  ;;  %3022 = vmatprep.subr.mxu1 %v2360_v7  ;;  %2988 = vmatpush3.msra.mxu0 %v2360_v7 }
 0x2c8   :  { %v4087_v56 = vld [vmem:[#allocation4 + $0xd0] sm:$0xff]  ;;  %1559 = vst.msk [vmem:[#allocation5 + $0x48] sm:$0xff] %vm1301_vm12, %v4083_v46  ;;  %1564 = vst.msk [vmem:[#allocation5 + $0x70] sm:$0xff] %vm1301_vm12, %v4104_v55  ;;  %v1570_v34 = vld [vmem:[#allocation4 + $0x41] sm:$0xff]  ;;  %3031 = vmatpush3.msra.mxu1 %v2360_v7  ;;  %2989 = vmatprep.subr.mxu0 %v2359_v63 }
 0x2c9   :  { %1794 = vrot.lane.b32.xlu0 %v1761_v0, %s3056_s11  ;;  %1561 = vst.msk [vmem:[#allocation5 + $0x58] sm:$0xff] %vm1301_vm12, %v4087_v56  ;;  %v4095_v54 = vld [vmem:[#allocation4 + $0x32] sm:$0xff]  ;;  %v4128_v1 = vld [vmem:[#allocation4 + $0x42] sm:$0xff]  ;;  %3023 = vmatprep.subr.mxu1 %v2359_v63 }
 0x2ca   :  { %1792 = vrot.lane.b32.xlu1 %v1760_v42, %s3056_s11  ;;  %v4097_v60 = vld [vmem:[#allocation4 + $0xf0] sm:$0xff]  ;;  %2990 = vmatpush3.msra.mxu0 %v2359_v63  ;;  %v1572_v8 = vld [vmem:[#allocation4 + $0x61] sm:$0xff] }
 0x2cb   :  { %1563 = vst.msk [vmem:[#allocation5 + $0x68] sm:$0xff] %vm1301_vm12, %v4097_v60  ;;  %v4108_v2 = vld [vmem:[#allocation4 + $0x110] sm:$0xff]  ;;  %3032 = vmatpush3.msra.mxu1 %v2359_v63  ;;  %v1959_v6 = vld [vmem:[#allocation4 + $0x62] sm:$0xff] }
 0x2cc   :  { %1565 = vst.msk [vmem:[#allocation5 + $0x78] sm:$0xff] %vm1301_vm12, %v4108_v2  ;;  %v1571_v30 = vld [vmem:[#allocation4 + $0x51] sm:$0xff]  ;;  %v1767_v14 = vld [vmem:[#allocation4 + $0x80] sm:$0xff] }
 0x2cd   :  { %1701 = vrot.lane.b32.xlu0 %v4095_v54, %s3054_s10  ;;  %v1668_v5 = vld [vmem:[#allocation4 + $0x52] sm:$0xff]  ;;  %v1961_v53 = vld [vmem:[#allocation4 + $0x82] sm:$0xff] }
 0x2ce   :  { %1699 = vrot.lane.b32.xlu1 %v1665_v59, %s3054_s10  ;;  %v1573_v9 = vld [vmem:[#allocation4 + $0x71] sm:$0xff]  ;;  %v1864_v21 = vld [vmem:[#allocation4 + $0x81] sm:$0xff] }
 0x2cf   :  { %v1670_v48 = vld [vmem:[#allocation4 + $0x72] sm:$0xff]  ;;  %v1576_v12 = vld [vmem:[#allocation4 + $0xc1] sm:$0xff] }
 0x2d0   :  { %v1575_v19 = vld [vmem:[#allocation4 + $0xb1] sm:$0xff]  ;;  %v1963_v32 = vld [vmem:[#allocation4 + $0xc2] sm:$0xff] }
 0x2d1   :  { %1891 = vrot.lane.b32.xlu0 %v1568_v36, %s3058_s15  ;;  %v1672_v61 = vld [vmem:[#allocation4 + $0xb2] sm:$0xff]  ;;  %v1580_v63 = vld [vmem:[#allocation4 + $0x101] sm:$0xff] }
 0x2d2   :  { %1889 = vrot.lane.b32.xlu1 %v1567_v40, %s3058_s15  ;;  %v1577_v10 = vld [vmem:[#allocation4 + $0xd1] sm:$0xff] }
 0x2d3   :  { %v1674_v20 = vld [vmem:[#allocation4 + $0xd2] sm:$0xff] }
 0x2d4   :  { %v1676_v13 = vld [vmem:[#allocation4 + $0xf2] sm:$0xff] }
 0x2d5   :  { %1798 = vrot.lane.b32.xlu0 %v1763_v43, %s3056_s11 }
 0x2d6   :  { %1796 = vrot.lane.b32.xlu1 %v1762_v47, %s3056_s11 }
 0x2d9   :  { %1988 = vrot.lane.b32.xlu0 %v1665_v59, %s3062_s4 }
 0x2da   :  { %1986 = vrot.lane.b32.xlu1 %v1664_v38, %s3062_s4 }
 0x2dd   :  { %1606 = vrot.lane.b32.xlu0 %v1570_v34, %s3051_s26 }
 0x2de   :  { %1893 = vrot.lane.b32.xlu1 %v4061_v3, %s3058_s15 }
 0x2e1   :  { %1990 = vrot.lane.b32.xlu0 %v4095_v54, %s3062_s4 }
 0x2e2   :  { %2084 = vrot.lane.b32.xlu1 %v1761_v0, %s3059_s2 }
 0x2e5   :  { %2181 = vrot.lane.b32.xlu0 %v1568_v36, %s3061_s19  ;;  %v1578_v36 = vld [vmem:[#allocation4 + $0xe1] sm:$0xff] }
 0x2e6   :  { %1895 = vrot.lane.b32.xlu1 %v1570_v34, %s3058_s15 }
 0x2e9   :  { %1703 = vrot.lane.b32.xlu0 %v4128_v1, %s3054_s10 }
 0x2ea   :  { %2086 = vrot.lane.b32.xlu1 %v1762_v47, %s3059_s2 }
 0x2ed   :  { %2088 = vrot.lane.b32.xlu0 %v1763_v43, %s3059_s2 }
 0x2ee   :  { %1608 = vrot.lane.b32.xlu1 %v1571_v30, %s3051_s26 }
 0x2f1   :  { %2278 = vrot.lane.b32.xlu0 %v1665_v59, %s3060_s22  ;;  %v1965_v59 = vld [vmem:[#allocation4 + $0xe2] sm:$0xff] }
 0x2f2   :  { %1992 = vrot.lane.b32.xlu1 %v4128_v1, %s3062_s4 }
 0x2f5   :  { %1800 = vrot.lane.b32.xlu0 %v4063_v50, %s3056_s11 }
 0x2f6   :  { %2183 = vrot.lane.b32.xlu1 %v4061_v3, %s3061_s19 }
 0x2f9   :  { %2185 = vrot.lane.b32.xlu0 %v1570_v34, %s3061_s19 }
 0x2fa   :  { %1705 = vrot.lane.b32.xlu1 %v1668_v5, %s3054_s10 }
 0x2fd   :  { %1802 = vrot.lane.b32.xlu0 %v4069_v29, %s3056_s11 }
 0x2fe   :  { %2090 = vrot.lane.b32.xlu1 %v4063_v50, %s3059_s2 }
 0x301   :  { %2187 = vrot.lane.b32.xlu0 %v1571_v30, %s3061_s19 }
 0x302   :  { %2280 = vrot.lane.b32.xlu1 %v4095_v54, %s3060_s22 }
 0x305   :  { %1610 = vrot.lane.b32.xlu0 %v1572_v8, %s3051_s26 }
 0x306   :  { %1897 = vrot.lane.b32.xlu1 %v1571_v30, %s3058_s15 }
 0x309   :  { %1994 = vrot.lane.b32.xlu0 %v1668_v5, %s3062_s4 }
 0x30a   :  { %2282 = vrot.lane.b32.xlu1 %v4128_v1, %s3060_s22 }
 0x30d   :  { %1612 = vrot.lane.b32.xlu0 %v1573_v9, %s3051_s26 }
 0x30e   :  { %1899 = vrot.lane.b32.xlu1 %v1572_v8, %s3058_s15 }
 0x311   :  { %1996 = vrot.lane.b32.xlu0 %v1959_v6, %s3062_s4 }
 0x312   :  { %2284 = vrot.lane.b32.xlu1 %v1668_v5, %s3060_s22 }
 0x315   :  { %1709 = vrot.lane.b32.xlu0 %v1670_v48, %s3054_s10 }
 0x316   :  { %1707 = vrot.lane.b32.xlu1 %v1959_v6, %s3054_s10 }
 0x319   :  { %2094 = vrot.lane.b32.xlu0 %v4073_v52, %s3059_s2 }
 0x31a   :  { %2092 = vrot.lane.b32.xlu1 %v4069_v29, %s3059_s2 }
 0x31d   :  { %1806 = vrot.lane.b32.xlu0 %v1767_v14, %s3056_s11 }
 0x31e   :  { %1804 = vrot.lane.b32.xlu1 %v4073_v52, %s3056_s11 }
 0x321   :  { %2191 = vrot.lane.b32.xlu0 %v1573_v9, %s3061_s19 }
 0x322   :  { %2189 = vrot.lane.b32.xlu1 %v1572_v8, %s3061_s19 }
 0x325   :  { %1998 = vrot.lane.b32.xlu0 %v1670_v48, %s3062_s4 }
 0x326   :  { %1901 = vrot.lane.b32.xlu1 %v1573_v9, %s3058_s15 }
 0x329   :  { %1616 = vrot.lane.b32.xlu0 %v1575_v19, %s3051_s26 }
 0x32a   :  { %2286 = vrot.lane.b32.xlu1 %v1959_v6, %s3060_s22 }
 0x32d   :  { %2000 = vrot.lane.b32.xlu0 %v1961_v53, %s3062_s4 }
 0x32e   :  { %1903 = vrot.lane.b32.xlu1 %v1864_v21, %s3058_s15 }
 0x331   :  { %1713 = vrot.lane.b32.xlu0 %v1672_v61, %s3054_s10 }
 0x332   :  { %2288 = vrot.lane.b32.xlu1 %v1670_v48, %s3060_s22  ;;  %v1581_v48 = vld [vmem:[#allocation4 + $0x111] sm:$0xff] }
 0x333   :  { %v1698_v22 = vpop.permute.xlu0 %1697 }
 0x334   :  { %v1601_v4 = vpop.permute.xlu1 %1600 }
 0x335   :  { %1648 = vst.msk [vmem:[#allocation5 + $0x8] sm:$0xff] %vm1646_vm14, %v1601_v4  ;;  %1810 = vrot.lane.b32.xlu0 %v4079_v24, %s3056_s11  ;;  %v1678_v4 = vld [vmem:[#allocation4 + $0x112] sm:$0xff] }
 0x336   :  { %1745 = vst.msk [vmem:[#allocation5 + $0x8] sm:$0xff] %vm1743_vm15, %v1698_v22  ;;  %2096 = vrot.lane.b32.xlu1 %v1767_v14, %s3059_s2 }
 0x337   :  { %v1605_v23 = vpop.permute.xlu0 %1604 }
 0x338   :  { %v1603_v39 = vpop.permute.xlu1 %1602  ;;  %1650 = vst.msk [vmem:[#allocation5 + $0x18] sm:$0xff] %vm1646_vm14, %v1605_v23 }
 0x339   :  { %1649 = vst.msk [vmem:[#allocation5 + $0x10] sm:$0xff] %vm1646_vm14, %v1603_v39  ;;  %1618 = vrot.lane.b32.xlu0 %v1576_v12, %s3051_s26 }
 0x33a   :  { %1808 = vrot.lane.b32.xlu1 %v4083_v46, %s3056_s11  ;;  %v1579_v46 = vld [vmem:[#allocation4 + $0xf1] sm:$0xff] }
 0x33b   :  { %v1795_v25 = vpop.permute.xlu0 %1794 }
 0x33c   :  { %v1793_v15 = vpop.permute.xlu1 %1792  ;;  %1842 = vst.msk [vmem:[#allocation5 + $0x8] sm:$0xff] %vm1840_vm0, %v1795_v25 }
 0x33d   :  { %1841 = vst.msk [vmem:[#allocation5] sm:$0xff] %vm1840_vm0, %v1793_v15  ;;  %2002 = vrot.lane.b32.xlu0 %v1672_v61, %s3062_s4 }
 0x33e   :  { %2193 = vrot.lane.b32.xlu1 %v1864_v21, %s3061_s19  ;;  %v1967_v21 = vld [vmem:[#allocation4 + $0x102] sm:$0xff] }
 0x33f   :  { %v1702_v44 = vpop.permute.xlu0 %1701 }
 0x340   :  { %v1700_v27 = vpop.permute.xlu1 %1699  ;;  %1747 = vst.msk [vmem:[#allocation5 + $0x18] sm:$0xff] %vm1743_vm15, %v1702_v44  ;;  %v1775_v44 = vld [vmem:[#allocation4 + $0x120] sm:$0xff] }
 0x341   :  { %1746 = vst.msk [vmem:[#allocation5 + $0x10] sm:$0xff] %vm1743_vm15, %v1700_v27  ;;  %1620 = vrot.lane.b32.xlu0 %v1577_v10, %s3051_s26 }
 0x342   :  { %1905 = vrot.lane.b32.xlu1 %v1575_v19, %s3058_s15 }
 0x343   :  { %v1892_v18 = vpop.permute.xlu0 %1891 }
 0x344   :  { %v1890_v28 = vpop.permute.xlu1 %1889  ;;  %1939 = vst.msk [vmem:[#allocation5 + $0x8] sm:$0xff] %vm1937_vm1, %v1892_v18 }
 0x345   :  { %1938 = vst.msk [vmem:[#allocation5] sm:$0xff] %vm1937_vm1, %v1890_v28  ;;  %2004 = vrot.lane.b32.xlu0 %v1963_v32, %s3062_s4 }
 0x346   :  { %2290 = vrot.lane.b32.xlu1 %v1961_v53, %s3060_s22 }
 0x347   :  { %v1799_v33 = vpop.permute.xlu0 %1798 }
 0x348   :  { %v1797_v17 = vpop.permute.xlu1 %1796  ;;  %1844 = vst.msk [vmem:[#allocation5 + $0x18] sm:$0xff] %vm1840_vm0, %v1799_v33 }
 0x349   :  { %1843 = vst.msk [vmem:[#allocation5 + $0x10] sm:$0xff] %vm1840_vm0, %v1797_v17  ;;  %1717 = vrot.lane.b32.xlu0 %v1674_v20, %s3054_s10 }
 0x34a   :  { %1907 = vrot.lane.b32.xlu1 %v1576_v12, %s3058_s15 }
 0x34b   :  { %v1989_v26 = vpop.permute.xlu0 %1988 }
 0x34c   :  { %v1987_v38 = vpop.permute.xlu1 %1986  ;;  %2036 = vst.msk [vmem:[#allocation5 + $0x8] sm:$0xff] %vm2034_vm2, %v1989_v26 }
 0x34d   :  { %2035 = vst.msk [vmem:[#allocation5] sm:$0xff] %vm2034_vm2, %v1987_v38  ;;  %2102 = vrot.lane.b32.xlu0 %v4087_v56, %s3059_s2 }
 0x34e   :  { %1715 = vrot.lane.b32.xlu1 %v1963_v32, %s3054_s10 }
 0x34f   :  { %v1607_v40 = vpop.permute.xlu0 %1606 }
 0x350   :  { %v1894_v0 = vpop.permute.xlu1 %1893  ;;  %1651 = vst.msk [vmem:[#allocation5 + $0x20] sm:$0xff] %vm1646_vm14, %v1607_v40 }
 0x351   :  { %1940 = vst.msk [vmem:[#allocation5 + $0x10] sm:$0xff] %vm1937_vm1, %v1894_v0  ;;  %1814 = vrot.lane.b32.xlu0 %v4091_v57, %s3056_s11 }
 0x352   :  { %2100 = vrot.lane.b32.xlu1 %v4079_v24, %s3059_s2 }
 0x353   :  { %v1991_v42 = vpop.permute.xlu0 %1990 }
 0x354   :  { %v2085_v43 = vpop.permute.xlu1 %2084  ;;  %2037 = vst.msk [vmem:[#allocation5 + $0x10] sm:$0xff] %vm2034_vm2, %v1991_v42 }
 0x355   :  { %2133 = vst.msk [vmem:[#allocation5] sm:$0xff] %vm2132_vm3, %v2085_v43  ;;  %2199 = vrot.lane.b32.xlu0 %v1577_v10, %s3061_s19 }
 0x356   :  { %1812 = vrot.lane.b32.xlu1 %v4087_v56, %s3056_s11 }
 0x357   :  { %v2182_v47 = vpop.permute.xlu0 %2181 }
 0x358   :  { %v1896_v3 = vpop.permute.xlu1 %1895  ;;  %2230 = vst.msk [vmem:[#allocation5] sm:$0xff] %vm2229_vm4, %v2182_v47  ;;  %v2164_v47 = vld [vmem:[#allocation4 + $0x131] sm:$0xff] }
 0x359   :  { %1941 = vst.msk [vmem:[#allocation5 + $0x18] sm:$0xff] %vm1937_vm1, %v1896_v3  ;;  %1622 = vrot.lane.b32.xlu0 %v1578_v36, %s3051_s26 }
 0x35a   :  { %2197 = vrot.lane.b32.xlu1 %v1576_v12, %s3061_s19 }
 0x35b   :  { %v1704_v50 = vpop.permute.xlu0 %1703 }
 0x35c   :  { %v2087_v29 = vpop.permute.xlu1 %2086  ;;  %1748 = vst.msk [vmem:[#allocation5 + $0x20] sm:$0xff] %vm1743_vm15, %v1704_v50  ;;  %v2261_v50 = vld [vmem:[#allocation4 + $0x132] sm:$0xff] }
 0x35d   :  { %2134 = vst.msk [vmem:[#allocation5 + $0x8] sm:$0xff] %vm2132_vm3, %v2087_v29  ;;  %2006 = vrot.lane.b32.xlu0 %v1674_v20, %s3062_s4 }
 0x35e   :  { %1909 = vrot.lane.b32.xlu1 %v1577_v10, %s3058_s15 }
 0x35f   :  { %v2089_v52 = vpop.permute.xlu0 %2088 }
 0x360   :  { %v1609_v24 = vpop.permute.xlu1 %1608  ;;  %2135 = vst.msk [vmem:[#allocation5 + $0x10] sm:$0xff] %vm2132_vm3, %v2089_v52 }
 0x361   :  { %1652 = vst.msk [vmem:[#allocation5 + $0x28] sm:$0xff] %vm1646_vm14, %v1609_v24  ;;  %1624 = vrot.lane.b32.xlu0 %v1579_v46, %s3051_s26 }
 0x362   :  { %2294 = vrot.lane.b32.xlu1 %v1963_v32, %s3060_s22  ;;  %v1872_v32 = vld [vmem:[#allocation4 + $0x121] sm:$0xff] }
 0x363   :  { %v2279_v56 = vpop.permute.xlu0 %2278 }
 0x364   :  { %v1993_v54 = vpop.permute.xlu1 %1992  ;;  %2327 = vst.msk [vmem:[#allocation5] sm:$0xff] %vm2326_vm5, %v2279_v56 }
 0x365   :  { %2038 = vst.msk [vmem:[#allocation5 + $0x18] sm:$0xff] %vm2034_vm2, %v1993_v54  ;;  %2008 = vrot.lane.b32.xlu0 %v1965_v59, %s3062_s4 }
 0x366   :  { %1911 = vrot.lane.b32.xlu1 %v1578_v36, %s3058_s15 }
 0x367   :  { %v1801_v34 = vpop.permute.xlu0 %1800 }
 0x368   :  { %v2184_v1 = vpop.permute.xlu1 %2183  ;;  %1845 = vst.msk [vmem:[#allocation5 + $0x20] sm:$0xff] %vm1840_vm0, %v1801_v34 }
 0x369   :  { %2231 = vst.msk [vmem:[#allocation5 + $0x8] sm:$0xff] %vm2229_vm4, %v2184_v1  ;;  %1721 = vrot.lane.b32.xlu0 %v1676_v13, %s3054_s10 }
 0x36a   :  { %2296 = vrot.lane.b32.xlu1 %v1674_v20, %s3060_s22 }
 0x36b   :  { %v2186_v30 = vpop.permute.xlu0 %2185  ;;  %v2343_v62 = vld [vmem:[#allocation5] sm:$0xff] }
 0x36c   :  { %v1706_v31 = vpop.permute.xlu1 %1705  ;;  %2232 = vst.msk [vmem:[#allocation5 + $0x10] sm:$0xff] %vm2229_vm4, %v2186_v30  ;;  %2991 = vmatprep.mubr.msk.f32.mxu0 %vm2375_vm6, %v2343_v62 }
 0x36d   :  { %1749 = vst.msk [vmem:[#allocation5 + $0x28] sm:$0xff] %vm1743_vm15, %v1706_v31  ;;  %2106 = vrot.lane.b32.xlu0 %v4097_v60, %s3059_s2 }
 0x36e   :  { %1719 = vrot.lane.b32.xlu1 %v1965_v59, %s3054_s10 }
 0x36f   :  { %v1803_v37 = vpop.permute.xlu0 %1802 }
 0x370   :  { %v2091_v16 = vpop.permute.xlu1 %2090  ;;  %1846 = vst.msk [vmem:[#allocation5 + $0x28] sm:$0xff] %vm1840_vm0, %v1803_v37 }
 0x371   :  { %2136 = vst.msk [vmem:[#allocation5 + $0x18] sm:$0xff] %vm2132_vm3, %v2091_v16  ;;  %1818 = vrot.lane.b32.xlu0 %v4104_v55, %s3056_s11 }
 0x372   :  { %2104 = vrot.lane.b32.xlu1 %v4091_v57, %s3059_s2 }
 0x373   :  { %v2188_v41 = vpop.permute.xlu0 %2187 }
 0x374   :  { %v2281_v5 = vpop.permute.xlu1 %2280  ;;  %2233 = vst.msk [vmem:[#allocation5 + $0x18] sm:$0xff] %vm2229_vm4, %v2188_v41 }
 0x375   :  { %2328 = vst.msk [vmem:[#allocation5 + $0x8] sm:$0xff] %vm2326_vm5, %v2281_v5  ;;  %2203 = vrot.lane.b32.xlu0 %v1579_v46, %s3061_s19 }
 0x376   :  { %1816 = vrot.lane.b32.xlu1 %v4097_v60, %s3056_s11 }
 0x377   :  { %v1611_v35 = vpop.permute.xlu0 %1610 }
 0x378   :  { %v1898_v7 = vpop.permute.xlu1 %1897  ;;  %1653 = vst.msk [vmem:[#allocation5 + $0x30] sm:$0xff] %vm1646_vm14, %v1611_v35 }
 0x379   :  { %1942 = vst.msk [vmem:[#allocation5 + $0x20] sm:$0xff] %vm1937_vm1, %v1898_v7  ;;  %1626 = vrot.lane.b32.xlu0 %v1580_v63, %s3051_s26 }
 0x37a   :  { %2201 = vrot.lane.b32.xlu1 %v1578_v36, %s3061_s19 }
 0x37b   :  { %v1995_v57 = vpop.permute.xlu0 %1994 }
 0x37c   :  { %v2283_v8 = vpop.permute.xlu1 %2282  ;;  %v2344_v9 = vld [vmem:[#allocation5 + $0x8] sm:$0xff]  ;;  %2039 = vst.msk [vmem:[#allocation5 + $0x20] sm:$0xff] %vm2034_vm2, %v1995_v57 }
 0x37d   :  { %2329 = vst.msk [vmem:[#allocation5 + $0x10] sm:$0xff] %vm2326_vm5, %v2283_v8  ;;  %2992 = vmatmul.mubr.msk.f32.vlgmr.msra.gmra.mxu0 %vm2375_vm6, %v2344_v9  ;;  %2010 = vrot.lane.b32.xlu0 %v1676_v13, %s3062_s4 }
 0x37e   :  { %1913 = vrot.lane.b32.xlu1 %v1579_v46, %s3058_s15 }
 0x37f   :  { %v1613_v60 = vpop.permute.xlu0 %1612 }
 0x380   :  { %v1900_v6 = vpop.permute.xlu1 %1899  ;;  %1654 = vst.msk [vmem:[#allocation5 + $0x38] sm:$0xff] %vm1646_vm14, %v1613_v60 }
 0x381   :  { %1943 = vst.msk [vmem:[#allocation5 + $0x28] sm:$0xff] %vm1937_vm1, %v1900_v6  ;;  %1628 = vrot.lane.b32.xlu0 %v1581_v48, %s3051_s26 }
 0x382   :  { %2298 = vrot.lane.b32.xlu1 %v1965_v59, %s3060_s22 }
 0x383   :  { %v1997_v14 = vpop.permute.xlu0 %1996 }
 0x384   :  { %v2285_v19 = vpop.permute.xlu1 %2284  ;;  %v2345_v53 = vld [vmem:[#allocation5 + $0x10] sm:$0xff]  ;;  %2040 = vst.msk [vmem:[#allocation5 + $0x28] sm:$0xff] %vm2034_vm2, %v1997_v14 }
 0x385   :  { %2330 = vst.msk [vmem:[#allocation5 + $0x18] sm:$0xff] %vm2326_vm5, %v2285_v19  ;;  %2994 = vmatprep.mubr.msk.f32.mxu1 %vm2375_vm6, %v2345_v53  ;;  %2012 = vrot.lane.b32.xlu0 %v1967_v21, %s3062_s4 }
 0x386   :  { %1915 = vrot.lane.b32.xlu1 %v1580_v63, %s3058_s15 }
 0x387   :  { %v1710_v61 = vpop.permute.xlu0 %1709 }
 0x388   :  { %v1708_v22 = vpop.permute.xlu1 %1707  ;;  %1751 = vst.msk [vmem:[#allocation5 + $0x38] sm:$0xff] %vm1743_vm15, %v1710_v61 }
 0x389   :  { %1750 = vst.msk [vmem:[#allocation5 + $0x30] sm:$0xff] %vm1743_vm15, %v1708_v22  ;;  %1725 = vrot.lane.b32.xlu0 %v1678_v4, %s3054_s10 }
 0x38a   :  { %2300 = vrot.lane.b32.xlu1 %v1676_v13, %s3060_s22 }
 0x38b   :  { %v2095_v23 = vpop.permute.xlu0 %2094 }
 0x38c   :  { %v2093_v39 = vpop.permute.xlu1 %2092  ;;  %v2346_v12 = vld [vmem:[#allocation5 + $0x18] sm:$0xff]  ;;  %2138 = vst.msk [vmem:[#allocation5 + $0x28] sm:$0xff] %vm2132_vm3, %v2095_v23 }
 0x38d   :  { %2137 = vst.msk [vmem:[#allocation5 + $0x20] sm:$0xff] %vm2132_vm3, %v2093_v39  ;;  %2995 = vmatmul.mubr.msk.f32.vlgmr.msra.gmra.mxu1 %vm2375_vm6, %v2346_v12  ;;  %2110 = vrot.lane.b32.xlu0 %v4108_v2, %s3059_s2 }
 0x38e   :  { %1723 = vrot.lane.b32.xlu1 %v1967_v21, %s3054_s10 }
 0x38f   :  { %v1807_v25 = vpop.permute.xlu0 %1806 }
 0x390   :  { %v1805_v15 = vpop.permute.xlu1 %1804  ;;  %1848 = vst.msk [vmem:[#allocation5 + $0x38] sm:$0xff] %vm1840_vm0, %v1807_v25 }
 0x391   :  { %1847 = vst.msk [vmem:[#allocation5 + $0x30] sm:$0xff] %vm1840_vm0, %v1805_v15  ;;  %1822 = vrot.lane.b32.xlu0 %v1775_v44, %s3056_s11 }
 0x392   :  { %2108 = vrot.lane.b32.xlu1 %v4104_v55, %s3059_s2 }
 0x393   :  { %v2192_v27 = vpop.permute.xlu0 %2191 }
 0x394   :  { %v2190_v10 = vpop.permute.xlu1 %2189  ;;  %2235 = vst.msk [vmem:[#allocation5 + $0x28] sm:$0xff] %vm2229_vm4, %v2192_v27 }
 0x395   :  { %2234 = vst.msk [vmem:[#allocation5 + $0x20] sm:$0xff] %vm2229_vm4, %v2190_v10  ;;  %2207 = vrot.lane.b32.xlu0 %v1581_v48, %s3061_s19 }
 0x396   :  { %1820 = vrot.lane.b32.xlu1 %v4108_v2, %s3056_s11 }
 0x397   :  { %v1999_v18 = vpop.permute.xlu0 %1998 }
 0x398   :  { %v1902_v28 = vpop.permute.xlu1 %1901 }
 0x399   :  { %1944 = vst.msk [vmem:[#allocation5 + $0x30] sm:$0xff] %vm1937_vm1, %v1902_v28  ;;  %1919 = vrot.lane.b32.xlu0 %v1872_v32, %s3058_s15 }
 0x39a   :  { %2041 = vst.msk [vmem:[#allocation5 + $0x30] sm:$0xff] %vm2034_vm2, %v1999_v18  ;;  %2205 = vrot.lane.b32.xlu1 %v1580_v63, %s3061_s19 }
 0x39b   :  { %v1617_v55 = vpop.permute.xlu0 %1616 }
 0x39c   :  { %v2287_v33 = vpop.permute.xlu1 %2286  ;;  %1656 = vst.msk [vmem:[#allocation5 + $0x48] sm:$0xff] %vm1646_vm14, %v1617_v55 }
 0x39d   :  { %2331 = vst.msk [vmem:[#allocation5 + $0x20] sm:$0xff] %vm2326_vm5, %v2287_v33  ;;  %2304 = vrot.lane.b32.xlu0 %v1678_v4, %s3060_s22 }
 0x39e   :  { %1917 = vrot.lane.b32.xlu1 %v1581_v48, %s3058_s15 }
 0x39f   :  { %v2001_v2 = vpop.permute.xlu0 %2000 }
 0x3a0   :  { %v1904_v17 = vpop.permute.xlu1 %1903 }
 0x3a1   :  { %1945 = vst.msk [vmem:[#allocation5 + $0x38] sm:$0xff] %vm1937_vm1, %v1904_v17  ;;  %2112 = vrot.lane.b32.xlu0 %v1775_v44, %s3059_s2 }
 0x3a2   :  { %2042 = vst.msk [vmem:[#allocation5 + $0x38] sm:$0xff] %vm2034_vm2, %v2001_v2  ;;  %2302 = vrot.lane.b32.xlu1 %v1967_v21, %s3060_s22 }
 0x3a3   :  { %2140 = vst.msk [vmem:[#allocation5 + $0x38] sm:$0xff] %vm2132_vm3, %v4200_v51  ;;  %v1714_v20 = vpop.permute.xlu0 %1713 }
 0x3a4   :  { %2237 = vst.msk [vmem:[#allocation5 + $0x38] sm:$0xff] %vm2229_vm4, %v4208_v11  ;;  %v2289_v26 = vpop.permute.xlu1 %2288  ;;  %v2347_v38 = vld [vmem:[#allocation5 + $0x20] sm:$0xff] }
 0x3a5   :  { %2334 = vst.msk [vmem:[#allocation5 + $0x38] sm:$0xff] %vm2326_vm5, %v4206_v58  ;;  %2332 = vst.msk [vmem:[#allocation5 + $0x28] sm:$0xff] %vm2326_vm5, %v2289_v26  ;;  %2997 = vmatprep.mubr.msk.f32.mxu1 %vm2375_vm6, %v2347_v38  ;;  %2209 = vrot.lane.b32.xlu0 %v1872_v32, %s3061_s19  ;;  %v2260_v11 = vld [vmem:[#allocation4 + $0x122] sm:$0xff]  ;;  %v2067_v58 = vld [vmem:[#allocation4 + $0x130] sm:$0xff] }
 0x3a6   :  { %1753 = vst.msk [vmem:[#allocation5 + $0x48] sm:$0xff] %vm1743_vm15, %v1714_v20  ;;  %2014 = vrot.lane.b32.xlu1 %v1678_v4, %s3062_s4 }
 0x3a7   :  { %v1811_v51 = vpop.permute.xlu0 %1810 }
 0x3a8   :  { %v2097_v40 = vpop.permute.xlu1 %2096  ;;  %1850 = vst.msk [vmem:[#allocation5 + $0x48] sm:$0xff] %vm1840_vm0, %v1811_v51 }
 0x3a9   :  { %2139 = vst.msk [vmem:[#allocation5 + $0x30] sm:$0xff] %vm2132_vm3, %v2097_v40  ;;  %2306 = vrot.lane.b32.xlu0 %v2260_v11, %s3060_s22 }
 0x3aa   :  { %2016 = vrot.lane.b32.xlu1 %v2260_v11, %s3062_s4 }
 0x3ab   :  { %v1619_v0 = vpop.permute.xlu0 %1618 }
 0x3ac   :  { %v1809_v42 = vpop.permute.xlu1 %1808  ;;  %v2348_v43 = vld [vmem:[#allocation5 + $0x28] sm:$0xff]  ;;  %1657 = vst.msk [vmem:[#allocation5 + $0x50] sm:$0xff] %vm1646_vm14, %v1619_v0  ;;  %v2350_v13 = vld [vmem:[#allocation5 + $0x38] sm:$0xff] }
 0x3ad   :  { %1849 = vst.msk [vmem:[#allocation5 + $0x40] sm:$0xff] %vm1840_vm0, %v1809_v42  ;;  %2998 = vmatmul.mubr.msk.f32.gmra.mxu1 %vm2375_vm6, %v2348_v43 }
 0x3ae   :  { %2114 = vrot.lane.b32.xlu1 %v2067_v58, %s3059_s2 }
 0x3af   :  { %v2003_v3 = vpop.permute.xlu0 %2002 }
 0x3b0   :  { %v2194_v36 = vpop.permute.xlu1 %2193 }
 0x3b1   :  { %2236 = vst.msk [vmem:[#allocation5 + $0x30] sm:$0xff] %vm2229_vm4, %v2194_v36 }
 0x3b2   :  { %2211 = vrot.lane.b32.xlu1 %v2164_v47, %s3061_s19 }
 0x3b3   :  { %v1621_v29 = vpop.permute.xlu0 %1620 }
 0x3b4   :  { %v1906_v52 = vpop.permute.xlu1 %1905  ;;  %1658 = vst.msk [vmem:[#allocation5 + $0x58] sm:$0xff] %vm1646_vm14, %v1621_v29 }
 0x3b5   :  { %1946 = vst.msk [vmem:[#allocation5 + $0x40] sm:$0xff] %vm1937_vm1, %v1906_v52 }
 0x3b6   :  { %2043 = vst.msk [vmem:[#allocation5 + $0x40] sm:$0xff] %vm2034_vm2, %v2003_v3  ;;  %2308 = vrot.lane.b32.xlu1 %v2261_v50, %s3060_s22 }
 0x3b7   :  { %v2005_v24 = vpop.permute.xlu0 %2004 }
 0x3b8   :  { %v2291_v46 = vpop.permute.xlu1 %2290 }
 0x3b9   :  { %2333 = vst.msk [vmem:[#allocation5 + $0x30] sm:$0xff] %vm2326_vm5, %v2291_v46 }
 0x3bb   :  { %v1718_v56 = vpop.permute.xlu0 %1717 }
 0x3bc   :  { %v1908_v54 = vpop.permute.xlu1 %1907  ;;  %1755 = vst.msk [vmem:[#allocation5 + $0x58] sm:$0xff] %vm1743_vm15, %v1718_v56 }
 0x3bd   :  { %1947 = vst.msk [vmem:[#allocation5 + $0x48] sm:$0xff] %vm1937_vm1, %v1908_v54 }
 0x3be   :  { %2044 = vst.msk [vmem:[#allocation5 + $0x48] sm:$0xff] %vm2034_vm2, %v2005_v24 }
 0x3bf   :  { %v2103_v59 = vpop.permute.xlu0 %2102 }
 0x3c0   :  { %v1716_v34 = vpop.permute.xlu1 %1715  ;;  %v2349_v1 = vld [vmem:[#allocation5 + $0x30] sm:$0xff]  ;;  %2142 = vst.msk [vmem:[#allocation5 + $0x48] sm:$0xff] %vm2132_vm3, %v2103_v59 }
 0x3c1   :  { %1754 = vst.msk [vmem:[#allocation5 + $0x50] sm:$0xff] %vm1743_vm15, %v1716_v34  ;;  %3000 = vmatprep.mubr.msk.f32.mxu1 %vm2375_vm6, %v2349_v1  ;;  %v2875_v1 = vld [vmem:[%s4610_s6] ss:$0 sm:$0xff] }
 0x3c2   :  { %3001 = vmatmul.mubr.msk.f32.gmra.mxu1 %vm2375_vm6, %v2350_v13 }
 0x3c3   :  { %v1815_v30 = vpop.permute.xlu0 %1814 }
 0x3c4   :  { %v2101_v31 = vpop.permute.xlu1 %2100  ;;  %1852 = vst.msk [vmem:[#allocation5 + $0x58] sm:$0xff] %vm1840_vm0, %v1815_v30 }
 0x3c5   :  { %2141 = vst.msk [vmem:[#allocation5 + $0x40] sm:$0xff] %vm2132_vm3, %v2101_v31 }
 0x3c7   :  { %v2200_v62 = vpop.permute.xlu0 %2199 }
 0x3c8   :  { %v1813_v37 = vpop.permute.xlu1 %1812  ;;  %2239 = vst.msk [vmem:[#allocation5 + $0x48] sm:$0xff] %vm2229_vm4, %v2200_v62 }
 0x3c9   :  { %1851 = vst.msk [vmem:[#allocation5 + $0x50] sm:$0xff] %vm1840_vm0, %v1813_v37 }
 0x3cb   :  { %v1623_v16 = vpop.permute.xlu0 %1622 }
 0x3cc   :  { %v2198_v41 = vpop.permute.xlu1 %2197  ;;  %1659 = vst.msk [vmem:[#allocation5 + $0x60] sm:$0xff] %vm1646_vm14, %v1623_v16 }
 0x3cd   :  { %2238 = vst.msk [vmem:[#allocation5 + $0x40] sm:$0xff] %vm2229_vm4, %v2198_v41 }
 0x3cf   :  { %v2007_v5 = vpop.permute.xlu0 %2006 }
 0x3d0   :  { %v1910_v35 = vpop.permute.xlu1 %1909 }
 0x3d1   :  { %1948 = vst.msk [vmem:[#allocation5 + $0x50] sm:$0xff] %vm1937_vm1, %v1910_v35 }
 0x3d2   :  { %2045 = vst.msk [vmem:[#allocation5 + $0x50] sm:$0xff] %vm2034_vm2, %v2007_v5 }
 0x3d3   :  { %v1625_v7 = vpop.permute.xlu0 %1624 }
 0x3d4   :  { %v2295_v63 = vpop.permute.xlu1 %2294  ;;  %1660 = vst.msk [vmem:[#allocation5 + $0x68] sm:$0xff] %vm1646_vm14, %v1625_v7 }
 0x3d5   :  { %2335 = vst.msk [vmem:[#allocation5 + $0x40] sm:$0xff] %vm2326_vm5, %v2295_v63 }
 0x3d7   :  { %v2009_v57 = vpop.permute.xlu0 %2008 }
 0x3d8   :  { %v1912_v8 = vpop.permute.xlu1 %1911 }
 0x3d9   :  { %1949 = vst.msk [vmem:[#allocation5 + $0x58] sm:$0xff] %vm1937_vm1, %v1912_v8 }
 0x3da   :  { %2046 = vst.msk [vmem:[#allocation5 + $0x58] sm:$0xff] %vm2034_vm2, %v2009_v57 }
 0x3db   :  { %v1722_v9 = vpop.permute.xlu0 %1721 }
 0x3dc   :  { %v2297_v60 = vpop.permute.xlu1 %2296  ;;  %v2351_v6 = vld [vmem:[#allocation5 + $0x40] sm:$0xff]  ;;  %1757 = vst.msk [vmem:[#allocation5 + $0x68] sm:$0xff] %vm1743_vm15, %v1722_v9 }
 0x3dd   :  { %2336 = vst.msk [vmem:[#allocation5 + $0x48] sm:$0xff] %vm2326_vm5, %v2297_v60  ;;  %3003 = vmatprep.mubr.msk.f32.mxu1 %vm2375_vm6, %v2351_v6 }
 0x3df   :  { %v2107_v48 = vpop.permute.xlu0 %2106 }
 0x3e0   :  { %v1720_v14 = vpop.permute.xlu1 %1719  ;;  %2144 = vst.msk [vmem:[#allocation5 + $0x58] sm:$0xff] %vm2132_vm3, %v2107_v48 }
 0x3e1   :  { %1756 = vst.msk [vmem:[#allocation5 + $0x60] sm:$0xff] %vm1743_vm15, %v1720_v14 }
 0x3e3   :  { %v1819_v19 = vpop.permute.xlu0 %1818 }
 0x3e4   :  { %v2105_v53 = vpop.permute.xlu1 %2104  ;;  %v2352_v21 = vld [vmem:[#allocation5 + $0x48] sm:$0xff]  ;;  %1854 = vst.msk [vmem:[#allocation5 + $0x68] sm:$0xff] %vm1840_vm0, %v1819_v19 }
 0x3e5   :  { %2143 = vst.msk [vmem:[#allocation5 + $0x50] sm:$0xff] %vm2132_vm3, %v2105_v53  ;;  %3004 = vmatmul.mubr.msk.f32.gmra.mxu1 %vm2375_vm6, %v2352_v21 }
 0x3e7   :  { %v2204_v61 = vpop.permute.xlu0 %2203 }
 0x3e8   :  { %v1817_v22 = vpop.permute.xlu1 %1816  ;;  %2241 = vst.msk [vmem:[#allocation5 + $0x58] sm:$0xff] %vm2229_vm4, %v2204_v61 }
 0x3e9   :  { %1853 = vst.msk [vmem:[#allocation5 + $0x60] sm:$0xff] %vm1840_vm0, %v1817_v22 }
 0x3eb   :  { %v1627_v4 = vpop.permute.xlu0 %1626 }
 0x3ec   :  { %v2202_v23 = vpop.permute.xlu1 %2201  ;;  %1661 = vst.msk [vmem:[#allocation5 + $0x70] sm:$0xff] %vm1646_vm14, %v1627_v4 }
 0x3ed   :  { %2240 = vst.msk [vmem:[#allocation5 + $0x50] sm:$0xff] %vm2229_vm4, %v2202_v23 }
 0x3ef   :  { %v2011_v39 = vpop.permute.xlu0 %2010 }
 0x3f0   :  { %v1914_v12 = vpop.permute.xlu1 %1913 }
 0x3f1   :  { %1950 = vst.msk [vmem:[#allocation5 + $0x60] sm:$0xff] %vm1937_vm1, %v1914_v12 }
 0x3f2   :  { %2047 = vst.msk [vmem:[#allocation5 + $0x60] sm:$0xff] %vm2034_vm2, %v2011_v39 }
 0x3f3   :  { %v1629_v25 = vpop.permute.xlu0 %1628 }
 0x3f4   :  { %v2299_v15 = vpop.permute.xlu1 %2298  ;;  %1662 = vst.msk [vmem:[#allocation5 + $0x78] sm:$0xff] %vm1646_vm14, %v1629_v25 }
 0x3f5   :  { %2337 = vst.msk [vmem:[#allocation5 + $0x50] sm:$0xff] %vm2326_vm5, %v2299_v15 }
 0x3f7   :  { %v2013_v44 = vpop.permute.xlu0 %2012 }
 0x3f8   :  { %v1916_v27 = vpop.permute.xlu1 %1915 }
 0x3f9   :  { %1951 = vst.msk [vmem:[#allocation5 + $0x68] sm:$0xff] %vm1937_vm1, %v1916_v27 }
 0x3fa   :  { %2048 = vst.msk [vmem:[#allocation5 + $0x68] sm:$0xff] %vm2034_vm2, %v2013_v44 }
 0x3fb   :  { %v1726_v10 = vpop.permute.xlu0 %1725 }
 0x3fc   :  { %v2301_v18 = vpop.permute.xlu1 %2300  ;;  %v2353_v28 = vld [vmem:[#allocation5 + $0x50] sm:$0xff]  ;;  %1759 = vst.msk [vmem:[#allocation5 + $0x78] sm:$0xff] %vm1743_vm15, %v1726_v10 }
 0x3fd   :  { %2338 = vst.msk [vmem:[#allocation5 + $0x58] sm:$0xff] %vm2326_vm5, %v2301_v18  ;;  %3006 = vmatprep.mubr.msk.f32.mxu1 %vm2375_vm6, %v2353_v28 }
 0x3ff   :  { %v2111_v32 = vpop.permute.xlu0 %2110 }
 0x400   :  { %v1724_v55 = vpop.permute.xlu1 %1723  ;;  %2146 = vst.msk [vmem:[#allocation5 + $0x68] sm:$0xff] %vm2132_vm3, %v2111_v32 }
 0x401   :  { %1758 = vst.msk [vmem:[#allocation5 + $0x70] sm:$0xff] %vm1743_vm15, %v1724_v55 }
 0x403   :  { %v1823_v33 = vpop.permute.xlu0 %1822 }
 0x404   :  { %v2109_v2 = vpop.permute.xlu1 %2108  ;;  %v2354_v17 = vld [vmem:[#allocation5 + $0x58] sm:$0xff]  ;;  %1856 = vst.msk [vmem:[#allocation5 + $0x78] sm:$0xff] %vm1840_vm0, %v1823_v33 }
 0x405   :  { %2145 = vst.msk [vmem:[#allocation5 + $0x60] sm:$0xff] %vm2132_vm3, %v2109_v2  ;;  %3007 = vmatmul.mubr.msk.f32.gmra.mxu1 %vm2375_vm6, %v2354_v17 }
 0x407   :  { %v2208_v20 = vpop.permute.xlu0 %2207 }
 0x408   :  { %v1821_v26 = vpop.permute.xlu1 %1820  ;;  %2243 = vst.msk [vmem:[#allocation5 + $0x68] sm:$0xff] %vm2229_vm4, %v2208_v20 }
 0x409   :  { %1855 = vst.msk [vmem:[#allocation5 + $0x70] sm:$0xff] %vm1840_vm0, %v1821_v26 }
 0x40b   :  { %v1920_v38 = vpop.permute.xlu0 %1919 }
 0x40c   :  { %v2206_v51 = vpop.permute.xlu1 %2205  ;;  %1953 = vst.msk [vmem:[#allocation5 + $0x78] sm:$0xff] %vm1937_vm1, %v1920_v38 }
 0x40d   :  { %2242 = vst.msk [vmem:[#allocation5 + $0x60] sm:$0xff] %vm2229_vm4, %v2206_v51 }
 0x40f   :  { %v2305_v40 = vpop.permute.xlu0 %2304 }
 0x410   :  { %v1918_v11 = vpop.permute.xlu1 %1917  ;;  %2340 = vst.msk [vmem:[#allocation5 + $0x68] sm:$0xff] %vm2326_vm5, %v2305_v40 }
 0x411   :  { %1952 = vst.msk [vmem:[#allocation5 + $0x70] sm:$0xff] %vm1937_vm1, %v1918_v11 }
 0x413   :  { %v2113_v58 = vpop.permute.xlu0 %2112 }
 0x414   :  { %v2303_v0 = vpop.permute.xlu1 %2302 }
 0x415   :  { %2339 = vst.msk [vmem:[#allocation5 + $0x60] sm:$0xff] %vm2326_vm5, %v2303_v0 }
 0x417   :  { %v2210_v42 = vpop.permute.xlu0 %2209  ;;  %v2356_v50 = vld [vmem:[#allocation5 + $0x68] sm:$0xff] }
 0x418   :  { %v2015_v43 = vpop.permute.xlu1 %2014 }
 0x419   :  { %2049 = vst.msk [vmem:[#allocation5 + $0x70] sm:$0xff] %vm2034_vm2, %v2015_v43 }
 0x41a   :  { %2147 = vst.msk [vmem:[#allocation5 + $0x70] sm:$0xff] %vm2132_vm3, %v2113_v58 }
 0x41b   :  { %2244 = vst.msk [vmem:[#allocation5 + $0x70] sm:$0xff] %vm2229_vm4, %v2210_v42  ;;  %v2307_v47 = vpop.permute.xlu0 %2306 }
 0x41c   :  { %v2017_v3 = vpop.permute.xlu1 %2016  ;;  %v2355_v36 = vld [vmem:[#allocation5 + $0x60] sm:$0xff]  ;;  %2341 = vst.msk [vmem:[#allocation5 + $0x70] sm:$0xff] %vm2326_vm5, %v2307_v47 }
 0x41d   :  { %2050 = vst.msk [vmem:[#allocation5 + $0x78] sm:$0xff] %vm2034_vm2, %v2017_v3  ;;  %3009 = vmatprep.mubr.msk.f32.mxu1 %vm2375_vm6, %v2355_v36 }
 0x41e   :  { %3010 = vmatmul.mubr.msk.f32.gmra.mxu1 %vm2375_vm6, %v2356_v50 }
 0x420   :  { %v2115_v29 = vpop.permute.xlu1 %2114 }
 0x421   :  { %2148 = vst.msk [vmem:[#allocation5 + $0x78] sm:$0xff] %vm2132_vm3, %v2115_v29 }
 0x423   :  { %v2357_v24 = vld [vmem:[#allocation5 + $0x70] sm:$0xff] }
 0x424   :  { %v2212_v52 = vpop.permute.xlu1 %2211  ;;  %3012 = vmatprep.mubr.msk.f32.mxu1 %vm2375_vm6, %v2357_v24 }
 0x425   :  { %2245 = vst.msk [vmem:[#allocation5 + $0x78] sm:$0xff] %vm2229_vm4, %v2212_v52 }
 0x428   :  { %v2309_v46 = vpop.permute.xlu1 %2308 }
 0x429   :  { %2342 = vst.msk [vmem:[#allocation5 + $0x78] sm:$0xff] %vm2326_vm5, %v2309_v46 }
 0x430   :  { %v2358_v56 = vld [vmem:[#allocation5 + $0x78] sm:$0xff] }
 0x431   :  { %3013 = vmatmul.mubr.msk.f32.gmra.mxu1 %vm2375_vm6, %v2358_v56 }
 0x43d   :  { %v2993_v54 = vpop.f32.mrf.mxu0 }
 0x43e   :  { %v4436_v62 = vadd.f32 %v2993_v54, %v2875_v1 }
 0x43f   :  { %v2490_v34 = vpop.f32.mrf.mxu0 }
 0x440   :  { %v4434_v30 = vadd.f32 %v2875_v1, %v2490_v34  ;;  %v2570_v5 = vsel %vm1301_vm12, %v4436_v62, 0.0 }
 0x442   :  { %v2569_v16 = vsel %vm1301_vm12, %v4434_v30, 0.0 }
 0x443   :  { %v2571_v7 = vadd.f32 %v2570_v5, %v2569_v16 }
 0x44d   :  { %v2996_v59 = vpop.f32.mrf.mxu1 }
 0x44e   :  { %v2506_v57 = vadd.f32 %v2996_v59, %v2875_v1 }
 0x44f   :  { %v2500_v13 = vpop.f32.mrf.mxu1 }
 0x450   :  { %v4438_v37 = vadd.f32 %v2875_v1, %v2500_v13  ;;  %v2574_v6 = vsel %vm1301_vm12, %v2506_v57, 0.0 }
 0x452   :  { %v2572_v35 = vsel %vm1301_vm12, %v4438_v37, 0.0 }
 0x453   :  { %v2573_v9 = vadd.f32 %v2572_v35, %v2571_v7 }
 0x455   :  { %v2575_v14 = vadd.f32 %v2574_v6, %v2573_v9 }
 0x46d   :  { %v2999_v31 = vpop.f32.mrf.mxu1 }
 0x46e   :  { %v2516_v53 = vadd.f32 %v2999_v31, %v2875_v1 }
 0x46f   :  { %v2510_v41 = vpop.f32.mrf.mxu1 }
 0x470   :  { %v2511_v8 = vadd.f32 %v2875_v1, %v2510_v41  ;;  %v2578_v4 = vsel %vm1301_vm12, %v2516_v53, 0.0 }
 0x472   :  { %v2576_v48 = vsel %vm1301_vm12, %v2511_v8, 0.0 }
 0x473   :  { %v2577_v61 = vadd.f32 %v2576_v48, %v2575_v14 }
 0x475   :  { %v2579_v39 = vadd.f32 %v2578_v4, %v2577_v61 }
 0x482   :  { %v3002_v63 = vpop.f32.mrf.mxu1 }
 0x483   :  { %v2526_v25 = vadd.f32 %v3002_v63, %v2875_v1 }
 0x484   :  { %v2520_v60 = vpop.f32.mrf.mxu1 }
 0x485   :  { %v2521_v21 = vadd.f32 %v2875_v1, %v2520_v60  ;;  %v2582_v10 = vsel %vm1301_vm12, %v2526_v25, 0.0 }
 0x487   :  { %v2580_v23 = vsel %vm1301_vm12, %v2521_v21, 0.0 }
 0x488   :  { %v2581_v44 = vadd.f32 %v2580_v23, %v2579_v39 }
 0x48a   :  { %v2583_v28 = vadd.f32 %v2582_v10, %v2581_v44 }
 0x4a5   :  { %v3005_v19 = vpop.f32.mrf.mxu1 }
 0x4a6   :  { %v2536_v55 = vadd.f32 %v3005_v19, %v2875_v1 }
 0x4a7   :  { %v2530_v22 = vpop.f32.mrf.mxu1 }
 0x4a8   :  { %v2531_v15 = vadd.f32 %v2875_v1, %v2530_v22  ;;  %v2586_v20 = vsel %vm1301_vm12, %v2536_v55, 0.0 }
 0x4aa   :  { %v2584_v18 = vsel %vm1301_vm12, %v2531_v15, 0.0 }
 0x4ab   :  { %v2585_v2 = vadd.f32 %v2584_v18, %v2583_v28 }
 0x4ad   :  { %v2587_v38 = vadd.f32 %v2586_v20, %v2585_v2 }
 0x4c5   :  { %v3008_v12 = vpop.f32.mrf.mxu1 }
 0x4c6   :  { %v2546_v51 = vadd.f32 %v3008_v12, %v2875_v1 }
 0x4c7   :  { %v2540_v27 = vpop.f32.mrf.mxu1 }
 0x4c8   :  { %v2541_v33 = vadd.f32 %v2875_v1, %v2540_v27  ;;  %v2590_v58 = vsel %vm1301_vm12, %v2546_v51, 0.0 }
 0x4ca   :  { %v2588_v26 = vsel %vm1301_vm12, %v2541_v33, 0.0 }
 0x4cb   :  { %v2589_v11 = vadd.f32 %v2588_v26, %v2587_v38 }
 0x4cd   :  { %v2591_v42 = vadd.f32 %v2590_v58, %v2589_v11 }
 0x4de   :  { %v3011_v32 = vpop.f32.mrf.mxu1 }
 0x4df   :  { %v2556_v43 = vadd.f32 %v3011_v32, %v2875_v1 }
 0x4e0   :  { %v2550_v17 = vpop.f32.mrf.mxu1 }
 0x4e1   :  { %v2551_v40 = vadd.f32 %v2875_v1, %v2550_v17  ;;  %v2594_v50 = vsel %vm1301_vm12, %v2556_v43, 0.0 }
 0x4e3   :  { %v2592_v0 = vsel %vm1301_vm12, %v2551_v40, 0.0 }
 0x4e4   :  { %v2593_v47 = vadd.f32 %v2592_v0, %v2591_v42 }
 0x4e6   :  { %v2595_v24 = vadd.f32 %v2594_v50, %v2593_v47 }
 0x4f1   :  { %v3014_v3 = vpop.f32.mrf.mxu1 }
 0x4f2   :  { %v4457_v29 = vadd.f32 %v3014_v3, %v2875_v1 }
 0x4f3   :  { %v2560_v36 = vpop.f32.mrf.mxu1 }
 0x4f4   :  { %v2561_v52 = vadd.f32 %v2875_v1, %v2560_v36  ;;  %v2598_v54 = vsel %vm1301_vm12, %v4457_v29, 0.0 }
 0x4f6   :  { %v2596_v46 = vsel %vm1301_vm12, %v2561_v52, 0.0 }
 0x4f7   :  { %v2597_v56 = vadd.f32 %v2596_v46, %v2595_v24 }
 0x4f9   :  { %v2599_v59 = vadd.f32 %v2598_v54, %v2597_v56 }
 0x4fb   :  { %v2600_v34 = vrot.slane %v2599_v59, 4 }
 0x4fd   :  { %v2601_v13 = vadd.f32 %v2600_v34, %v2599_v59 }
 0x4ff   :  { %v2602_v31 = vrot.slane %v2601_v13, 2 }
 0x501   :  { %v2603_v16 = vadd.f32 %v2602_v31, %v2601_v13 }
 0x503   :  { %v2604_v41 = vrot.slane %v2603_v16, 1 }
 0x505   :  { %v2605_v5 = vadd.f32 %v2604_v41, %v2603_v16 }
 0x507   :  { %v2606_v35 = vmul.f32 0.0078125, %v2605_v5 }
 0x509   :  { %v4463_v7 = vsub.f32 %v4434_v30, %v2606_v35  ;;  %v4466_v1 = vsub.f32 %v4436_v62, %v2606_v35  ;;  %v4469_v63 = vsub.f32 %v4438_v37, %v2606_v35  ;;  %v4471_v9 = vsub.f32 %v2506_v57, %v2606_v35 }
 0x50a   :  { %v4477_v48 = vsub.f32 %v2511_v8, %v2606_v35  ;;  %v4481_v14 = vsub.f32 %v2516_v53, %v2606_v35  ;;  %v4487_v61 = vsub.f32 %v2521_v21, %v2606_v35  ;;  %v4492_v23 = vsub.f32 %v2526_v25, %v2606_v35 }
 0x50b   :  { %v2623_v60 = vmul.f32 %v4463_v7, %v4463_v7  ;;  %v2624_v6 = vmul.f32 %v4466_v1, %v4466_v1  ;;  %v2625_v30 = vmul.f32 %v4469_v63, %v4469_v63  ;;  %v2626_v62 = vmul.f32 %v4471_v9, %v4471_v9 }
 0x50c   :  { %v2627_v22 = vmul.f32 %v4477_v48, %v4477_v48  ;;  %v2628_v53 = vmul.f32 %v4481_v14, %v4481_v14  ;;  %v4497_v44 = vsub.f32 %v2531_v15, %v2606_v35  ;;  %v2629_v21 = vmul.f32 %v4487_v61, %v4487_v61 }
 0x50d   :  { %v2639_v37 = vsel %vm1301_vm12, %v2623_v60, 0.0  ;;  %v2640_v57 = vsel %vm1301_vm12, %v2624_v6, 0.0  ;;  %v2642_v8 = vsel %vm1301_vm12, %v2625_v30, 0.0  ;;  %v2644_v39 = vsel %vm1301_vm12, %v2626_v62, 0.0 }
 0x50e   :  { %v2641_v19 = vadd.f32 %v2640_v57, %v2639_v37  ;;  %v2646_v27 = vsel %vm1301_vm12, %v2627_v22, 0.0  ;;  %v4502_v18 = vsub.f32 %v2536_v55, %v2606_v35  ;;  %v2630_v25 = vmul.f32 %v4492_v23, %v4492_v23 }
 0x50f   :  { %v2648_v28 = vsel %vm1301_vm12, %v2628_v53, 0.0  ;;  %v2617_v2 = vsub.f32 %v2541_v33, %v2606_v35  ;;  %v2631_v17 = vmul.f32 %v4497_v44, %v4497_v44  ;;  %v2650_v15 = vsel %vm1301_vm12, %v2629_v21, 0.0 }
 0x510   :  { %v2643_v4 = vadd.f32 %v2642_v8, %v2641_v19  ;;  %v2618_v26 = vsub.f32 %v2546_v51, %v2606_v35  ;;  %v2632_v38 = vmul.f32 %v4502_v18, %v4502_v18  ;;  %v2652_v55 = vsel %vm1301_vm12, %v2630_v25, 0.0 }
 0x511   :  { %v2619_v58 = vsub.f32 %v2551_v40, %v2606_v35  ;;  %v2633_v0 = vmul.f32 %v2617_v2, %v2617_v2  ;;  %v2654_v42 = vsel %vm1301_vm12, %v2631_v17, 0.0  ;;  %v2620_v3 = vsub.f32 %v2556_v43, %v2606_v35 }
 0x512   :  { %v2645_v12 = vadd.f32 %v2644_v39, %v2643_v4  ;;  %v2634_v33 = vmul.f32 %v2618_v26, %v2618_v26  ;;  %v2656_v36 = vsel %vm1301_vm12, %v2632_v38, 0.0  ;;  %v2621_v24 = vsub.f32 %v2561_v52, %v2606_v35  ;;  %v2677_v4 = vld [vmem:[%s4611_s7] sm:$0x1] }
 0x513   :  { %v2635_v46 = vmul.f32 %v2619_v58, %v2619_v58  ;;  %v2658_v51 = vsel %vm1301_vm12, %v2633_v0, 0.0  ;;  %v2622_v54 = vsub.f32 %v4457_v29, %v2606_v35  ;;  %v2636_v59 = vmul.f32 %v2620_v3, %v2620_v3 }
 0x514   :  { %v2647_v10 = vadd.f32 %v2646_v27, %v2645_v12  ;;  %v2660_v34 = vsel %vm1301_vm12, %v2634_v33, 0.0  ;;  %v2637_v13 = vmul.f32 %v2621_v24, %v2621_v24 }
 0x515   :  { %v2662_v31 = vsel %vm1301_vm12, %v2635_v46, 0.0  ;;  %v2638_v43 = vmul.f32 %v2622_v54, %v2622_v54  ;;  %v2664_v41 = vsel %vm1301_vm12, %v2636_v59, 0.0 }
 0x516   :  { %v2649_v32 = vadd.f32 %v2648_v28, %v2647_v10  ;;  %v2666_v52 = vsel %vm1301_vm12, %v2637_v13, 0.0 }
 0x517   :  { %v2668_v6 = vsel %vm1301_vm12, %v2638_v43, 0.0 }
 0x518   :  { %v2651_v20 = vadd.f32 %v2650_v15, %v2649_v32 }
 0x51a   :  { %v2653_v11 = vadd.f32 %v2652_v55, %v2651_v20 }
 0x51c   :  { %v2655_v47 = vadd.f32 %v2654_v42, %v2653_v11 }
 0x51e   :  { %v2657_v50 = vadd.f32 %v2656_v36, %v2655_v47 }
 0x520   :  { %v2659_v56 = vadd.f32 %v2658_v51, %v2657_v50 }
 0x522   :  { %v2661_v40 = vadd.f32 %v2660_v34, %v2659_v56 }
 0x524   :  { %v2663_v16 = vadd.f32 %v2662_v31, %v2661_v40 }
 0x526   :  { %v2665_v5 = vadd.f32 %v2664_v41, %v2663_v16 }
 0x528   :  { %v2667_v60 = vadd.f32 %v2666_v52, %v2665_v5 }
 0x52a   :  { %v2669_v30 = vadd.f32 %v2668_v6, %v2667_v60 }
 0x52c   :  { %v2670_v62 = vrot.slane %v2669_v30, 4 }
 0x52e   :  { %v2671_v29 = vadd.f32 %v2670_v62, %v2669_v30 }
 0x530   :  { %v2672_v35 = vrot.slane %v2671_v29, 2 }
 0x532   :  { %v2673_v37 = vadd.f32 %v2672_v35, %v2671_v29 }
 0x534   :  { %v2674_v57 = vrot.slane %v2673_v37, 1 }
 0x536   :  { %v2675_v19 = vadd.f32 %v2674_v57, %v2673_v37 }
 0x538   :  { %v2676_v22 = vmul.f32 0.0078125, %v2675_v19 }
 0x53a   :  { %v2678_v8 = vadd.f32 1e-05, %v2676_v22 }
 0x53c   :  { %3048 = vrsqrt.f32 %v2678_v8 }
 0x549   :  { %v3049_v53 = vpop.eup %3048 }
 0x54a   :  { %v2680_v39 = vmul.f32 %v3049_v53, %v2677_v4 }
 0x54c   :  { %v2685_v12 = vrot.slane %v2680_v39, %v1418_v49 }
 0x54e   :  { %v2687_v21 = vmul.f32 %v2685_v12, %v4463_v7  ;;  %v2688_v27 = vmul.f32 %v2685_v12, %v4466_v1  ;;  %v2689_v10 = vmul.f32 %v2685_v12, %v4469_v63  ;;  %v2690_v25 = vmul.f32 %v2685_v12, %v4471_v9 }
 0x54f   :  { %v2691_v28 = vmul.f32 %v2685_v12, %v4477_v48  ;;  %v2692_v32 = vmul.f32 %v2685_v12, %v4481_v14  ;;  %v2693_v17 = vmul.f32 %v2685_v12, %v4487_v61  ;;  %v2694_v15 = vmul.f32 %v2685_v12, %v4492_v23 }
 0x550   :  { %v2695_v49 = vmul.f32 %v2685_v12, %v4497_v44  ;;  %v2696_v7 = vmul.f32 %v2685_v12, %v4502_v18  ;;  %v2697_v1 = vmul.f32 %v2685_v12, %v2617_v2  ;;  %v2698_v63 = vmul.f32 %v2685_v12, %v2618_v26 }
 0x551   :  { %v2699_v20 = vmul.f32 %v2685_v12, %v2619_v58  ;;  %v2700_v9 = vmul.f32 %v2685_v12, %v2620_v3  ;;  %v2701_v38 = vmul.f32 %v2685_v12, %v2621_v24  ;;  %v2702_v48 = vmul.f32 %v2685_v12, %v2622_v54 }
 0x552   :  { %v2710_v55 = vadd.f32 %v2892_v45, %v2687_v21  ;;  %v2711_v14 = vadd.f32 %v2892_v45, %v2688_v27  ;;  %v2712_v11 = vadd.f32 %v2892_v45, %v2689_v10  ;;  %v2713_v61 = vadd.f32 %v2892_v45, %v2690_v25 }
 0x553   :  { %v2714_v0 = vadd.f32 %v2892_v45, %v2691_v28  ;;  %v2715_v23 = vadd.f32 %v2892_v45, %v2692_v32  ;;  %v2716_v42 = vadd.f32 %v2892_v45, %v2693_v17  ;;  %v2717_v47 = vadd.f32 %v2892_v45, %v2694_v15 }
 0x554   :  { %v2718_v33 = vadd.f32 %v2892_v45, %v2695_v49  ;;  %v2719_v36 = vadd.f32 %v2892_v45, %v2696_v7  ;;  %v2720_v50 = vadd.f32 %v2892_v45, %v2697_v1  ;;  %v2721_v44 = vadd.f32 %v2892_v45, %v2698_v63 }
 0x555   :  { %v2722_v46 = vadd.f32 %v2892_v45, %v2699_v20  ;;  %v2723_v18 = vadd.f32 %v2892_v45, %v2700_v9  ;;  %v2724_v2 = vadd.f32 %v2892_v45, %v2701_v38  ;;  %v2725_v26 = vadd.f32 %v2892_v45, %v2702_v48 }
 0x556   :  { %v2726_v58 = vmax.f32 %v2710_v55, 0.0  ;;  %v2727_v3 = vmax.f32 %v2711_v14, 0.0  ;;  %v2728_v24 = vmax.f32 %v2712_v11, 0.0  ;;  %v2729_v51 = vmax.f32 %v2713_v61, 0.0 }
 0x557   :  { %v2730_v56 = vmax.f32 %v2714_v0, 0.0  ;;  %v2731_v54 = vmax.f32 %v2715_v23, 0.0  ;;  %v2732_v59 = vmax.f32 %v2716_v42, 0.0  ;;  %v2733_v34 = vmax.f32 %v2717_v47, 0.0 }
 0x558   :  { %v2734_v40 = vmax.f32 %v2718_v33, 0.0  ;;  %v2735_v13 = vmax.f32 %v2719_v36, 0.0  ;;  %v2736_v31 = vmax.f32 %v2720_v50, 0.0  ;;  %v2737_v16 = vmax.f32 %v2721_v44, 0.0  ;;  %2742 = vst.msk [vmem:[%s4613_s9] sm:$0xff] %vm1301_vm12, %v2726_v58  ;;  %2743 = vst.msk [vmem:[%s4613_s9 + $0x8] sm:$0xff] %vm1301_vm12, %v2727_v3 }
 0x559   :  { %2744 = vst.msk [vmem:[%s4613_s9 + $0x10] sm:$0xff] %vm1301_vm12, %v2728_v24  ;;  %2745 = vst.msk [vmem:[%s4613_s9 + $0x18] sm:$0xff] %vm1301_vm12, %v2729_v51  ;;  %v2738_v43 = vmax.f32 %v2722_v46, 0.0  ;;  %v2739_v41 = vmax.f32 %v2723_v18, 0.0  ;;  %v2740_v5 = vmax.f32 %v2724_v2, 0.0  ;;  %v2741_v52 = vmax.f32 %v2725_v26, 0.0 }
 0x55a   :  { %2746 = vst.msk [vmem:[%s4613_s9 + $0x20] sm:$0xff] %vm1301_vm12, %v2730_v56  ;;  %2747 = vst.msk [vmem:[%s4613_s9 + $0x28] sm:$0xff] %vm1301_vm12, %v2731_v54 }
 0x55b   :  { %2748 = vst.msk [vmem:[%s4613_s9 + $0x30] sm:$0xff] %vm1301_vm12, %v2732_v59  ;;  %2749 = vst.msk [vmem:[%s4613_s9 + $0x38] sm:$0xff] %vm1301_vm12, %v2733_v34 }
 0x55c   :  { %2750 = vst.msk [vmem:[%s4613_s9 + $0x40] sm:$0xff] %vm1301_vm12, %v2734_v40  ;;  %2751 = vst.msk [vmem:[%s4613_s9 + $0x48] sm:$0xff] %vm1301_vm12, %v2735_v13 }
 0x55d   :  { %2752 = vst.msk [vmem:[%s4613_s9 + $0x50] sm:$0xff] %vm1301_vm12, %v2736_v31  ;;  %2753 = vst.msk [vmem:[%s4613_s9 + $0x58] sm:$0xff] %vm1301_vm12, %v2737_v16 }
 0x55e   :  { %2754 = vst.msk [vmem:[%s4613_s9 + $0x60] sm:$0xff] %vm1301_vm12, %v2738_v43  ;;  %2755 = vst.msk [vmem:[%s4613_s9 + $0x68] sm:$0xff] %vm1301_vm12, %v2739_v41 }
 0x55f   :  { %2756 = vst.msk [vmem:[%s4613_s9 + $0x70] sm:$0xff] %vm1301_vm12, %v2740_v5  ;;  %2757 = vst.msk [vmem:[%s4613_s9 + $0x78] sm:$0xff] %vm1301_vm12, %v2741_v52 }

</bundles_post_ra>
